<compile_context>
chip_gen: v7x
topology: tpu7x:2x2x1
jax: 0.10.0
libtpu: 0.0.40
codegen_flags: <defaults>
</compile_context>

<pallas_src>
import jax
import jax.numpy as jnp
from jax.experimental import pallas as pl
from jax.experimental.pallas import tpu as pltpu


def _round_up(x, m):
    return (x + m - 1) // m * m


# ----------------------------------------------------------------------------
# Fused kernel: MLP -> (CP-expansion-folded) final projection -> elementwise CP product
# ----------------------------------------------------------------------------
def _make_fused_kernel(layer_meta, *, layer_norm, hidden, spatial, rc,
                       cp_hblk, cp_bias_base, n_cp_bias_rows,
                       vec_base, n_vec_rows, eps, dot_dtype):
    S, Rc, H = spatial, rc, hidden

    def kernel(z_ref, mlp_ref, cp_ref, out_ref):
        z = z_ref[...].astype(jnp.float32)

        # One aligned block-load of all bias / LayerNorm vectors; value-sliced afterwards.
        vecs = mlp_ref[vec_base:vec_base + n_vec_rows, :].astype(jnp.float32)

        # ---------------- MLP hidden layers ----------------
        x = z
        for m in layer_meta:
            w = mlp_ref[m["w_off"]:m["w_off"] + m["in_dim"], :m["out_dim"]]
            b = vecs[m["b_idx"]:m["b_idx"] + 1, :m["out_dim"]]
            h = jnp.dot(x.astype(dot_dtype), w,
                        preferred_element_type=jnp.float32) + b
            if m["append"]:
                # Single in-vreg lane concat (16+16 lanes), then one K=32 dot next layer.
                h = jnp.concatenate([h, z], axis=-1)
            if layer_norm:
                hn = h.shape[-1]
                mu = h.mean(axis=-1, keepdims=True)
                var = jnp.square(h - mu).mean(axis=-1, keepdims=True)
                g = vecs[m["g_idx"]:m["g_idx"] + 1, :hn]
                be = vecs[m["be_idx"]:m["be_idx"] + 1, :hn]
                h = (h - mu) * jax.lax.rsqrt(var + eps) * g + be
            x = jnp.maximum(h, 0.0)
            # TODO(synk): nn.Dropout is identity in eval mode; training-mode dropout
            # (pltpu.prng_* + mask + 1/(1-p) rescale) is not implemented here.

        # ------------- CP reconstruction via pre-folded expanded final weights -------------
        # out[b, (f,i,j,k)] = sum_r  prod_s ( a[b] @ Wexp_{s,r} + bexp_{s,r} )[(f,i,j,k)]
        a = x.astype(dot_dtype)
        cp_bias = cp_ref[cp_bias_base:cp_bias_base + n_cp_bias_rows, :].astype(jnp.float32)
        acc = None
        for r in range(Rc):
            prod = None
            for s in range(S):
                idx = s * Rc + r
                w = cp_ref[idx * cp_hblk: idx * cp_hblk + H, :]
                f = jnp.dot(a, w, preferred_element_type=jnp.float32) \
                    + cp_bias[idx:idx + 1, :]
                prod = f if prod is None else prod * f
            acc = prod if acc is None else acc + prod
        out_ref[...] = acc.astype(out_ref.dtype)

    return kernel


# ----------------------------------------------------------------------------
# AutoDecoder module (deterministic synthetic init) + parameter packing
# ----------------------------------------------------------------------------
class AutoDecoderPallas:
    def __init__(self, key, latent_dim=16, hidden_dim=32, num_layers=5,
                 append_latent=(4,), layer_norm=True, spatial_dim=3, Rc=2,
                 vox_reso=8, feat_dim=8, batch_tile=None,
                 param_dtype=jnp.float32, out_dtype=jnp.float32,
                 vmem_limit_bytes=None):
        assert spatial_dim == 3, "CP reconstruction is hard-coded for 3 factor tensors"
        self.latent_dim = latent_dim
        self.hidden_dim = hidden_dim
        self.num_layers = num_layers
        self.append_latent = tuple(append_latent)
        self.layer_norm = layer_norm
        self.spatial_dim = spatial_dim
        self.Rc = Rc
        self.vox_reso = vox_reso
        self.feat_dim = feat_dim
        self.out_feat_dim = spatial_dim * vox_reso * feat_dim * Rc
        self.batch_tile = batch_tile            # round to x8 + pads batch; use B/(2) on v7x
        self.param_dtype = param_dtype          # bf16 recommended on v6e/v7x
        self.out_dtype = out_dtype              # bf16 halves HBM writeback (esp. v5e)
        self.vmem_limit_bytes = vmem_limit_bytes

        # ---- raw parameters (torch.nn.Linear semantics; weight_norm folded) ----
        self.raw_layers = []
        for layer_idx in range(1, num_layers):
            in_dim = hidden_dim if layer_idx > 1 else latent_dim
            out_dim = (hidden_dim - latent_dim
                       if layer_idx in self.append_latent else hidden_dim)
            key, kw, kb, kg, kbe = jax.random.split(key, 5)
            W = jax.random.normal(kw, (in_dim, out_dim), jnp.float32) / jnp.sqrt(in_dim)
            b = 0.01 * jax.random.normal(kb, (out_dim,), jnp.float32)
            gamma = beta = None
            if layer_norm:
                gamma = 1.0 + 0.1 * jax.random.normal(kg, (hidden_dim,), jnp.float32)
                beta = 0.1 * jax.random.normal(kbe, (hidden_dim,), jnp.float32)
            self.raw_layers.append(dict(W=W, b=b, gamma=gamma, beta=beta,
                                        in_dim=in_dim, out_dim=out_dim))
        key, kw, kb = jax.random.split(key, 3)
        self.W_last = (jax.random.normal(kw, (hidden_dim, self.out_feat_dim), jnp.float32)
                       / jnp.sqrt(hidden_dim))
        self.b_last = 0.01 * jax.random.normal(kb, (self.out_feat_dim,), jnp.float32)

        self._pack_params()

    def _pack_params(self):
        H, L = self.hidden_dim, self.latent_dim
        S, Rc, V, F = self.spatial_dim, self.Rc, self.vox_reso, self.feat_dim
        FV3 = F * V ** 3
        pdt = self.param_dtype

        # ---- narrow blob: MLP weights (16-row-aligned blocks) + bias/LN vector rows ----
        width = _round_up(max([H, L] + [l["out_dim"] for l in self.raw_layers]), 128)
        w_off, layer_meta, w_chunks = 0, [], []
        for li, lay in enumerate(self.raw_layers):
            layer_meta.append(dict(w_off=w_off, in_dim=lay["in_dim"],
                                   out_dim=lay["out_dim"],
                                   append=((li + 1) in self.append_latent)))
            w_chunks.append((w_off, lay["W"]))
            w_off += _round_up(lay["in_dim"], 16)
        vec_base = _round_up(w_off, 16)
        vec_rows = []
        for li, lay in enumerate(self.raw_layers):
            layer_meta[li]["b_idx"] = len(vec_rows); vec_rows.append(lay["b"])
            if self.layer_norm:
                layer_meta[li]["g_idx"] = len(vec_rows); vec_rows.append(lay["gamma"])
                layer_meta[li]["be_idx"] = len(vec_rows); vec_rows.append(lay["beta"])
        n_vec_rows = _round_up(max(len(vec_rows), 1), 8)
        mlp = jnp.zeros((vec_base + n_vec_rows, width), jnp.float32)
        for off, Wm in w_chunks:
            mlp = mlp.at[off:off + Wm.shape[0], :Wm.shape[1]].set(Wm)
        for i, v in enumerate(vec_rows):
            mlp = mlp.at[vec_base + i, :v.shape[0]].set(v)
        self.mlp_blob = mlp.astype(pdt)
        self.layer_meta = layer_meta
        self.vec_base, self.n_vec_rows = vec_base, n_vec_rows

        # ---- wide blob: CP expansion folded into the final weight (exact 0/1 expansion) ----
        # Wexp_{s,r}[h, (f,i,j,k)] = W_last[h, col(s,r,v=i|j|k, f)]  (pure column broadcast)
        Hblk = _round_up(H, 16)
        bias_base = S * Rc * Hblk
        n_bias_rows = _round_up(S * Rc, 8)
        cp = jnp.zeros((bias_base + n_bias_rows, FV3), jnp.float32)
        Wl = self.W_last.reshape(H, S, Rc, V, F)
        bl = self.b_last.reshape(S, Rc, V, F)
        for s in range(S):
            for r in range(Rc):
                Wt = Wl[:, s, r].transpose(0, 2, 1)       # (H, F, V)
                bT = bl[s, r].T                           # (F, V)
                shp_w = [H, F, 1, 1, 1]; shp_w[2 + s] = V
                shp_b = [F, 1, 1, 1];   shp_b[1 + s] = V
                w_exp = jnp.broadcast_to(Wt.reshape(shp_w),
                                         (H, F, V, V, V)).reshape(H, FV3)
                b_exp = jnp.broadcast_to(bT.reshape(shp_b),
                                         (F, V, V, V)).reshape(FV3)
                idx = s * Rc + r
                cp = cp.at[idx * Hblk: idx * Hblk + H, :].set(w_exp)
                cp = cp.at[bias_base + idx, :].set(b_exp)
        self.cp_blob = cp.astype(pdt)
        self.cp_hblk, self.cp_bias_base, self.n_cp_bias_rows = Hblk, bias_base, n_bias_rows

    def __call__(self, z):
        B, L = z.shape
        assert L == self.latent_dim
        V, F = self.vox_reso, self.feat_dim
        FV3 = F * V ** 3

        # Batch rows per block: fill the MXU M dim / amortize per-step overhead.
        #   small batch  -> one block (full-array block dims; no padding needed)
        #   large batch  -> 128-row tiles (VMEM-safe default on v5e/v6e/v7x)
        #   explicit batch_tile (e.g. ceil(B/2) on v7x) -> rounded to x8, batch zero-padded.
        if self.batch_tile is not None:
            bt = max(8, _round_up(self.batch_tile, 8))
        elif B <= 256:
            bt = B
        else:
            bt = 128
        Bp = _round_up(B, bt)
        zp = z if Bp == B else jnp.pad(z, ((0, Bp - B), (0, 0)))
        n_blocks = Bp // bt

        kernel = _make_fused_kernel(
            self.layer_meta,
            layer_norm=self.layer_norm, hidden=self.hidden_dim,
            spatial=self.spatial_dim, rc=self.Rc,
            cp_hblk=self.cp_hblk, cp_bias_base=self.cp_bias_base,
            n_cp_bias_rows=self.n_cp_bias_rows,
            vec_base=self.vec_base, n_vec_rows=self.n_vec_rows,
            eps=1e-5, dot_dtype=self.param_dtype)

        cparams = dict(dimension_semantics=("parallel",))
        if self.vmem_limit_bytes is not None:
            cparams["vmem_limit_bytes"] = self.vmem_limit_bytes

        out = pl.pallas_call(
            kernel,
            out_shape=jax.ShapeDtypeStruct((Bp, FV3), self.out_dtype),
            grid=(n_blocks,),
            in_specs=[
                pl.BlockSpec((bt, L), lambda t: (t, 0)),
                pl.BlockSpec(self.mlp_blob.shape, lambda t: (0, 0)),  # resident constants
                pl.BlockSpec(self.cp_blob.shape, lambda t: (0, 0)),   # resident constants
            ],
            out_specs=pl.BlockSpec((bt, FV3), lambda t: (t, 0)),
            compiler_params=pltpu.CompilerParams(**cparams),
        )(zp, self.mlp_blob, self.cp_blob)

        if Bp != B:
            out = out[:B]
        grid = out.reshape(B, F, V, V, V)   # contiguous (free) reshape
        return {"grid": grid}


# ----------------------------------------------------------------------------
# Pure-JAX reference (uses the unpacked / unfolded parameters, concat-based)
# ----------------------------------------------------------------------------
def reference_forward(model, z, eps=1e-5):
    x = z
    for li, lay in enumerate(model.raw_layers):
        x = x @ lay["W"] + lay["b"]
        if (li + 1) in model.append_latent:
            x = jnp.concatenate([x, z], axis=1)
        if model.layer_norm:
            mu = x.mean(-1, keepdims=True)
            var = ((x - mu) ** 2).mean(-1, keepdims=True)
            x = (x - mu) / jnp.sqrt(var + eps) * lay["gamma"] + lay["beta"]
        x = jax.nn.relu(x)
    x = x @ model.W_last + model.b_last
    x = x.reshape(z.shape[0], model.spatial_dim, model.Rc, model.vox_reso, model.feat_dim)
    fvx, fvy, fvz = x[:, 0], x[:, 1], x[:, 2]
    return jnp.einsum("brif,brjf,brkf->bfijk", fvx, fvy, fvz)


if __name__ == "__main__":
    key = jax.random.PRNGKey(0)
    key, k_model, k_z = jax.random.split(key, 3)

    cfg = dict(latent_dim=16, hidden_dim=32, num_layers=5, append_latent=(4,),
               layer_norm=True, spatial_dim=3, Rc=2, vox_reso=8, feat_dim=8)

    model = AutoDecoderPallas(k_model, **cfg)

    batch = 2
    z = jax.random.normal(k_z, (batch, 16), jnp.float32)

    out = model(z)
    grid = jax.block_until_ready(out["grid"])

    ref = jax.block_until_ready(reference_forward(model, z))
    assert grid.shape == (batch, 8, 8, 8, 8), grid.shape
    max_err = float(jnp.max(jnp.abs(grid - ref)))
    assert jnp.allclose(grid, ref, rtol=1e-4, atol=1e-4), max_err

    # bf16 weights / dot operands / output (v6e & v7x recommendation): same raw params
    # (same key), checked loosely against the f32 reference.
    model_bf16 = AutoDecoderPallas(k_model, **cfg,
                                   param_dtype=jnp.bfloat16, out_dtype=jnp.bfloat16)
    grid_bf = jax.block_until_ready(model_bf16(z)["grid"]).astype(jnp.float32)
    rel = float(jnp.max(jnp.abs(grid_bf - ref)) / (jnp.max(jnp.abs(ref)) + 1e-6))
    assert rel < 0.2, rel

    print("KERNEL_OK")
</pallas_src>

<mosaic_0001>
module attributes {stable_mosaic.version = 11 : i64} {
  func.func @kernel(%arg0: i32, %arg1: memref<2x16xf32, #tpu.memory_space<vmem>>, %arg2: memref<128x128xf32, #tpu.memory_space<vmem>>, %arg3: memref<200x4096xf32, #tpu.memory_space<vmem>>, %arg4: memref<2x4096xf32, #tpu.memory_space<vmem>>) attributes {dimension_semantics = [#tpu.dimension_semantics<parallel>], iteration_bounds = array<i64: 1>, scalar_prefetch = 0 : i64, scratch_operands = 0 : i64, tpu.core_type = #tpu.core_type<tc>, window_params = [{transform_indices = @transform_0, window_bounds = array<i64: 2, 16>}, {pipeline_mode = #tpu.pipeline_mode<synchronous>, transform_indices = @transform_1, window_bounds = array<i64: 128, 128>}, {pipeline_mode = #tpu.pipeline_mode<synchronous>, transform_indices = @transform_2, window_bounds = array<i64: 200, 4096>}, {transform_indices = @transform_3, window_bounds = array<i64: 2, 4096>}]} {
    %c0 = arith.constant 0 : index
    %c0_0 = arith.constant 0 : index
    %0 = vector.load %arg1[%c0, %c0_0] : memref<2x16xf32, #tpu.memory_space<vmem>>, vector<2x16xf32>
    %c112 = arith.constant 112 : index
    %c0_1 = arith.constant 0 : index
    %1 = vector.load %arg2[%c112, %c0_1] : memref<128x128xf32, #tpu.memory_space<vmem>>, vector<16x128xf32>
    %c0_2 = arith.constant 0 : index
    %c0_3 = arith.constant 0 : index
    %2 = vector.load %arg2[%c0_2, %c0_3] : memref<128x128xf32, #tpu.memory_space<vmem>>, vector<16x32xf32>
    %3 = vector.extract_strided_slice %1 {offsets = [0, 0], sizes = [1, 32], strides = [1, 1]} : vector<16x128xf32> to vector<1x32xf32>
    %cst = arith.constant dense<0.000000e+00> : vector<2x32xf32>
    %4 = tpu.matmul %0, %2, %cst {dimension_numbers = #tpu.dot_dimension_numbers<[1], [0], [0], [1], [0, 0, 1, 1], [], []>} : vector<2x16xf32>, vector<16x32xf32>, vector<2x32xf32> -> vector<2x32xf32>
    %5 = vector.broadcast %3 : vector<1x32xf32> to vector<2x32xf32>
    %6 = arith.addf %4, %5 : vector<2x32xf32>
    %cst_4 = arith.constant dense<0.000000e+00> : vector<2xf32>
    %7 = vector.multi_reduction <add>, %6, %cst_4 [1] : vector<2x32xf32> to vector<2xf32>
    %8 = vector.shape_cast %7 : vector<2xf32> to vector<2x1xf32>
    %cst_5 = arith.constant 3.200000e+01 : f32
    %9 = vector.broadcast %cst_5 : f32 to vector<2x1xf32>
    %10 = arith.divf %8, %9 : vector<2x1xf32>
    %11 = vector.broadcast %10 : vector<2x1xf32> to vector<2x32xf32>
    %12 = arith.subf %6, %11 : vector<2x32xf32>
    %13 = arith.mulf %12, %12 : vector<2x32xf32>
    %cst_6 = arith.constant dense<0.000000e+00> : vector<2xf32>
    %14 = vector.multi_reduction <add>, %13, %cst_6 [1] : vector<2x32xf32> to vector<2xf32>
    %15 = vector.shape_cast %14 : vector<2xf32> to vector<2x1xf32>
    %cst_7 = arith.constant 3.200000e+01 : f32
    %16 = vector.broadcast %cst_7 : f32 to vector<2x1xf32>
    %17 = arith.divf %15, %16 : vector<2x1xf32>
    %18 = vector.extract_strided_slice %1 {offsets = [1, 0], sizes = [1, 32], strides = [1, 1]} : vector<16x128xf32> to vector<1x32xf32>
    %19 = vector.extract_strided_slice %1 {offsets = [2, 0], sizes = [1, 32], strides = [1, 1]} : vector<16x128xf32> to vector<1x32xf32>
    %20 = vector.broadcast %10 : vector<2x1xf32> to vector<2x32xf32>
    %21 = arith.subf %6, %20 : vector<2x32xf32>
    %cst_8 = arith.constant 9.99999974E-6 : f32
    %22 = vector.broadcast %cst_8 : f32 to vector<2x1xf32>
    %23 = arith.addf %17, %22 : vector<2x1xf32>
    %24 = math.rsqrt %23 : vector<2x1xf32>
    %25 = vector.broadcast %24 : vector<2x1xf32> to vector<2x32xf32>
    %26 = arith.mulf %21, %25 : vector<2x32xf32>
    %27 = vector.broadcast %18 : vector<1x32xf32> to vector<2x32xf32>
    %28 = arith.mulf %26, %27 : vector<2x32xf32>
    %29 = vector.broadcast %19 : vector<1x32xf32> to vector<2x32xf32>
    %30 = arith.addf %28, %29 : vector<2x32xf32>
    %cst_9 = arith.constant 0.000000e+00 : f32
    %31 = vector.broadcast %cst_9 : f32 to vector<2x32xf32>
    %32 = arith.maximumf %30, %31 : vector<2x32xf32>
    %c16 = arith.constant 16 : index
    %c0_10 = arith.constant 0 : index
    %33 = vector.load %arg2[%c16, %c0_10] : memref<128x128xf32, #tpu.memory_space<vmem>>, vector<32x32xf32>
    %34 = vector.extract_strided_slice %1 {offsets = [3, 0], sizes = [1, 32], strides = [1, 1]} : vector<16x128xf32> to vector<1x32xf32>
    %cst_11 = arith.constant dense<0.000000e+00> : vector<2x32xf32>
    %35 = tpu.matmul %32, %33, %cst_11 {dimension_numbers = #tpu.dot_dimension_numbers<[1], [0], [0], [1], [0, 0, 1, 1], [], []>} : vector<2x32xf32>, vector<32x32xf32>, vector<2x32xf32> -> vector<2x32xf32>
    %36 = vector.broadcast %34 : vector<1x32xf32> to vector<2x32xf32>
    %37 = arith.addf %35, %36 : vector<2x32xf32>
    %cst_12 = arith.constant dense<0.000000e+00> : vector<2xf32>
    %38 = vector.multi_reduction <add>, %37, %cst_12 [1] : vector<2x32xf32> to vector<2xf32>
    %39 = vector.shape_cast %38 : vector<2xf32> to vector<2x1xf32>
    %cst_13 = arith.constant 3.200000e+01 : f32
    %40 = vector.broadcast %cst_13 : f32 to vector<2x1xf32>
    %41 = arith.divf %39, %40 : vector<2x1xf32>
    %42 = vector.broadcast %41 : vector<2x1xf32> to vector<2x32xf32>
    %43 = arith.subf %37, %42 : vector<2x32xf32>
    %44 = arith.mulf %43, %43 : vector<2x32xf32>
    %cst_14 = arith.constant dense<0.000000e+00> : vector<2xf32>
    %45 = vector.multi_reduction <add>, %44, %cst_14 [1] : vector<2x32xf32> to vector<2xf32>
    %46 = vector.shape_cast %45 : vector<2xf32> to vector<2x1xf32>
    %cst_15 = arith.constant 3.200000e+01 : f32
    %47 = vector.broadcast %cst_15 : f32 to vector<2x1xf32>
    %48 = arith.divf %46, %47 : vector<2x1xf32>
    %49 = vector.extract_strided_slice %1 {offsets = [4, 0], sizes = [1, 32], strides = [1, 1]} : vector<16x128xf32> to vector<1x32xf32>
    %50 = vector.extract_strided_slice %1 {offsets = [5, 0], sizes = [1, 32], strides = [1, 1]} : vector<16x128xf32> to vector<1x32xf32>
    %51 = vector.broadcast %41 : vector<2x1xf32> to vector<2x32xf32>
    %52 = arith.subf %37, %51 : vector<2x32xf32>
    %cst_16 = arith.constant 9.99999974E-6 : f32
    %53 = vector.broadcast %cst_16 : f32 to vector<2x1xf32>
    %54 = arith.addf %48, %53 : vector<2x1xf32>
    %55 = math.rsqrt %54 : vector<2x1xf32>
    %56 = vector.broadcast %55 : vector<2x1xf32> to vector<2x32xf32>
    %57 = arith.mulf %52, %56 : vector<2x32xf32>
    %58 = vector.broadcast %49 : vector<1x32xf32> to vector<2x32xf32>
    %59 = arith.mulf %57, %58 : vector<2x32xf32>
    %60 = vector.broadcast %50 : vector<1x32xf32> to vector<2x32xf32>
    %61 = arith.addf %59, %60 : vector<2x32xf32>
    %cst_17 = arith.constant 0.000000e+00 : f32
    %62 = vector.broadcast %cst_17 : f32 to vector<2x32xf32>
    %63 = arith.maximumf %61, %62 : vector<2x32xf32>
    %c48 = arith.constant 48 : index
    %c0_18 = arith.constant 0 : index
    %64 = vector.load %arg2[%c48, %c0_18] : memref<128x128xf32, #tpu.memory_space<vmem>>, vector<32x32xf32>
    %65 = vector.extract_strided_slice %1 {offsets = [6, 0], sizes = [1, 32], strides = [1, 1]} : vector<16x128xf32> to vector<1x32xf32>
    %cst_19 = arith.constant dense<0.000000e+00> : vector<2x32xf32>
    %66 = tpu.matmul %63, %64, %cst_19 {dimension_numbers = #tpu.dot_dimension_numbers<[1], [0], [0], [1], [0, 0, 1, 1], [], []>} : vector<2x32xf32>, vector<32x32xf32>, vector<2x32xf32> -> vector<2x32xf32>
    %67 = vector.broadcast %65 : vector<1x32xf32> to vector<2x32xf32>
    %68 = arith.addf %66, %67 : vector<2x32xf32>
    %cst_20 = arith.constant dense<0.000000e+00> : vector<2xf32>
    %69 = vector.multi_reduction <add>, %68, %cst_20 [1] : vector<2x32xf32> to vector<2xf32>
    %70 = vector.shape_cast %69 : vector<2xf32> to vector<2x1xf32>
    %cst_21 = arith.constant 3.200000e+01 : f32
    %71 = vector.broadcast %cst_21 : f32 to vector<2x1xf32>
    %72 = arith.divf %70, %71 : vector<2x1xf32>
    %73 = vector.broadcast %72 : vector<2x1xf32> to vector<2x32xf32>
    %74 = arith.subf %68, %73 : vector<2x32xf32>
    %75 = arith.mulf %74, %74 : vector<2x32xf32>
    %cst_22 = arith.constant dense<0.000000e+00> : vector<2xf32>
    %76 = vector.multi_reduction <add>, %75, %cst_22 [1] : vector<2x32xf32> to vector<2xf32>
    %77 = vector.shape_cast %76 : vector<2xf32> to vector<2x1xf32>
    %cst_23 = arith.constant 3.200000e+01 : f32
    %78 = vector.broadcast %cst_23 : f32 to vector<2x1xf32>
    %79 = arith.divf %77, %78 : vector<2x1xf32>
    %80 = vector.extract_strided_slice %1 {offsets = [7, 0], sizes = [1, 32], strides = [1, 1]} : vector<16x128xf32> to vector<1x32xf32>
    %81 = vector.extract_strided_slice %1 {offsets = [8, 0], sizes = [1, 32], strides = [1, 1]} : vector<16x128xf32> to vector<1x32xf32>
    %82 = vector.broadcast %72 : vector<2x1xf32> to vector<2x32xf32>
    %83 = arith.subf %68, %82 : vector<2x32xf32>
    %cst_24 = arith.constant 9.99999974E-6 : f32
    %84 = vector.broadcast %cst_24 : f32 to vector<2x1xf32>
    %85 = arith.addf %79, %84 : vector<2x1xf32>
    %86 = math.rsqrt %85 : vector<2x1xf32>
    %87 = vector.broadcast %86 : vector<2x1xf32> to vector<2x32xf32>
    %88 = arith.mulf %83, %87 : vector<2x32xf32>
    %89 = vector.broadcast %80 : vector<1x32xf32> to vector<2x32xf32>
    %90 = arith.mulf %88, %89 : vector<2x32xf32>
    %91 = vector.broadcast %81 : vector<1x32xf32> to vector<2x32xf32>
    %92 = arith.addf %90, %91 : vector<2x32xf32>
    %cst_25 = arith.constant 0.000000e+00 : f32
    %93 = vector.broadcast %cst_25 : f32 to vector<2x32xf32>
    %94 = arith.maximumf %92, %93 : vector<2x32xf32>
    %c80 = arith.constant 80 : index
    %c0_26 = arith.constant 0 : index
    %95 = vector.load %arg2[%c80, %c0_26] : memref<128x128xf32, #tpu.memory_space<vmem>>, vector<32x16xf32>
    %96 = vector.extract_strided_slice %1 {offsets = [9, 0], sizes = [1, 16], strides = [1, 1]} : vector<16x128xf32> to vector<1x16xf32>
    %cst_27 = arith.constant dense<0.000000e+00> : vector<2x16xf32>
    %97 = tpu.matmul %94, %95, %cst_27 {dimension_numbers = #tpu.dot_dimension_numbers<[1], [0], [0], [1], [0, 0, 1, 1], [], []>} : vector<2x32xf32>, vector<32x16xf32>, vector<2x16xf32> -> vector<2x16xf32>
    %98 = vector.broadcast %96 : vector<1x16xf32> to vector<2x16xf32>
    %99 = arith.addf %97, %98 : vector<2x16xf32>
    %100 = tpu.concatenate %99, %0 in 1 : vector<2x16xf32>, vector<2x16xf32> -> vector<2x32xf32>
    %cst_28 = arith.constant dense<0.000000e+00> : vector<2xf32>
    %101 = vector.multi_reduction <add>, %100, %cst_28 [1] : vector<2x32xf32> to vector<2xf32>
    %102 = vector.shape_cast %101 : vector<2xf32> to vector<2x1xf32>
    %cst_29 = arith.constant 3.200000e+01 : f32
    %103 = vector.broadcast %cst_29 : f32 to vector<2x1xf32>
    %104 = arith.divf %102, %103 : vector<2x1xf32>
    %105 = vector.broadcast %104 : vector<2x1xf32> to vector<2x32xf32>
    %106 = arith.subf %100, %105 : vector<2x32xf32>
    %107 = arith.mulf %106, %106 : vector<2x32xf32>
    %cst_30 = arith.constant dense<0.000000e+00> : vector<2xf32>
    %108 = vector.multi_reduction <add>, %107, %cst_30 [1] : vector<2x32xf32> to vector<2xf32>
    %109 = vector.shape_cast %108 : vector<2xf32> to vector<2x1xf32>
    %cst_31 = arith.constant 3.200000e+01 : f32
    %110 = vector.broadcast %cst_31 : f32 to vector<2x1xf32>
    %111 = arith.divf %109, %110 : vector<2x1xf32>
    %112 = vector.extract_strided_slice %1 {offsets = [10, 0], sizes = [1, 32], strides = [1, 1]} : vector<16x128xf32> to vector<1x32xf32>
    %113 = vector.extract_strided_slice %1 {offsets = [11, 0], sizes = [1, 32], strides = [1, 1]} : vector<16x128xf32> to vector<1x32xf32>
    %114 = vector.broadcast %104 : vector<2x1xf32> to vector<2x32xf32>
    %115 = arith.subf %100, %114 : vector<2x32xf32>
    %cst_32 = arith.constant 9.99999974E-6 : f32
    %116 = vector.broadcast %cst_32 : f32 to vector<2x1xf32>
    %117 = arith.addf %111, %116 : vector<2x1xf32>
    %118 = math.rsqrt %117 : vector<2x1xf32>
    %119 = vector.broadcast %118 : vector<2x1xf32> to vector<2x32xf32>
    %120 = arith.mulf %115, %119 : vector<2x32xf32>
    %121 = vector.broadcast %112 : vector<1x32xf32> to vector<2x32xf32>
    %122 = arith.mulf %120, %121 : vector<2x32xf32>
    %123 = vector.broadcast %113 : vector<1x32xf32> to vector<2x32xf32>
    %124 = arith.addf %122, %123 : vector<2x32xf32>
    %cst_33 = arith.constant 0.000000e+00 : f32
    %125 = vector.broadcast %cst_33 : f32 to vector<2x32xf32>
    %126 = arith.maximumf %124, %125 : vector<2x32xf32>
    %c192 = arith.constant 192 : index
    %c0_34 = arith.constant 0 : index
    %127 = vector.load %arg3[%c192, %c0_34] : memref<200x4096xf32, #tpu.memory_space<vmem>>, vector<8x4096xf32>
    %c0_35 = arith.constant 0 : index
    %c0_36 = arith.constant 0 : index
    %128 = vector.load %arg3[%c0_35, %c0_36] : memref<200x4096xf32, #tpu.memory_space<vmem>>, vector<32x4096xf32>
    %cst_37 = arith.constant dense<0.000000e+00> : vector<2x4096xf32>
    %129 = tpu.matmul %126, %128, %cst_37 {dimension_numbers = #tpu.dot_dimension_numbers<[1], [0], [0], [1], [0, 0, 1, 1], [], []>} : vector<2x32xf32>, vector<32x4096xf32>, vector<2x4096xf32> -> vector<2x4096xf32>
    %130 = vector.extract_strided_slice %127 {offsets = [0, 0], sizes = [1, 4096], strides = [1, 1]} : vector<8x4096xf32> to vector<1x4096xf32>
    %131 = vector.broadcast %130 : vector<1x4096xf32> to vector<2x4096xf32>
    %132 = arith.addf %129, %131 : vector<2x4096xf32>
    %c64 = arith.constant 64 : index
    %c0_38 = arith.constant 0 : index
    %133 = vector.load %arg3[%c64, %c0_38] : memref<200x4096xf32, #tpu.memory_space<vmem>>, vector<32x4096xf32>
    %cst_39 = arith.constant dense<0.000000e+00> : vector<2x4096xf32>
    %134 = tpu.matmul %126, %133, %cst_39 {dimension_numbers = #tpu.dot_dimension_numbers<[1], [0], [0], [1], [0, 0, 1, 1], [], []>} : vector<2x32xf32>, vector<32x4096xf32>, vector<2x4096xf32> -> vector<2x4096xf32>
    %135 = vector.extract_strided_slice %127 {offsets = [2, 0], sizes = [1, 4096], strides = [1, 1]} : vector<8x4096xf32> to vector<1x4096xf32>
    %136 = vector.broadcast %135 : vector<1x4096xf32> to vector<2x4096xf32>
    %137 = arith.addf %134, %136 : vector<2x4096xf32>
    %138 = arith.mulf %132, %137 : vector<2x4096xf32>
    %c128 = arith.constant 128 : index
    %c0_40 = arith.constant 0 : index
    %139 = vector.load %arg3[%c128, %c0_40] : memref<200x4096xf32, #tpu.memory_space<vmem>>, vector<32x4096xf32>
    %cst_41 = arith.constant dense<0.000000e+00> : vector<2x4096xf32>
    %140 = tpu.matmul %126, %139, %cst_41 {dimension_numbers = #tpu.dot_dimension_numbers<[1], [0], [0], [1], [0, 0, 1, 1], [], []>} : vector<2x32xf32>, vector<32x4096xf32>, vector<2x4096xf32> -> vector<2x4096xf32>
    %141 = vector.extract_strided_slice %127 {offsets = [4, 0], sizes = [1, 4096], strides = [1, 1]} : vector<8x4096xf32> to vector<1x4096xf32>
    %142 = vector.broadcast %141 : vector<1x4096xf32> to vector<2x4096xf32>
    %143 = arith.addf %140, %142 : vector<2x4096xf32>
    %144 = arith.mulf %138, %143 : vector<2x4096xf32>
    %c32 = arith.constant 32 : index
    %c0_42 = arith.constant 0 : index
    %145 = vector.load %arg3[%c32, %c0_42] : memref<200x4096xf32, #tpu.memory_space<vmem>>, vector<32x4096xf32>
    %cst_43 = arith.constant dense<0.000000e+00> : vector<2x4096xf32>
    %146 = tpu.matmul %126, %145, %cst_43 {dimension_numbers = #tpu.dot_dimension_numbers<[1], [0], [0], [1], [0, 0, 1, 1], [], []>} : vector<2x32xf32>, vector<32x4096xf32>, vector<2x4096xf32> -> vector<2x4096xf32>
    %147 = vector.extract_strided_slice %127 {offsets = [1, 0], sizes = [1, 4096], strides = [1, 1]} : vector<8x4096xf32> to vector<1x4096xf32>
    %148 = vector.broadcast %147 : vector<1x4096xf32> to vector<2x4096xf32>
    %149 = arith.addf %146, %148 : vector<2x4096xf32>
    %c96 = arith.constant 96 : index
    %c0_44 = arith.constant 0 : index
    %150 = vector.load %arg3[%c96, %c0_44] : memref<200x4096xf32, #tpu.memory_space<vmem>>, vector<32x4096xf32>
    %cst_45 = arith.constant dense<0.000000e+00> : vector<2x4096xf32>
    %151 = tpu.matmul %126, %150, %cst_45 {dimension_numbers = #tpu.dot_dimension_numbers<[1], [0], [0], [1], [0, 0, 1, 1], [], []>} : vector<2x32xf32>, vector<32x4096xf32>, vector<2x4096xf32> -> vector<2x4096xf32>
    %152 = vector.extract_strided_slice %127 {offsets = [3, 0], sizes = [1, 4096], strides = [1, 1]} : vector<8x4096xf32> to vector<1x4096xf32>
    %153 = vector.broadcast %152 : vector<1x4096xf32> to vector<2x4096xf32>
    %154 = arith.addf %151, %153 : vector<2x4096xf32>
    %155 = arith.mulf %149, %154 : vector<2x4096xf32>
    %c160 = arith.constant 160 : index
    %c0_46 = arith.constant 0 : index
    %156 = vector.load %arg3[%c160, %c0_46] : memref<200x4096xf32, #tpu.memory_space<vmem>>, vector<32x4096xf32>
    %cst_47 = arith.constant dense<0.000000e+00> : vector<2x4096xf32>
    %157 = tpu.matmul %126, %156, %cst_47 {dimension_numbers = #tpu.dot_dimension_numbers<[1], [0], [0], [1], [0, 0, 1, 1], [], []>} : vector<2x32xf32>, vector<32x4096xf32>, vector<2x4096xf32> -> vector<2x4096xf32>
    %158 = vector.extract_strided_slice %127 {offsets = [5, 0], sizes = [1, 4096], strides = [1, 1]} : vector<8x4096xf32> to vector<1x4096xf32>
    %159 = vector.broadcast %158 : vector<1x4096xf32> to vector<2x4096xf32>
    %160 = arith.addf %157, %159 : vector<2x4096xf32>
    %161 = arith.mulf %155, %160 : vector<2x4096xf32>
    %162 = arith.addf %144, %161 : vector<2x4096xf32>
    %c0_48 = arith.constant 0 : index
    %c0_49 = arith.constant 0 : index
    %163 = vector.load %arg4[%c0_48, %c0_49] : memref<2x4096xf32, #tpu.memory_space<vmem>>, vector<2x4096xf32>
    tpu.vector_store %arg4[%c0_48, %c0_49], %162 {strides = array<i32>} : memref<2x4096xf32, #tpu.memory_space<vmem>>, vector<2x4096xf32>,
    return
  }
  func.func @transform_0(%arg0: i32) -> (i32, i32) {
    %c0_i32 = arith.constant 0 : i32
    %c0_i32_0 = arith.constant 0 : i32
    return %arg0, %c0_i32 : i32, i32
  }
  func.func @transform_1(%arg0: i32) -> (i32, i32) {
    %c0_i32 = arith.constant 0 : i32
    %c0_i32_0 = arith.constant 0 : i32
    %c0_i32_1 = arith.constant 0 : i32
    return %c0_i32, %c0_i32_0 : i32, i32
  }
  func.func @transform_2(%arg0: i32) -> (i32, i32) {
    %c0_i32 = arith.constant 0 : i32
    %c0_i32_0 = arith.constant 0 : i32
    %c0_i32_1 = arith.constant 0 : i32
    return %c0_i32, %c0_i32_0 : i32, i32
  }
  func.func @transform_3(%arg0: i32) -> (i32, i32) {
    %c0_i32 = arith.constant 0 : i32
    %c0_i32_0 = arith.constant 0 : i32
    return %arg0, %c0_i32 : i32, i32
  }
}

</mosaic_0001>

<bundles_post_ra>
// kernel: tpu_custom_call.1
= control target key start
LH: loop header
LB: loop body
LE: loop exit
PB: predicated region body
PF: predicated region fallthrough
CT: control target
= control target key end

     0   :  { %8 = vsyncpa [#allocation3], 0  ;;  %s12071_s0 = inlined_call_operand.hbm [shape: f32[2,16], index: 0, kind: input, shape index: {}]   ;;  %s12072_s1 = inlined_call_operand.hbm [shape: f32[128,128], index: 1, kind: input, shape index: {}]   ;;  %s12073_s2 = inlined_call_operand.hbm [shape: f32[200,4096], index: 2, kind: input, shape index: {}]   ;;  %s12074_s3 = inlined_call_operand.hbm [shape: f32[2,4096], index: 3, kind: output, shape index: {}]  }
   0x1   :  { %9 = vsyncpa [#allocation6], 0 }
   0x2   :  { %10 = vsyncpa [#allocation4], 0  ;;  %s10324_s12 = smov [#allocation5]   ;;  %s10230_s16 = scalar_lea.hbm %s12072_s1, 2048 }
   0x3   :  { %s26_s13 = sshll.u32 %s10324_s12, 4  ;;  %p10231_p0 = scmp.ne.s32.totalorder %s12072_s1, %s10230_s16  ;;  %s27_s13 = int_to_ptr.vmem [resolvable:$true] %s26_s13 }
   0x4   :  { %p10234_p1 = scmp.lt.u32.totalorder %s10230_s16, %s12072_s1 }
   0x6   :  { %p10236_p2 = pnand %p10234_p1, %p10231_p0 }
   0x8   :  { %10239 = shalt.err (!%p10236_p2)
}
   0x9   :  { %s10240_s21 = scalar_lea.vmem %s27_s13, 2048  ;;  %p10245_p4 = scmp.lt.s32.totalorder %s27_s13, %s27_s13 }
   0xa   :  { %p10241_p3 = scmp.ne.s32.totalorder %s27_s13, %s10240_s21  ;;  %p10246_p5 = scmp.lt.s32.totalorder %s10240_s21, %s10240_s21 }
   0xc   :  { %p10247_p6 = por %p10246_p5, %p10245_p4 }
   0xe   :  { %p10248_p7 = pnand %p10247_p6, %p10241_p3 }
  0x10   :  { %10251 = shalt.err (!%p10248_p7)
}
  0x11   :  { %s10325_s22 = smov 128   ;;  %s10326_s23 = smov 8  }
  0x12   :  { %32 = dma.hbm_to_vmem [thread:$0]  %s12072_s1, 2048, %s27_s13, [#allocation6], %s10325_s22, %s10325_s22, %s10326_s23  }
  0x13   :  { %s10327_s26 = smov [#allocation2]   ;;  %s10328_s28 = smov [#allocation7]  }
  0x14   :  { %s17_s27 = sshll.u32 %s10327_s26, 4  ;;  %s38_s29 = sshll.u32 %s10328_s28, 4  ;;  %s18_s27 = int_to_ptr.vmem [resolvable:$true] %s17_s27  ;;  %s39_s29 = int_to_ptr.vmem [resolvable:$true] %s38_s29 }
  0x15   :  { %s10252_s5 = scalar_lea.hbm %s12071_s0, 32 }
  0x16   :  { %p10253_p8 = scmp.ne.s32.totalorder %s12071_s0, %s10252_s5  ;;  %p10256_p9 = scmp.lt.u32.totalorder %s10252_s5, %s12071_s0 }
  0x18   :  { %p10258_p10 = pnand %p10256_p9, %p10253_p8 }
  0x1a   :  { %10261 = shalt.err (!%p10258_p10)
}
  0x1b   :  { %s10262_s1 = scalar_lea.vmem %s18_s27, 32  ;;  %p10267_p12 = scmp.lt.s32.totalorder %s18_s27, %s18_s27 }
  0x1c   :  { %p10263_p11 = scmp.ne.s32.totalorder %s18_s27, %s10262_s1  ;;  %p10268_p13 = scmp.lt.s32.totalorder %s10262_s1, %s10262_s1 }
  0x1e   :  { %p10269_p0 = por %p10268_p13, %p10267_p12 }
  0x20   :  { %p10270_p1 = pnand %p10269_p0, %p10263_p11 }
  0x22   :  { %10273 = shalt.err (!%p10270_p1)
}
  0x23   :  { %20 = dma.hbm_to_vmem [thread:$0]  %s12071_s0, 32, %s18_s27, [#allocation3]  }
  0x24   :  { %s10274_s14 = scalar_lea.hbm %s12073_s2, 102400 }
  0x25   :  { %p10275_p2 = scmp.ne.s32.totalorder %s12073_s2, %s10274_s14  ;;  %p10278_p3 = scmp.lt.u32.totalorder %s10274_s14, %s12073_s2 }
  0x27   :  { %p10280_p4 = pnand %p10278_p3, %p10275_p2 }
  0x29   :  { %10283 = shalt.err (!%p10280_p4)
}
  0x2a   :  { %s10284_s19 = scalar_lea.vmem %s39_s29, 102400  ;;  %p10289_p6 = scmp.lt.s32.totalorder %s39_s29, %s39_s29 }
  0x2b   :  { %p10285_p5 = scmp.ne.s32.totalorder %s39_s29, %s10284_s19  ;;  %p10290_p7 = scmp.lt.s32.totalorder %s10284_s19, %s10284_s19 }
  0x2d   :  { %p10291_p8 = por %p10290_p7, %p10289_p6 }
  0x2f   :  { %p10292_p9 = pnand %p10291_p8, %p10285_p5 }
  0x31   :  { %10295 = shalt.err (!%p10292_p9)
}
  0x32   :  { %s10329_s0 = smov 4096   ;;  %s10330_s20 = smov 256  }
  0x33   :  { %44 = dma.hbm_to_vmem [thread:$0]  %s12073_s2, 102400, %s39_s29, [#allocation6], %s10329_s0, %s10329_s0, %s10330_s20  }
  0x34   :  { %10318 = dma.done.wait [#allocation3], 32  }
  0x35   :  { %10319 = vsyncadd [#allocation3], 4294967264 }
  0x36   :  { %10320 = dma.done.wait [#allocation6], 104448  }
  0x37   :  { %10321 = vsyncadd [#allocation6], 4294862848  ;;  %v10331_v0 = vmov 0.0|0.0   ;;  %vm10332_vm0 = vmmov 0   ;;  %v12075_v1 = vmov 0.0   ;;  %v57_v2 = vld [vmem:[#allocation5] sm:$0xff]  ;;  %v59_v6 = vlaneseq }
  0x38   :  { %9388 = vmatprep.subr.bf16.mxu0 %v10331_v0  ;;  %9352 = vmatprep.mubr.msk.f32.mxu0 %vm10332_vm0, %v12075_v1  ;;  %v58_v3 = vld [vmem:[#allocation5 + $0x8] sm:$0xff]  ;;  %v10399_v5 = vld [vmem:[#allocation2] sm:$0x3]  ;;  %vm63_vm1 = vcmask 130048   ;;  %v10411_v9 = vld [vmem:[#allocation5 + $0x70] sm:$0xff]  ;;  %vm137_vm2 = vcmask 254976  }
  0x39   :  { %9391 = vmatprep.subr.bf16.mxu1 %v10331_v0  ;;  %9363 = vmatprep.mubr.msk.f32.mxu1 %vm10332_vm0, %v12075_v1  ;;  %v9389_v4 = vpack.c.bf16 %v58_v3, %v57_v2  ;;  %v10406_v7 = vshrl.u32 %v59_v6, 7  ;;  %v163_v20 = vld [vmem:[#allocation5 + $0x10] sm:$0xff]  ;;  %v164_v21 = vld [vmem:[#allocation5 + $0x18] sm:$0xff]  ;;  %v165_v22 = vld [vmem:[#allocation5 + $0x20] sm:$0xff]  ;;  %vm171_vm3 = vcmask 261120   ;;  %s10334_s2 = smov 16  }
  0x3a   :  { %v9392_v23 = vpack.c.bf16 %v164_v21, %v163_v20  ;;  %v166_v24 = vld [vmem:[#allocation5 + $0x28] sm:$0xff]  ;;  %v269_v49 = vld [vmem:[#allocation5 + $0x30] sm:$0xff]  ;;  %v270_v50 = vld [vmem:[#allocation5 + $0x38] sm:$0xff]  ;;  %s10336_s23 = smov [#allocation8]  }
  0x3b   :  { %9390 = vmatpush3.bf16.msra.mxu0 %v9389_v4  ;;  %12126 = vst [vmem:[#allocation12_spill] sm:$0xff] %v10406_v7  ;;  %v10409_v8 = vsub.s32 0, %v10406_v7  ;;  %v9395_v25 = vpack.c.bf16 %v166_v24, %v165_v22  ;;  %v10420_v29 = vsub.s32 1, %v10406_v7  ;;  %v10423_v30 = vsub.s32 2, %v10406_v7  ;;  %v271_v52 = vld [vmem:[#allocation5 + $0x40] sm:$0xff]  ;;  %v272_v53 = vld [vmem:[#allocation5 + $0x48] sm:$0xff] }
  0x3c   :  { %9397 = vmatprep.subr.bf16.mxu0 %v10331_v0  ;;  %9393 = vmatpush3.bf16.msra.mxu1 %v9392_v23  ;;  %v10433_v38 = vsub.s32 3, %v10406_v7  ;;  %v9398_v51 = vpack.c.bf16 %v270_v50, %v269_v49  ;;  %v9401_v54 = vpack.c.bf16 %v272_v53, %v271_v52  ;;  %v10441_v58 = vsub.s32 4, %v10406_v7  ;;  %v374_v20 = vld [vmem:[#allocation5 + $0x50] sm:$0xff]  ;;  %v375_v21 = vld [vmem:[#allocation5 + $0x58] sm:$0xff]  ;;  %v376_v23 = vld [vmem:[#allocation5 + $0x60] sm:$0xff]  ;;  %s9220_s24 = sshll.u32 %s10336_s23, 4  ;;  %s9221_s24 = int_to_ptr.vmem [resolvable:$true] %s9220_s24 }
  0x3d   :  { %v62_v10 = vrot.slane %v10411_v9, %v10409_v8  ;;  %9394 = vmatprep.subr.bf16.mxu1 %v10331_v0  ;;  %12127 = vst [vmem:[#allocation13_spill] sm:$0xff] %v10420_v29  ;;  %v155_v31 = vrot.slane %v10411_v9, %v10420_v29  ;;  %v160_v34 = vrot.slane %v10411_v9, %v10423_v30  ;;  %v10444_v59 = vsub.s32 5, %v10406_v7  ;;  %v377_v24 = vld [vmem:[#allocation5 + $0x68] sm:$0xff]  ;;  %v518_v52 = vld [vmem:[#allocation7 + $0x18] sm:$0xff]  ;;  %s10296_s25 = scalar_lea.vmem %s9221_s24, 1024  ;;  %p10301_p11 = scmp.lt.s32.totalorder %s9221_s24, %s9221_s24 }
  0x3e   :  { %9353 = vmatmul.mubr.msk.f32.vlgmr.msra.gmra.mrb[0].mxu0 %vm63_vm1, %v10399_v5  ;;  %12128 = vst [vmem:[#allocation14_spill] sm:$0xff] %v10433_v38  ;;  %v170_v39 = vrot.slane %v10411_v9, %v10433_v38  ;;  %12129 = vst [vmem:[#allocation15_spill] sm:$0xff] %v10441_v58  ;;  %v261_v60 = vrot.slane %v10411_v9, %v10441_v58  ;;  %v275_v6 = vsub.s32 6, %v10406_v7  ;;  %v516_v50 = vld [vmem:[#allocation7 + $0x8] sm:$0xff]  ;;  %p10297_p10 = scmp.ne.s32.totalorder %s9221_s24, %s10296_s25  ;;  %p10302_p12 = scmp.lt.s32.totalorder %s10296_s25, %s10296_s25 }
  0x3f   :  { %9374 = vmatprep.mubr.msk.f32.mxu0 %vm10332_vm0, %v12075_v1  ;;  %9399 = vmatpush3.bf16.msra.mxu0 %v9398_v51  ;;  %12130 = vst [vmem:[#allocation16_spill] sm:$0xff] %v10444_v59  ;;  %v266_v63 = vrot.slane %v10411_v9, %v10444_v59  ;;  %v9404_v22 = vpack.c.bf16 %v375_v21, %v374_v20  ;;  %v548_v51 = vld [vmem:[#allocation7 + $0x108] sm:$0xff]  ;;  %v522_v20 = vld [vmem:[#allocation7 + $0x38] sm:$0xff] }
  0x40   :  { %9396 = vmatpush3.bf16.msra.mxu1 %v9395_v25  ;;  %9400 = vmatprep.subr.bf16.mxu0 %v10331_v0  ;;  %v9407_v25 = vpack.c.bf16 %v377_v24, %v376_v23  ;;  %v9409_v53 = vpack.c.bf16 %v548_v51, %v516_v50  ;;  %v524_v50 = vld [vmem:[#allocation7 + $0x48] sm:$0xff]  ;;  %p10303_p13 = por %p10302_p12, %p10301_p11 }
  0x41   :  { %9403 = vmatprep.subr.bf16.mxu1 %v10331_v0  ;;  %v556_v51 = vld [vmem:[#allocation7 + $0x148] sm:$0xff] }
  0x42   :  { %v10781_v58 = vld [vmem:[#allocation7 + $0x1868] sm:$0xff]  ;;  %p10304_p0 = pnand %p10303_p13, %p10297_p10 }
  0x43   :  { %9402 = vmatpush3.bf16.msra.mxu0 %v9401_v54  ;;  %v550_v54 = vld [vmem:[#allocation7 + $0x118] sm:$0xff] }
  0x44   :  { %9410 = vmatprep.subr.bf16.mxu0 %v9409_v53  ;;  %v558_v53 = vld [vmem:[#allocation7 + $0x158] sm:$0xff] }
 0x111   :  { %v133_v11 = vpop.f32.mrb[0].mxu0 }
 0x112   :  { %v134_v12 = vadd.f32 %v133_v11, %v62_v10  ;;  %v9354_v13 = vpop.f32.mrb[1].mxu0  ;;  %v276_v10 = vrot.slane %v10411_v9, %v275_v6 }
 0x114   :  { %v138_v14 = vsel %vm137_vm2, %v134_v12, 0.0 }
 0x115   :  { %139 = vadd.xlane.f32.xlu0 %v138_v14 }
 0x1a2   :  { %v140_v15 = vpop.xlane.xlu0 %139 }
 0x1a3   :  { %v142_v16 = vmul.f32 0.03125, %v140_v15 }
 0x1a5   :  { %v143_v17 = vsub.f32 %v134_v12, %v142_v16 }
 0x1a7   :  { %v144_v18 = vmul.f32 %v143_v17, %v143_v17 }
 0x1a9   :  { %v145_v19 = vsel %vm137_vm2, %v144_v18, 0.0 }
 0x1aa   :  { %146 = vadd.xlane.f32.xlu0 %v145_v19 }
 0x237   :  { %v147_v26 = vpop.xlane.xlu0 %146 }
 0x238   :  { %v148_v27 = vmul.f32 0.03125, %v147_v26 }
 0x23a   :  { %v149_v28 = vadd.f32 1e-05, %v148_v27 }
 0x23c   :  { %10190 = vrsqrt.f32 %v149_v28 }
 0x246   :  { %v10191_v32 = vpop.eup %10190 }
 0x247   :  { %v151_v33 = vmul.f32 %v10191_v32, %v143_v17  ;;  %v10459_v32 = vld [vmem:[#allocation5 + $0x78] sm:$0xff] }
 0x249   :  { %v156_v35 = vmul.f32 %v155_v31, %v151_v33  ;;  %v365_v31 = vsub.s32 7, %v10406_v7  ;;  %v10777_v7 = vld [vmem:[#allocation7 + $0xc60] sm:$0xff] }
 0x24b   :  { %v161_v36 = vadd.f32 %v160_v34, %v156_v35  ;;  %v366_v33 = vrot.slane %v10411_v9, %v365_v31  ;;  %v480_v31 = vrot.slane %v10459_v32, %v10433_v38  ;;  %v6194_v38 = vld [vmem:[#allocation7 + $0xd60] sm:$0xff] }
 0x24d   :  { %v162_v37 = vmax.f32 %v161_v36, 0.0  ;;  %v371_v36 = vrot.slane %v10459_v32, %v10409_v8 }
 0x24f   :  { %9364 = vmatmul.mubr.msk.f32.vlgmr.msra.gmra.mrb[0].mxu1 %vm171_vm3, %v162_v37 }
 0x250   :  { %9385 = vmatprep.mubr.msk.f32.mxu1 %vm10332_vm0, %v12075_v1  ;;  %9405 = vmatpush3.bf16.msra.mxu1 %v9404_v22  ;;  %v554_v22 = vld [vmem:[#allocation7 + $0x138] sm:$0xff] }
 0x251   :  { %9406 = vmatprep.subr.bf16.mxu1 %v10331_v0  ;;  %v9433_v23 = vpack.c.bf16 %v554_v22, %v522_v20  ;;  %v530_v20 = vld [vmem:[#allocation7 + $0x78] sm:$0xff] }
 0x254   :  { %9408 = vmatpush3.bf16.msra.mxu1 %v9407_v25 }
 0x322   :  { %v241_v40 = vpop.f32.mrb[0].mxu1 }
 0x323   :  { %v242_v41 = vadd.f32 %v241_v40, %v170_v39  ;;  %v9365_v42 = vpop.f32.mrb[1].mxu1 }
 0x325   :  { %v245_v43 = vsel %vm137_vm2, %v242_v41, 0.0 }
 0x326   :  { %246 = vadd.xlane.f32.xlu1 %v245_v43 }
 0x3b3   :  { %v247_v44 = vpop.xlane.xlu1 %246 }
 0x3b4   :  { %v248_v45 = vmul.f32 0.03125, %v247_v44 }
 0x3b6   :  { %v249_v46 = vsub.f32 %v242_v41, %v248_v45 }
 0x3b8   :  { %v250_v47 = vmul.f32 %v249_v46, %v249_v46 }
 0x3ba   :  { %v251_v48 = vsel %vm137_vm2, %v250_v47, 0.0 }
 0x3bb   :  { %252 = vadd.xlane.f32.xlu1 %v251_v48 }
 0x448   :  { %v253_v55 = vpop.xlane.xlu1 %252 }
 0x449   :  { %v254_v56 = vmul.f32 0.03125, %v253_v55  ;;  %v515_v55 = vld [vmem:[#allocation7] sm:$0xff] }
 0x44b   :  { %v255_v57 = vadd.f32 1e-05, %v254_v56  ;;  %v547_v56 = vld [vmem:[#allocation7 + $0x100] sm:$0xff] }
 0x44d   :  { %10192 = vrsqrt.f32 %v255_v57  ;;  %v9417_v57 = vpack.c.bf16 %v550_v54, %v518_v52  ;;  %v526_v52 = vld [vmem:[#allocation7 + $0x58] sm:$0xff] }
 0x44f   :  { %9418 = vmatprep.subr.bf16.mxu1 %v9417_v57  ;;  %v555_v57 = vld [vmem:[#allocation7 + $0x140] sm:$0xff] }
 0x457   :  { %v10193_v61 = vpop.eup %10192 }
 0x458   :  { %v257_v62 = vmul.f32 %v10193_v61, %v249_v46  ;;  %v517_v61 = vld [vmem:[#allocation7 + $0x10] sm:$0xff] }
 0x45a   :  { %v262_v2 = vmul.f32 %v261_v60, %v257_v62  ;;  %v9411_v60 = vpack.c.bf16 %v547_v56, %v515_v55  ;;  %v549_v62 = vld [vmem:[#allocation7 + $0x110] sm:$0xff]  ;;  %v523_v56 = vld [vmem:[#allocation7 + $0x40] sm:$0xff] }
 0x45c   :  { %v267_v3 = vadd.f32 %v266_v63, %v262_v2  ;;  %v9419_v63 = vpack.c.bf16 %v549_v62, %v517_v61  ;;  %v580_v2 = vld [vmem:[#allocation7 + $0x208] sm:$0xff]  ;;  %v9449_v61 = vpack.c.bf16 %v558_v53, %v526_v52  ;;  %v525_v62 = vld [vmem:[#allocation7 + $0x50] sm:$0xff] }
 0x45d   :  { %v533_v53 = vld [vmem:[#allocation7 + $0x90] sm:$0xff] }
 0x45e   :  { %v268_v4 = vmax.f32 %v267_v3, 0.0  ;;  %v612_v3 = vld [vmem:[#allocation7 + $0x308] sm:$0xff] }
 0x45f   :  { %v9413_v6 = vpack.c.bf16 %v612_v3, %v580_v2  ;;  %v588_v2 = vld [vmem:[#allocation7 + $0x248] sm:$0xff] }
 0x460   :  { %9375 = vmatmul.mubr.msk.f32.vlgmr.msra.gmra.mrb[2].mxu0 %vm171_vm3, %v268_v4  ;;  %v582_v4 = vld [vmem:[#allocation7 + $0x218] sm:$0xff]  ;;  %v620_v3 = vld [vmem:[#allocation7 + $0x348] sm:$0xff] }
 0x461   :  { %838 = vmatprep.mubr.f32.mxu0 %v12075_v1  ;;  %9412 = vmatpush1.bf16.msra.mxu0 %v9411_v60  ;;  %v9441_v60 = vpack.c.bf16 %v556_v51, %v524_v50  ;;  %v563_v50 = vld [vmem:[#allocation7 + $0x180] sm:$0xff] }
 0x462   :  { %9414 = vmatprep.subr.bf16.mxu0 %v9413_v6  ;;  %v622_v6 = vld [vmem:[#allocation7 + $0x358] sm:$0xff] }
 0x533   :  { %v346_v11 = vpop.f32.mrb[2].mxu0 }
 0x534   :  { %v347_v12 = vadd.f32 %v346_v11, %v276_v10  ;;  %v9376_v13 = vpop.f32.mrb[3].mxu0  ;;  %v614_v10 = vld [vmem:[#allocation7 + $0x318] sm:$0xff]  ;;  %v579_v11 = vld [vmem:[#allocation7 + $0x200] sm:$0xff] }
 0x535   :  { %v9421_v13 = vpack.c.bf16 %v614_v10, %v582_v4  ;;  %v590_v4 = vld [vmem:[#allocation7 + $0x258] sm:$0xff]  ;;  %v9443_v10 = vpack.c.bf16 %v555_v57, %v523_v56  ;;  %v628_v56 = vld [vmem:[#allocation7 + $0x388] sm:$0xff] }
 0x536   :  { %v350_v14 = vsel %vm137_vm2, %v347_v12, 0.0  ;;  %v598_v57 = vld [vmem:[#allocation7 + $0x298] sm:$0xff] }
 0x537   :  { %351 = vadd.xlane.f32.xlu0 %v350_v14 }
 0x54d   :  { %455 = vrot.lane.b32.xlu0 %v10399_v5, %s10334_s2  ;;  %v381_v5 = vrot.slane %v10459_v32, %v10420_v29 }
 0x5c4   :  { %v352_v15 = vpop.xlane.xlu0 %351 }
 0x5c5   :  { %v353_v16 = vmul.f32 0.03125, %v352_v15  ;;  %v581_v15 = vld [vmem:[#allocation7 + $0x210] sm:$0xff] }
 0x5c7   :  { %v354_v17 = vsub.f32 %v347_v12, %v353_v16  ;;  %v611_v12 = vld [vmem:[#allocation7 + $0x300] sm:$0xff]  ;;  %v613_v16 = vld [vmem:[#allocation7 + $0x310] sm:$0xff] }
 0x5c8   :  { %v456_v41 = vpop.permute.xlu0 %455  ;;  %v9415_v14 = vpack.c.bf16 %v611_v12, %v579_v11  ;;  %v587_v12 = vld [vmem:[#allocation7 + $0x240] sm:$0xff] }
 0x5c9   :  { %v355_v18 = vmul.f32 %v354_v17, %v354_v17 }
 0x5ca   :  { %9416 = vmatpush1.bf16.msra.mxu0 %v9415_v14  ;;  %v9445_v14 = vpack.c.bf16 %v620_v3, %v588_v2  ;;  %v627_v2 = vld [vmem:[#allocation7 + $0x380] sm:$0xff] }
 0x5cb   :  { %v356_v19 = vsel %vm137_vm2, %v355_v18, 0.0  ;;  %v520_v18 = vld [vmem:[#allocation7 + $0x28] sm:$0xff] }
 0x5cc   :  { %357 = vadd.xlane.f32.xlu1 %v356_v19  ;;  %v552_v19 = vld [vmem:[#allocation7 + $0x128] sm:$0xff] }
 0x5cd   :  { %v9425_v21 = vpack.c.bf16 %v552_v19, %v520_v18  ;;  %v528_v18 = vld [vmem:[#allocation7 + $0x68] sm:$0xff] }
 0x5ce   :  { %v560_v19 = vld [vmem:[#allocation7 + $0x168] sm:$0xff] }
 0x5cf   :  { %9426 = vmatprep.subr.bf16.mxu0 %v9425_v21  ;;  %v562_v21 = vld [vmem:[#allocation7 + $0x178] sm:$0xff] }
 0x659   :  { %v358_v26 = vpop.xlane.xlu1 %357 }
 0x65a   :  { %v359_v27 = vmul.f32 0.03125, %v358_v26 }
 0x65c   :  { %v360_v28 = vadd.f32 1e-05, %v359_v27  ;;  %v475_v27 = vrot.slane %v10459_v32, %v10423_v30  ;;  %v585_v32 = vld [vmem:[#allocation7 + $0x230] sm:$0xff] }
 0x65e   :  { %10194 = vrsqrt.f32 %v360_v28 }
 0x668   :  { %v10195_v34 = vpop.eup %10194 }
 0x669   :  { %v362_v35 = vmul.f32 %v10195_v34, %v354_v17  ;;  %v9423_v17 = vpack.c.bf16 %v613_v16, %v581_v15  ;;  %v519_v34 = vld [vmem:[#allocation7 + $0x20] sm:$0xff]  ;;  %v9453_v15 = vpack.c.bf16 %v622_v6, %v590_v4  ;;  %v589_v16 = vld [vmem:[#allocation7 + $0x250] sm:$0xff] }
 0x66a   :  { %v597_v6 = vld [vmem:[#allocation7 + $0x290] sm:$0xff] }
 0x66b   :  { %v367_v0 = vmul.f32 %v366_v33, %v362_v35  ;;  %v551_v35 = vld [vmem:[#allocation7 + $0x120] sm:$0xff] }
 0x66d   :  { %v372_v37 = vadd.f32 %v371_v36, %v367_v0  ;;  %v521_v0 = vld [vmem:[#allocation7 + $0x30] sm:$0xff] }
 0x66f   :  { %v373_v39 = vmax.f32 %v372_v37, 0.0  ;;  %v553_v37 = vld [vmem:[#allocation7 + $0x130] sm:$0xff] }
 0x671   :  { %9386 = vmatmul.mubr.msk.f32.vlgmr.msra.gmra.mrb[2].mxu1 %vm171_vm3, %v373_v39  ;;  %v584_v39 = vld [vmem:[#allocation7 + $0x228] sm:$0xff] }
 0x672   :  { %909 = vmatprep.mubr.f32.mxu1 %v12075_v1  ;;  %9420 = vmatpush1.bf16.msra.mxu1 %v9419_v63  ;;  %v557_v63 = vld [vmem:[#allocation7 + $0x150] sm:$0xff] }
 0x673   :  { %9422 = vmatprep.subr.bf16.mxu1 %v9421_v13  ;;  %v9451_v11 = vpack.c.bf16 %v557_v63, %v525_v62  ;;  %v619_v13 = vld [vmem:[#allocation7 + $0x340] sm:$0xff] }
 0x674   :  { %v9447_v22 = vpack.c.bf16 %v619_v13, %v587_v12  ;;  %v595_v63 = vld [vmem:[#allocation7 + $0x280] sm:$0xff]  ;;  %v568_v12 = vld [vmem:[#allocation7 + $0x1a8] sm:$0xff]  ;;  %v538_v13 = vld [vmem:[#allocation7 + $0xb8] sm:$0xff] }
 0x676   :  { %9424 = vmatpush1.bf16.msra.mxu1 %v9423_v17  ;;  %v621_v17 = vld [vmem:[#allocation7 + $0x350] sm:$0xff] }
 0x677   :  { %9434 = vmatprep.subr.bf16.mxu1 %v9433_v23  ;;  %v9455_v23 = vpack.c.bf16 %v621_v17, %v589_v16  ;;  %v535_v17 = vld [vmem:[#allocation7 + $0xa0] sm:$0xff] }
 0x744   :  { %v451_v40 = vpop.f32.mrb[2].mxu1 }
 0x745   :  { %v452_v42 = vadd.f32 %v451_v40, %v381_v5  ;;  %v9387_v43 = vpop.f32.mrb[3].mxu1  ;;  %v616_v5 = vld [vmem:[#allocation7 + $0x328] sm:$0xff]  ;;  %v586_v40 = vld [vmem:[#allocation7 + $0x238] sm:$0xff] }
 0x746   :  { %v9427_v43 = vpack.c.bf16 %v551_v35, %v519_v34  ;;  %v624_v34 = vld [vmem:[#allocation7 + $0x368] sm:$0xff]  ;;  %v594_v35 = vld [vmem:[#allocation7 + $0x278] sm:$0xff] }
 0x747   :  { %v458_v9 = vsel %vm63_vm1, %v452_v42, %v456_v41  ;;  %v618_v41 = vld [vmem:[#allocation7 + $0x338] sm:$0xff] }
 0x748   :  { %v459_v44 = vsel %vm137_vm2, %v458_v9, 0.0 }
 0x749   :  { %460 = vadd.xlane.f32.xlu1 %v459_v44  ;;  %v583_v44 = vld [vmem:[#allocation7 + $0x220] sm:$0xff] }
 0x7d6   :  { %v461_v45 = vpop.xlane.xlu1 %460 }
 0x7d7   :  { %v462_v46 = vmul.f32 0.03125, %v461_v45  ;;  %v615_v45 = vld [vmem:[#allocation7 + $0x320] sm:$0xff] }
 0x7d8   :  { %v9431_v54 = vpack.c.bf16 %v615_v45, %v583_v44  ;;  %v564_v44 = vld [vmem:[#allocation7 + $0x188] sm:$0xff]  ;;  %v534_v45 = vld [vmem:[#allocation7 + $0x98] sm:$0xff] }
 0x7d9   :  { %v463_v47 = vsub.f32 %v458_v9, %v462_v46  ;;  %v9435_v9 = vpack.c.bf16 %v553_v37, %v521_v0 }
 0x7db   :  { %v464_v48 = vmul.f32 %v463_v47, %v463_v47 }
 0x7dd   :  { %v465_v49 = vsel %vm137_vm2, %v464_v48, 0.0  ;;  %v9429_v48 = vpack.c.bf16 %v616_v5, %v584_v39  ;;  %v591_v39 = vld [vmem:[#allocation7 + $0x260] sm:$0xff] }
 0x7de   :  { %466 = vadd.xlane.f32.xlu1 %v465_v49  ;;  %v9437_v49 = vpack.c.bf16 %v618_v41, %v586_v40  ;;  %v623_v5 = vld [vmem:[#allocation7 + $0x360] sm:$0xff] }
 0x86b   :  { %v467_v24 = vpop.xlane.xlu1 %466 }
 0x86c   :  { %v468_v25 = vmul.f32 0.03125, %v467_v24  ;;  %v527_v24 = vld [vmem:[#allocation7 + $0x60] sm:$0xff] }
 0x86e   :  { %v469_v26 = vadd.f32 1e-05, %v468_v25  ;;  %v559_v25 = vld [vmem:[#allocation7 + $0x160] sm:$0xff] }
 0x86f   :  { %v9459_v0 = vpack.c.bf16 %v559_v25, %v527_v24  ;;  %v632_v24 = vld [vmem:[#allocation7 + $0x3a8] sm:$0xff]  ;;  %v602_v25 = vld [vmem:[#allocation7 + $0x2b8] sm:$0xff] }
 0x870   :  { %10196 = vrsqrt.f32 %v469_v26  ;;  %v9457_v26 = vpack.c.bf16 %v560_v19, %v528_v18  ;;  %v567_v18 = vld [vmem:[#allocation7 + $0x1a0] sm:$0xff] }
 0x87a   :  { %v10197_v28 = vpop.eup %10196 }
 0x87b   :  { %v471_v33 = vmul.f32 %v10197_v28, %v463_v47  ;;  %v617_v47 = vld [vmem:[#allocation7 + $0x330] sm:$0xff] }
 0x87c   :  { %v9439_v55 = vpack.c.bf16 %v617_v47, %v585_v32  ;;  %v529_v28 = vld [vmem:[#allocation7 + $0x70] sm:$0xff]  ;;  %v531_v47 = vld [vmem:[#allocation7 + $0x80] sm:$0xff] }
 0x87d   :  { %v476_v36 = vmul.f32 %v475_v27, %v471_v33  ;;  %v9465_v27 = vpack.c.bf16 %v562_v21, %v530_v20  ;;  %v592_v33 = vld [vmem:[#allocation7 + $0x268] sm:$0xff]  ;;  %v537_v21 = vld [vmem:[#allocation7 + $0xb0] sm:$0xff] }
 0x87e   :  { %v9461_v40 = vpack.c.bf16 %v624_v34, %v592_v33  ;;  %v631_v33 = vld [vmem:[#allocation7 + $0x3a0] sm:$0xff] }
 0x87f   :  { %v481_v42 = vadd.f32 %v480_v31, %v476_v36  ;;  %v561_v31 = vld [vmem:[#allocation7 + $0x170] sm:$0xff]  ;;  %v626_v36 = vld [vmem:[#allocation7 + $0x378] sm:$0xff] }
 0x880   :  { %v9467_v37 = vpack.c.bf16 %v561_v31, %v529_v28  ;;  %v9469_v41 = vpack.c.bf16 %v626_v36, %v594_v35  ;;  %v599_v31 = vld [vmem:[#allocation7 + $0x2a0] sm:$0xff]  ;;  %v601_v36 = vld [vmem:[#allocation7 + $0x2b0] sm:$0xff] }
 0x881   :  { %v10475_v46 = vmax.f32 %v481_v42, 0.0  ;;  %v593_v42 = vld [vmem:[#allocation7 + $0x270] sm:$0xff] }
 0x883   :  { %9234 = vmatmul.mubr.msk.f32.vlgmr.msra.gmra.mrb[4].mxu0 %vm171_vm3, %v10475_v46  ;;  %9235 = vmatmul.mubr.msk.f32.vlgmr.msra.gmra.mrb[4].mxu1 %vm171_vm3, %v10475_v46 }
 0x884   :  { %9428 = vmatpush1.bf16.msra.mxu0 %v9427_v43  ;;  %9436 = vmatpush1.bf16.msra.mxu1 %v9435_v9  ;;  %v625_v43 = vld [vmem:[#allocation7 + $0x370] sm:$0xff]  ;;  %v532_v9 = vld [vmem:[#allocation7 + $0x88] sm:$0xff] }
 0x885   :  { %9430 = vmatprep.subr.bf16.mxu0 %v9429_v48  ;;  %9438 = vmatprep.subr.bf16.mxu1 %v9437_v49  ;;  %v566_v48 = vld [vmem:[#allocation7 + $0x198] sm:$0xff]  ;;  %v9463_v49 = vpack.c.bf16 %v623_v5, %v591_v39  ;;  %v9471_v32 = vpack.c.bf16 %v625_v43, %v593_v42  ;;  %v9473_v51 = vpack.c.bf16 %v564_v44, %v532_v9  ;;  %v572_v39 = vld [vmem:[#allocation7 + $0x1c8] sm:$0xff]  ;;  %v539_v43 = vld [vmem:[#allocation7 + $0xc0] sm:$0xff] }
 0x886   :  { %980 = vmatprep.mubr.f32.mxu0 %v12075_v1  ;;  %1051 = vmatprep.mubr.f32.mxu1 %v12075_v1  ;;  %v9481_v52 = vpack.c.bf16 %v566_v48, %v534_v45  ;;  %v542_v5 = vld [vmem:[#allocation7 + $0xd8] sm:$0xff]  ;;  %v571_v9 = vld [vmem:[#allocation7 + $0x1c0] sm:$0xff]  ;;  %v541_v48 = vld [vmem:[#allocation7 + $0xd0] sm:$0xff] }
 0x888   :  { %9432 = vmatpush1.bf16.msra.mxu0 %v9431_v54  ;;  %9440 = vmatpush1.bf16.msra.mxu1 %v9439_v55  ;;  %v565_v54 = vld [vmem:[#allocation7 + $0x190] sm:$0xff]  ;;  %v596_v55 = vld [vmem:[#allocation7 + $0x288] sm:$0xff] }
 0x889   :  { %9442 = vmatprep.subr.bf16.mxu0 %v9441_v60  ;;  %9450 = vmatprep.subr.bf16.mxu1 %v9449_v61  ;;  %v630_v60 = vld [vmem:[#allocation7 + $0x398] sm:$0xff]  ;;  %v9475_v61 = vpack.c.bf16 %v563_v50, %v531_v47  ;;  %v9483_v62 = vpack.c.bf16 %v565_v54, %v533_v53  ;;  %v9477_v3 = vpack.c.bf16 %v628_v56, %v596_v55  ;;  %v636_v47 = vld [vmem:[#allocation7 + $0x3c8] sm:$0xff]  ;;  %v603_v54 = vld [vmem:[#allocation7 + $0x2c0] sm:$0xff] }
 0x88a   :  { %v9485_v4 = vpack.c.bf16 %v630_v60, %v598_v57  ;;  %v606_v50 = vld [vmem:[#allocation7 + $0x2d8] sm:$0xff]  ;;  %v635_v55 = vld [vmem:[#allocation7 + $0x3c0] sm:$0xff]  ;;  %v605_v60 = vld [vmem:[#allocation7 + $0x2d0] sm:$0xff] }
 0x88b   :  { %9236 = vmatmul.mubr.msk.f32.vlgmr.msra.gmra.mrb[6].mxu0 %vm171_vm3, %v10475_v46  ;;  %9237 = vmatmul.mubr.msk.f32.vlgmr.msra.gmra.mrb[6].mxu1 %vm171_vm3, %v10475_v46 }
 0x88c   :  { %9444 = vmatpush1.bf16.msra.mxu0 %v9443_v10  ;;  %9452 = vmatpush1.bf16.msra.mxu1 %v9451_v11  ;;  %v629_v10 = vld [vmem:[#allocation7 + $0x390] sm:$0xff]  ;;  %v536_v11 = vld [vmem:[#allocation7 + $0xa8] sm:$0xff] }
 0x88d   :  { %9446 = vmatprep.subr.bf16.mxu0 %v9445_v14  ;;  %9454 = vmatprep.subr.bf16.mxu1 %v9453_v15  ;;  %v570_v14 = vld [vmem:[#allocation7 + $0x1b8] sm:$0xff]  ;;  %v9479_v15 = vpack.c.bf16 %v627_v2, %v595_v63  ;;  %v9487_v16 = vpack.c.bf16 %v629_v10, %v597_v6  ;;  %v9489_v19 = vpack.c.bf16 %v568_v12, %v536_v11  ;;  %v576_v63 = vld [vmem:[#allocation7 + $0x1e8] sm:$0xff]  ;;  %v543_v10 = vld [vmem:[#allocation7 + $0xe0] sm:$0xff] }
 0x88e   :  { %1122 = vmatprep.mubr.f32.mxu0 %v12075_v1  ;;  %1193 = vmatprep.mubr.f32.mxu1 %v12075_v1  ;;  %v9497_v20 = vpack.c.bf16 %v570_v14, %v538_v13  ;;  %v546_v2 = vld [vmem:[#allocation7 + $0xf8] sm:$0xff]  ;;  %v575_v11 = vld [vmem:[#allocation7 + $0x1e0] sm:$0xff]  ;;  %v545_v14 = vld [vmem:[#allocation7 + $0xf0] sm:$0xff] }
 0x890   :  { %9448 = vmatpush1.bf16.msra.mxu0 %v9447_v22  ;;  %9456 = vmatpush1.bf16.msra.mxu1 %v9455_v23  ;;  %v569_v22 = vld [vmem:[#allocation7 + $0x1b0] sm:$0xff]  ;;  %v600_v23 = vld [vmem:[#allocation7 + $0x2a8] sm:$0xff] }
 0x891   :  { %9458 = vmatprep.subr.bf16.mxu0 %v9457_v26  ;;  %9466 = vmatprep.subr.bf16.mxu1 %v9465_v27  ;;  %v634_v26 = vld [vmem:[#allocation7 + $0x3b8] sm:$0xff]  ;;  %v9491_v27 = vpack.c.bf16 %v567_v18, %v535_v17  ;;  %v9499_v28 = vpack.c.bf16 %v569_v22, %v537_v21  ;;  %v9493_v34 = vpack.c.bf16 %v632_v24, %v600_v23  ;;  %v640_v17 = vld [vmem:[#allocation7 + $0x3e8] sm:$0xff]  ;;  %v607_v22 = vld [vmem:[#allocation7 + $0x2e0] sm:$0xff] }
 0x892   :  { %v9501_v35 = vpack.c.bf16 %v634_v26, %v602_v25  ;;  %v610_v18 = vld [vmem:[#allocation7 + $0x2f8] sm:$0xff]  ;;  %v639_v23 = vld [vmem:[#allocation7 + $0x3e0] sm:$0xff]  ;;  %v609_v26 = vld [vmem:[#allocation7 + $0x2f0] sm:$0xff] }
 0x893   :  { %9238 = vmatmul.mubr.msk.f32.vlgmr.msra.gmra.mrb[8].mxu0 %vm171_vm3, %v10475_v46  ;;  %9239 = vmatmul.mubr.msk.f32.vlgmr.msra.gmra.mrb[8].mxu1 %vm171_vm3, %v10475_v46 }
 0x894   :  { %9460 = vmatpush1.bf16.msra.mxu0 %v9459_v0  ;;  %9468 = vmatpush1.bf16.msra.mxu1 %v9467_v37  ;;  %v633_v0 = vld [vmem:[#allocation7 + $0x3b0] sm:$0xff]  ;;  %v540_v37 = vld [vmem:[#allocation7 + $0xc8] sm:$0xff] }
 0x895   :  { %9462 = vmatprep.subr.bf16.mxu0 %v9461_v40  ;;  %9470 = vmatprep.subr.bf16.mxu1 %v9469_v41  ;;  %v574_v40 = vld [vmem:[#allocation7 + $0x1d8] sm:$0xff]  ;;  %v9495_v41 = vpack.c.bf16 %v631_v33, %v599_v31  ;;  %v9503_v42 = vpack.c.bf16 %v633_v0, %v601_v36  ;;  %v9505_v44 = vpack.c.bf16 %v572_v39, %v540_v37  ;;  %v1943_v31 = vld [vmem:[#allocation7 + $0x908] sm:$0xff]  ;;  %v1910_v0 = vld [vmem:[#allocation7 + $0x800] sm:$0xff] }
 0x896   :  { %1264 = vmatprep.mubr.f32.mxu0 %v12075_v1  ;;  %1335 = vmatprep.mubr.f32.mxu1 %v12075_v1  ;;  %v9513_v45 = vpack.c.bf16 %v574_v40, %v542_v5  ;;  %v1913_v33 = vld [vmem:[#allocation7 + $0x818] sm:$0xff]  ;;  %v1942_v37 = vld [vmem:[#allocation7 + $0x900] sm:$0xff]  ;;  %v1912_v40 = vld [vmem:[#allocation7 + $0x810] sm:$0xff] }
 0x898   :  { %9464 = vmatpush1.bf16.msra.mxu0 %v9463_v49  ;;  %9472 = vmatpush1.bf16.msra.mxu1 %v9471_v32  ;;  %v573_v49 = vld [vmem:[#allocation7 + $0x1d0] sm:$0xff]  ;;  %v604_v32 = vld [vmem:[#allocation7 + $0x2c8] sm:$0xff] }
 0x899   :  { %9474 = vmatprep.subr.bf16.mxu0 %v9473_v51  ;;  %9482 = vmatprep.subr.bf16.mxu1 %v9481_v52  ;;  %v638_v51 = vld [vmem:[#allocation7 + $0x3d8] sm:$0xff]  ;;  %v9507_v52 = vpack.c.bf16 %v571_v9, %v539_v43  ;;  %v9515_v53 = vpack.c.bf16 %v573_v49, %v541_v48  ;;  %v9509_v56 = vpack.c.bf16 %v636_v47, %v604_v32  ;;  %v2007_v43 = vld [vmem:[#allocation7 + $0xb08] sm:$0xff]  ;;  %v1974_v49 = vld [vmem:[#allocation7 + $0xa00] sm:$0xff] }
 0x89a   :  { %v9517_v57 = vpack.c.bf16 %v638_v51, %v606_v50  ;;  %v1977_v9 = vld [vmem:[#allocation7 + $0xa18] sm:$0xff]  ;;  %v2006_v32 = vld [vmem:[#allocation7 + $0xb00] sm:$0xff]  ;;  %v1976_v51 = vld [vmem:[#allocation7 + $0xa10] sm:$0xff] }
 0x89b   :  { %9240 = vmatmul.mubr.msk.f32.vlgmr.msra.gmra.mrb[10].mxu0 %vm171_vm3, %v10475_v46  ;;  %9241 = vmatmul.mubr.msk.f32.vlgmr.msra.gmra.mrb[10].mxu1 %vm171_vm3, %v10475_v46 }
 0x89c   :  { %9476 = vmatpush1.bf16.msra.mxu0 %v9475_v61  ;;  %9484 = vmatpush1.bf16.msra.mxu1 %v9483_v62  ;;  %v637_v61 = vld [vmem:[#allocation7 + $0x3d0] sm:$0xff]  ;;  %v544_v62 = vld [vmem:[#allocation7 + $0xe8] sm:$0xff] }
 0x89d   :  { %9478 = vmatprep.subr.bf16.mxu0 %v9477_v3  ;;  %9486 = vmatprep.subr.bf16.mxu1 %v9485_v4  ;;  %v578_v3 = vld [vmem:[#allocation7 + $0x1f8] sm:$0xff]  ;;  %v9511_v4 = vpack.c.bf16 %v635_v55, %v603_v54  ;;  %v9519_v6 = vpack.c.bf16 %v637_v61, %v605_v60  ;;  %v9521_v12 = vpack.c.bf16 %v576_v63, %v544_v62  ;;  %v1947_v54 = vld [vmem:[#allocation7 + $0x928] sm:$0xff]  ;;  %v1914_v61 = vld [vmem:[#allocation7 + $0x820] sm:$0xff] }
 0x89e   :  { %1406 = vmatprep.mubr.f32.mxu0 %v12075_v1  ;;  %1477 = vmatprep.mubr.f32.mxu1 %v12075_v1  ;;  %v9529_v13 = vpack.c.bf16 %v578_v3, %v546_v2  ;;  %v1917_v55 = vld [vmem:[#allocation7 + $0x838] sm:$0xff]  ;;  %v1946_v62 = vld [vmem:[#allocation7 + $0x920] sm:$0xff]  ;;  %v1916_v3 = vld [vmem:[#allocation7 + $0x830] sm:$0xff] }
 0x8a0   :  { %9480 = vmatpush1.bf16.msra.mxu0 %v9479_v15  ;;  %9488 = vmatpush1.bf16.msra.mxu1 %v9487_v16  ;;  %v577_v15 = vld [vmem:[#allocation7 + $0x1f0] sm:$0xff]  ;;  %v608_v16 = vld [vmem:[#allocation7 + $0x2e8] sm:$0xff] }
 0x8a1   :  { %9490 = vmatprep.subr.bf16.mxu0 %v9489_v19  ;;  %9498 = vmatprep.subr.bf16.mxu1 %v9497_v20  ;;  %v642_v19 = vld [vmem:[#allocation7 + $0x3f8] sm:$0xff]  ;;  %v9523_v20 = vpack.c.bf16 %v575_v11, %v543_v10  ;;  %v9531_v21 = vpack.c.bf16 %v577_v15, %v545_v14  ;;  %v9525_v24 = vpack.c.bf16 %v640_v17, %v608_v16  ;;  %v2011_v10 = vld [vmem:[#allocation7 + $0xb28] sm:$0xff]  ;;  %v1978_v15 = vld [vmem:[#allocation7 + $0xa20] sm:$0xff] }
 0x8a2   :  { %v9533_v25 = vpack.c.bf16 %v642_v19, %v610_v18  ;;  %v1981_v11 = vld [vmem:[#allocation7 + $0xa38] sm:$0xff]  ;;  %v2010_v16 = vld [vmem:[#allocation7 + $0xb20] sm:$0xff]  ;;  %v1980_v19 = vld [vmem:[#allocation7 + $0xa30] sm:$0xff] }
 0x8a3   :  { %9242 = vmatmul.mubr.msk.f32.vlgmr.msra.gmra.mrb[12].mxu0 %vm171_vm3, %v10475_v46  ;;  %9243 = vmatmul.mubr.msk.f32.vlgmr.msra.gmra.mrb[12].mxu1 %vm171_vm3, %v10475_v46 }
 0x8a4   :  { %9492 = vmatpush1.bf16.msra.mxu0 %v9491_v27  ;;  %9500 = vmatpush1.bf16.msra.mxu1 %v9499_v28  ;;  %v641_v27 = vld [vmem:[#allocation7 + $0x3f0] sm:$0xff]  ;;  %v1911_v28 = vld [vmem:[#allocation7 + $0x808] sm:$0xff] }
 0x8a5   :  { %9494 = vmatprep.subr.bf16.mxu0 %v9493_v34  ;;  %9502 = vmatprep.subr.bf16.mxu1 %v9501_v35  ;;  %v1945_v34 = vld [vmem:[#allocation7 + $0x918] sm:$0xff]  ;;  %v9527_v35 = vpack.c.bf16 %v639_v23, %v607_v22  ;;  %v9535_v36 = vpack.c.bf16 %v641_v27, %v609_v26  ;;  %v9537_v39 = vpack.c.bf16 %v1943_v31, %v1911_v28  ;;  %v1951_v22 = vld [vmem:[#allocation7 + $0x948] sm:$0xff]  ;;  %v1918_v27 = vld [vmem:[#allocation7 + $0x840] sm:$0xff] }
 0x8a6   :  { %1548 = vmatprep.mubr.f32.mxu0 %v12075_v1  ;;  %1619 = vmatprep.mubr.f32.mxu1 %v12075_v1  ;;  %v9545_v5 = vpack.c.bf16 %v1945_v34, %v1913_v33  ;;  %v1921_v23 = vld [vmem:[#allocation7 + $0x858] sm:$0xff]  ;;  %v1950_v28 = vld [vmem:[#allocation7 + $0x940] sm:$0xff]  ;;  %v1920_v34 = vld [vmem:[#allocation7 + $0x850] sm:$0xff] }
 0x8a8   :  { %9496 = vmatpush1.bf16.msra.mxu0 %v9495_v41  ;;  %9504 = vmatpush1.bf16.msra.mxu1 %v9503_v42  ;;  %v1944_v41 = vld [vmem:[#allocation7 + $0x910] sm:$0xff]  ;;  %v1975_v42 = vld [vmem:[#allocation7 + $0xa08] sm:$0xff] }
 0x8a9   :  { %9506 = vmatprep.subr.bf16.mxu0 %v9505_v44  ;;  %9514 = vmatprep.subr.bf16.mxu1 %v9513_v45  ;;  %v2009_v44 = vld [vmem:[#allocation7 + $0xb18] sm:$0xff]  ;;  %v9539_v45 = vpack.c.bf16 %v1942_v37, %v1910_v0  ;;  %v9547_v48 = vpack.c.bf16 %v1944_v41, %v1912_v40  ;;  %v9541_v47 = vpack.c.bf16 %v2007_v43, %v1975_v42  ;;  %v2015_v0 = vld [vmem:[#allocation7 + $0xb48] sm:$0xff]  ;;  %v1982_v41 = vld [vmem:[#allocation7 + $0xa40] sm:$0xff] }
 0x8aa   :  { %v9549_v50 = vpack.c.bf16 %v2009_v44, %v1977_v9  ;;  %v1985_v37 = vld [vmem:[#allocation7 + $0xa58] sm:$0xff]  ;;  %v2014_v42 = vld [vmem:[#allocation7 + $0xb40] sm:$0xff]  ;;  %v1984_v44 = vld [vmem:[#allocation7 + $0xa50] sm:$0xff] }
 0x8ab   :  { %9244 = vmatmul.mubr.msk.f32.vlgmr.msra.gmra.mrb[14].mxu0 %vm171_vm3, %v10475_v46  ;;  %9245 = vmatmul.mubr.msk.f32.vlgmr.msra.gmra.mrb[14].mxu1 %vm171_vm3, %v10475_v46 }
 0x8ac   :  { %9508 = vmatpush1.bf16.msra.mxu0 %v9507_v52  ;;  %9516 = vmatpush1.bf16.msra.mxu1 %v9515_v53  ;;  %v2008_v52 = vld [vmem:[#allocation7 + $0xb10] sm:$0xff]  ;;  %v1915_v53 = vld [vmem:[#allocation7 + $0x828] sm:$0xff] }
 0x8ad   :  { %9510 = vmatprep.subr.bf16.mxu0 %v9509_v56  ;;  %9518 = vmatprep.subr.bf16.mxu1 %v9517_v57  ;;  %v1949_v56 = vld [vmem:[#allocation7 + $0x938] sm:$0xff]  ;;  %v9543_v57 = vpack.c.bf16 %v2006_v32, %v1974_v49  ;;  %v9551_v60 = vpack.c.bf16 %v2008_v52, %v1976_v51  ;;  %v9553_v63 = vpack.c.bf16 %v1947_v54, %v1915_v53  ;;  %v1955_v49 = vld [vmem:[#allocation7 + $0x968] sm:$0xff]  ;;  %v1922_v52 = vld [vmem:[#allocation7 + $0x860] sm:$0xff] }
 0x8ae   :  { %1690 = vmatprep.mubr.f32.mxu0 %v12075_v1  ;;  %1761 = vmatprep.mubr.f32.mxu1 %v12075_v1  ;;  %v9561_v2 = vpack.c.bf16 %v1949_v56, %v1917_v55  ;;  %v1925_v32 = vld [vmem:[#allocation7 + $0x878] sm:$0xff]  ;;  %v1954_v53 = vld [vmem:[#allocation7 + $0x960] sm:$0xff]  ;;  %v1924_v56 = vld [vmem:[#allocation7 + $0x870] sm:$0xff] }
 0x8b0   :  { %9512 = vmatpush1.bf16.msra.mxu0 %v9511_v4  ;;  %9520 = vmatpush1.bf16.msra.mxu1 %v9519_v6  ;;  %v1948_v4 = vld [vmem:[#allocation7 + $0x930] sm:$0xff]  ;;  %v1979_v6 = vld [vmem:[#allocation7 + $0xa28] sm:$0xff] }
 0x8b1   :  { %9522 = vmatprep.subr.bf16.mxu0 %v9521_v12  ;;  %9530 = vmatprep.subr.bf16.mxu1 %v9529_v13  ;;  %v2013_v12 = vld [vmem:[#allocation7 + $0xb38] sm:$0xff]  ;;  %v9555_v13 = vpack.c.bf16 %v1946_v62, %v1914_v61  ;;  %v9563_v14 = vpack.c.bf16 %v1948_v4, %v1916_v3  ;;  %v9557_v17 = vpack.c.bf16 %v2011_v10, %v1979_v6  ;;  %v2019_v61 = vld [vmem:[#allocation7 + $0xb68] sm:$0xff]  ;;  %v1986_v4 = vld [vmem:[#allocation7 + $0xa60] sm:$0xff] }
 0x8b2   :  { %v9565_v18 = vpack.c.bf16 %v2013_v12, %v1981_v11  ;;  %v1989_v62 = vld [vmem:[#allocation7 + $0xa78] sm:$0xff]  ;;  %v2018_v6 = vld [vmem:[#allocation7 + $0xb60] sm:$0xff]  ;;  %v1988_v12 = vld [vmem:[#allocation7 + $0xa70] sm:$0xff] }
 0x8b3   :  { %9246 = vmatmul.mubr.msk.f32.vlgmr.msra.gmra.mrb[16].mxu0 %vm171_vm3, %v10475_v46  ;;  %9247 = vmatmul.mubr.msk.f32.vlgmr.msra.gmra.mrb[16].mxu1 %vm171_vm3, %v10475_v46 }
 0x8b4   :  { %9524 = vmatpush1.bf16.msra.mxu0 %v9523_v20  ;;  %9532 = vmatpush1.bf16.msra.mxu1 %v9531_v21  ;;  %v2012_v20 = vld [vmem:[#allocation7 + $0xb30] sm:$0xff]  ;;  %v1919_v21 = vld [vmem:[#allocation7 + $0x848] sm:$0xff] }
 0x8b5   :  { %9526 = vmatprep.subr.bf16.mxu0 %v9525_v24  ;;  %9534 = vmatprep.subr.bf16.mxu1 %v9533_v25  ;;  %v1953_v24 = vld [vmem:[#allocation7 + $0x958] sm:$0xff]  ;;  %v9559_v25 = vpack.c.bf16 %v2010_v16, %v1978_v15  ;;  %v9567_v26 = vpack.c.bf16 %v2012_v20, %v1980_v19  ;;  %v9569_v31 = vpack.c.bf16 %v1951_v22, %v1919_v21  ;;  %v1959_v15 = vld [vmem:[#allocation7 + $0x988] sm:$0xff]  ;;  %v1926_v20 = vld [vmem:[#allocation7 + $0x880] sm:$0xff] }
 0x8b6   :  { %1832 = vmatprep.mubr.f32.mxu0 %v12075_v1  ;;  %1903 = vmatprep.mubr.f32.mxu1 %v12075_v1  ;;  %v9577_v33 = vpack.c.bf16 %v1953_v24, %v1921_v23  ;;  %v1929_v16 = vld [vmem:[#allocation7 + $0x898] sm:$0xff]  ;;  %v1958_v21 = vld [vmem:[#allocation7 + $0x980] sm:$0xff]  ;;  %v1928_v24 = vld [vmem:[#allocation7 + $0x890] sm:$0xff] }
 0x8b8   :  { %9528 = vmatpush1.bf16.msra.mxu0 %v9527_v35  ;;  %9536 = vmatpush1.bf16.msra.mxu1 %v9535_v36  ;;  %v1952_v35 = vld [vmem:[#allocation7 + $0x950] sm:$0xff]  ;;  %v1983_v36 = vld [vmem:[#allocation7 + $0xa48] sm:$0xff] }
 0x8b9   :  { %9538 = vmatprep.subr.bf16.mxu0 %v9537_v39  ;;  %9546 = vmatprep.subr.bf16.mxu1 %v9545_v5  ;;  %v2017_v39 = vld [vmem:[#allocation7 + $0xb58] sm:$0xff]  ;;  %v9571_v5 = vpack.c.bf16 %v1950_v28, %v1918_v27  ;;  %v9579_v40 = vpack.c.bf16 %v1952_v35, %v1920_v34  ;;  %v9573_v43 = vpack.c.bf16 %v2015_v0, %v1983_v36  ;;  %v2023_v27 = vld [vmem:[#allocation7 + $0xb88] sm:$0xff]  ;;  %v1990_v35 = vld [vmem:[#allocation7 + $0xa80] sm:$0xff] }
 0x8ba   :  { %v9581_v9 = vpack.c.bf16 %v2017_v39, %v1985_v37  ;;  %v1993_v28 = vld [vmem:[#allocation7 + $0xa98] sm:$0xff]  ;;  %v2022_v36 = vld [vmem:[#allocation7 + $0xb80] sm:$0xff]  ;;  %v1992_v39 = vld [vmem:[#allocation7 + $0xa90] sm:$0xff] }
 0x8bb   :  { %9248 = vmatmul.mubr.msk.f32.vlgmr.msra.gmra.mrb[18].mxu0 %vm171_vm3, %v10475_v46  ;;  %9249 = vmatmul.mubr.msk.f32.vlgmr.msra.gmra.mrb[18].mxu1 %vm171_vm3, %v10475_v46 }
 0x8bc   :  { %9540 = vmatpush1.bf16.msra.mxu0 %v9539_v45  ;;  %9548 = vmatpush1.bf16.msra.mxu1 %v9547_v48  ;;  %v2016_v45 = vld [vmem:[#allocation7 + $0xb50] sm:$0xff]  ;;  %v1923_v48 = vld [vmem:[#allocation7 + $0x868] sm:$0xff] }
 0x8bd   :  { %9542 = vmatprep.subr.bf16.mxu0 %v9541_v47  ;;  %9550 = vmatprep.subr.bf16.mxu1 %v9549_v50  ;;  %v1957_v47 = vld [vmem:[#allocation7 + $0x978] sm:$0xff]  ;;  %v9575_v50 = vpack.c.bf16 %v2014_v42, %v1982_v41  ;;  %v9583_v51 = vpack.c.bf16 %v2016_v45, %v1984_v44  ;;  %v9585_v54 = vpack.c.bf16 %v1955_v49, %v1923_v48  ;;  %v1963_v41 = vld [vmem:[#allocation7 + $0x9a8] sm:$0xff]  ;;  %v1930_v45 = vld [vmem:[#allocation7 + $0x8a0] sm:$0xff] }
 0x8be   :  { %2230 = vmatprep.mubr.f32.mxu0 %v12075_v1  ;;  %2301 = vmatprep.mubr.f32.mxu1 %v12075_v1  ;;  %v9593_v55 = vpack.c.bf16 %v1957_v47, %v1925_v32  ;;  %v1933_v42 = vld [vmem:[#allocation7 + $0x8b8] sm:$0xff]  ;;  %v1962_v48 = vld [vmem:[#allocation7 + $0x9a0] sm:$0xff]  ;;  %v1932_v47 = vld [vmem:[#allocation7 + $0x8b0] sm:$0xff] }
 0x8c0   :  { %9544 = vmatpush1.bf16.msra.mxu0 %v9543_v57  ;;  %9552 = vmatpush1.bf16.msra.mxu1 %v9551_v60  ;;  %v1956_v57 = vld [vmem:[#allocation7 + $0x970] sm:$0xff]  ;;  %v1987_v60 = vld [vmem:[#allocation7 + $0xa68] sm:$0xff] }
 0x8c1   :  { %9554 = vmatprep.subr.bf16.mxu0 %v9553_v63  ;;  %9562 = vmatprep.subr.bf16.mxu1 %v9561_v2  ;;  %v2021_v63 = vld [vmem:[#allocation7 + $0xb78] sm:$0xff]  ;;  %v9587_v2 = vpack.c.bf16 %v1954_v53, %v1922_v52  ;;  %v9595_v3 = vpack.c.bf16 %v1956_v57, %v1924_v56  ;;  %v9589_v10 = vpack.c.bf16 %v2019_v61, %v1987_v60  ;;  %v2027_v52 = vld [vmem:[#allocation7 + $0xba8] sm:$0xff]  ;;  %v1994_v57 = vld [vmem:[#allocation7 + $0xaa0] sm:$0xff] }
 0x8c2   :  { %v9597_v11 = vpack.c.bf16 %v2021_v63, %v1989_v62  ;;  %v1997_v53 = vld [vmem:[#allocation7 + $0xab8] sm:$0xff]  ;;  %v2026_v60 = vld [vmem:[#allocation7 + $0xba0] sm:$0xff]  ;;  %v1996_v63 = vld [vmem:[#allocation7 + $0xab0] sm:$0xff] }
 0x8c3   :  { %9250 = vmatmul.mubr.msk.f32.vlgmr.msra.gmra.mrb[20].mxu0 %vm171_vm3, %v10475_v46  ;;  %9251 = vmatmul.mubr.msk.f32.vlgmr.msra.gmra.mrb[20].mxu1 %vm171_vm3, %v10475_v46 }
 0x8c4   :  { %9556 = vmatpush1.bf16.msra.mxu0 %v9555_v13  ;;  %9564 = vmatpush1.bf16.msra.mxu1 %v9563_v14  ;;  %v2020_v13 = vld [vmem:[#allocation7 + $0xb70] sm:$0xff]  ;;  %v1927_v14 = vld [vmem:[#allocation7 + $0x888] sm:$0xff] }
 0x8c5   :  { %9558 = vmatprep.subr.bf16.mxu0 %v9557_v17  ;;  %9566 = vmatprep.subr.bf16.mxu1 %v9565_v18  ;;  %v1961_v17 = vld [vmem:[#allocation7 + $0x998] sm:$0xff]  ;;  %v9591_v18 = vpack.c.bf16 %v2018_v6, %v1986_v4  ;;  %v9599_v19 = vpack.c.bf16 %v2020_v13, %v1988_v12  ;;  %v9601_v22 = vpack.c.bf16 %v1959_v15, %v1927_v14  ;;  %v1967_v4 = vld [vmem:[#allocation7 + $0x9c8] sm:$0xff]  ;;  %v1934_v13 = vld [vmem:[#allocation7 + $0x8c0] sm:$0xff] }
 0x8c6   :  { %2372 = vmatprep.mubr.f32.mxu0 %v12075_v1  ;;  %2443 = vmatprep.mubr.f32.mxu1 %v12075_v1  ;;  %v9609_v23 = vpack.c.bf16 %v1961_v17, %v1929_v16  ;;  %v1937_v6 = vld [vmem:[#allocation7 + $0x8d8] sm:$0xff]  ;;  %v1966_v14 = vld [vmem:[#allocation7 + $0x9c0] sm:$0xff]  ;;  %v1936_v17 = vld [vmem:[#allocation7 + $0x8d0] sm:$0xff] }
 0x8c8   :  { %9560 = vmatpush1.bf16.msra.mxu0 %v9559_v25  ;;  %9568 = vmatpush1.bf16.msra.mxu1 %v9567_v26  ;;  %v1960_v25 = vld [vmem:[#allocation7 + $0x990] sm:$0xff]  ;;  %v1991_v26 = vld [vmem:[#allocation7 + $0xa88] sm:$0xff] }
 0x8c9   :  { %9570 = vmatprep.subr.bf16.mxu0 %v9569_v31  ;;  %9578 = vmatprep.subr.bf16.mxu1 %v9577_v33  ;;  %v2025_v31 = vld [vmem:[#allocation7 + $0xb98] sm:$0xff]  ;;  %v9603_v33 = vpack.c.bf16 %v1958_v21, %v1926_v20  ;;  %v9611_v34 = vpack.c.bf16 %v1960_v25, %v1928_v24  ;;  %v9605_v0 = vpack.c.bf16 %v2023_v27, %v1991_v26  ;;  %v2031_v20 = vld [vmem:[#allocation7 + $0xbc8] sm:$0xff]  ;;  %v1998_v25 = vld [vmem:[#allocation7 + $0xac0] sm:$0xff] }
 0x8ca   :  { %v9613_v37 = vpack.c.bf16 %v2025_v31, %v1993_v28  ;;  %v2001_v21 = vld [vmem:[#allocation7 + $0xad8] sm:$0xff]  ;;  %v2030_v26 = vld [vmem:[#allocation7 + $0xbc0] sm:$0xff]  ;;  %v2000_v31 = vld [vmem:[#allocation7 + $0xad0] sm:$0xff] }
 0x8cb   :  { %9252 = vmatmul.mubr.msk.f32.vlgmr.msra.gmra.mrb[22].mxu0 %vm171_vm3, %v10475_v46  ;;  %9253 = vmatmul.mubr.msk.f32.vlgmr.msra.gmra.mrb[22].mxu1 %vm171_vm3, %v10475_v46 }
 0x8cc   :  { %9572 = vmatpush1.bf16.msra.mxu0 %v9571_v5  ;;  %9580 = vmatpush1.bf16.msra.mxu1 %v9579_v40  ;;  %v2024_v5 = vld [vmem:[#allocation7 + $0xb90] sm:$0xff]  ;;  %v1931_v40 = vld [vmem:[#allocation7 + $0x8a8] sm:$0xff] }
 0x8cd   :  { %9574 = vmatprep.subr.bf16.mxu0 %v9573_v43  ;;  %9582 = vmatprep.subr.bf16.mxu1 %v9581_v9  ;;  %v1965_v43 = vld [vmem:[#allocation7 + $0x9b8] sm:$0xff]  ;;  %v9607_v9 = vpack.c.bf16 %v2022_v36, %v1990_v35  ;;  %v9615_v44 = vpack.c.bf16 %v2024_v5, %v1992_v39  ;;  %v9617_v49 = vpack.c.bf16 %v1963_v41, %v1931_v40  ;;  %v1971_v35 = vld [vmem:[#allocation7 + $0x9e8] sm:$0xff]  ;;  %v1938_v5 = vld [vmem:[#allocation7 + $0x8e0] sm:$0xff] }
 0x8ce   :  { %2514 = vmatprep.mubr.f32.mxu0 %v12075_v1  ;;  %2585 = vmatprep.mubr.f32.mxu1 %v12075_v1  ;;  %v9625_v32 = vpack.c.bf16 %v1965_v43, %v1933_v42  ;;  %v1941_v36 = vld [vmem:[#allocation7 + $0x8f8] sm:$0xff]  ;;  %v1970_v40 = vld [vmem:[#allocation7 + $0x9e0] sm:$0xff]  ;;  %v1940_v43 = vld [vmem:[#allocation7 + $0x8f0] sm:$0xff] }
 0x8d0   :  { %9576 = vmatpush1.bf16.msra.mxu0 %v9575_v50  ;;  %9584 = vmatpush1.bf16.msra.mxu1 %v9583_v51  ;;  %v1964_v50 = vld [vmem:[#allocation7 + $0x9b0] sm:$0xff]  ;;  %v1995_v51 = vld [vmem:[#allocation7 + $0xaa8] sm:$0xff] }
 0x8d1   :  { %9586 = vmatprep.subr.bf16.mxu0 %v9585_v54  ;;  %9594 = vmatprep.subr.bf16.mxu1 %v9593_v55  ;;  %v2029_v54 = vld [vmem:[#allocation7 + $0xbb8] sm:$0xff]  ;;  %v9619_v55 = vpack.c.bf16 %v1962_v48, %v1930_v45  ;;  %v9627_v56 = vpack.c.bf16 %v1964_v50, %v1932_v47  ;;  %v9621_v61 = vpack.c.bf16 %v2027_v52, %v1995_v51  ;;  %v2035_v45 = vld [vmem:[#allocation7 + $0xbe8] sm:$0xff]  ;;  %v2002_v50 = vld [vmem:[#allocation7 + $0xae0] sm:$0xff] }
 0x8d2   :  { %v9629_v62 = vpack.c.bf16 %v2029_v54, %v1997_v53  ;;  %v2005_v48 = vld [vmem:[#allocation7 + $0xaf8] sm:$0xff]  ;;  %v2034_v51 = vld [vmem:[#allocation7 + $0xbe0] sm:$0xff]  ;;  %v2004_v54 = vld [vmem:[#allocation7 + $0xaf0] sm:$0xff] }
 0x8d3   :  { %9254 = vmatmul.mubr.msk.f32.vlgmr.msra.gmra.mrb[24].mxu0 %vm171_vm3, %v10475_v46  ;;  %9255 = vmatmul.mubr.msk.f32.vlgmr.msra.gmra.mrb[24].mxu1 %vm171_vm3, %v10475_v46 }
 0x8d4   :  { %9588 = vmatpush1.bf16.msra.mxu0 %v9587_v2  ;;  %9596 = vmatpush1.bf16.msra.mxu1 %v9595_v3  ;;  %v2028_v2 = vld [vmem:[#allocation7 + $0xbb0] sm:$0xff]  ;;  %v1935_v3 = vld [vmem:[#allocation7 + $0x8c8] sm:$0xff] }
 0x8d5   :  { %9590 = vmatprep.subr.bf16.mxu0 %v9589_v10  ;;  %9598 = vmatprep.subr.bf16.mxu1 %v9597_v11  ;;  %v1969_v10 = vld [vmem:[#allocation7 + $0x9d8] sm:$0xff]  ;;  %v9623_v11 = vpack.c.bf16 %v2026_v60, %v1994_v57  ;;  %v9631_v12 = vpack.c.bf16 %v2028_v2, %v1996_v63  ;;  %v9633_v15 = vpack.c.bf16 %v1967_v4, %v1935_v3  ;;  %v3367_v57 = vld [vmem:[#allocation7 + $0x1108] sm:$0xff]  ;;  %v3334_v2 = vld [vmem:[#allocation7 + $0x1000] sm:$0xff] }
 0x8d6   :  { %2656 = vmatprep.mubr.f32.mxu0 %v12075_v1  ;;  %2727 = vmatprep.mubr.f32.mxu1 %v12075_v1  ;;  %v9641_v16 = vpack.c.bf16 %v1969_v10, %v1937_v6  ;;  %v3337_v60 = vld [vmem:[#allocation7 + $0x1018] sm:$0xff]  ;;  %v3366_v3 = vld [vmem:[#allocation7 + $0x1100] sm:$0xff]  ;;  %v3336_v10 = vld [vmem:[#allocation7 + $0x1010] sm:$0xff] }
 0x8d8   :  { %9592 = vmatpush1.bf16.msra.mxu0 %v9591_v18  ;;  %9600 = vmatpush1.bf16.msra.mxu1 %v9599_v19  ;;  %v1968_v18 = vld [vmem:[#allocation7 + $0x9d0] sm:$0xff]  ;;  %v1999_v19 = vld [vmem:[#allocation7 + $0xac8] sm:$0xff] }
 0x8d9   :  { %9602 = vmatprep.subr.bf16.mxu0 %v9601_v22  ;;  %9610 = vmatprep.subr.bf16.mxu1 %v9609_v23  ;;  %v2033_v22 = vld [vmem:[#allocation7 + $0xbd8] sm:$0xff]  ;;  %v9635_v23 = vpack.c.bf16 %v1966_v14, %v1934_v13  ;;  %v9643_v24 = vpack.c.bf16 %v1968_v18, %v1936_v17  ;;  %v9637_v27 = vpack.c.bf16 %v2031_v20, %v1999_v19  ;;  %v3431_v13 = vld [vmem:[#allocation7 + $0x1308] sm:$0xff]  ;;  %v3398_v18 = vld [vmem:[#allocation7 + $0x1200] sm:$0xff] }
 0x8da   :  { %v9645_v28 = vpack.c.bf16 %v2033_v22, %v2001_v21  ;;  %v3401_v14 = vld [vmem:[#allocation7 + $0x1218] sm:$0xff]  ;;  %v3430_v19 = vld [vmem:[#allocation7 + $0x1300] sm:$0xff]  ;;  %v3400_v22 = vld [vmem:[#allocation7 + $0x1210] sm:$0xff] }
 0x8db   :  { %9256 = vmatmul.mubr.msk.f32.vlgmr.msra.gmra.mrb[26].mxu0 %vm171_vm3, %v10475_v46  ;;  %9257 = vmatmul.mubr.msk.f32.vlgmr.msra.gmra.mrb[26].mxu1 %vm171_vm3, %v10475_v46 }
 0x8dc   :  { %9604 = vmatpush1.bf16.msra.mxu0 %v9603_v33  ;;  %9612 = vmatpush1.bf16.msra.mxu1 %v9611_v34  ;;  %v2032_v33 = vld [vmem:[#allocation7 + $0xbd0] sm:$0xff]  ;;  %v1939_v34 = vld [vmem:[#allocation7 + $0x8e8] sm:$0xff] }
 0x8dd   :  { %9606 = vmatprep.subr.bf16.mxu0 %v9605_v0  ;;  %9614 = vmatprep.subr.bf16.mxu1 %v9613_v37  ;;  %v1973_v0 = vld [vmem:[#allocation7 + $0x9f8] sm:$0xff]  ;;  %v9639_v37 = vpack.c.bf16 %v2030_v26, %v1998_v25  ;;  %v9647_v39 = vpack.c.bf16 %v2032_v33, %v2000_v31  ;;  %v9649_v41 = vpack.c.bf16 %v1971_v35, %v1939_v34  ;;  %v3371_v25 = vld [vmem:[#allocation7 + $0x1128] sm:$0xff]  ;;  %v3338_v33 = vld [vmem:[#allocation7 + $0x1020] sm:$0xff] }
 0x8de   :  { %2798 = vmatprep.mubr.f32.mxu0 %v12075_v1  ;;  %2869 = vmatprep.mubr.f32.mxu1 %v12075_v1  ;;  %v9657_v42 = vpack.c.bf16 %v1973_v0, %v1941_v36  ;;  %v3341_v26 = vld [vmem:[#allocation7 + $0x1038] sm:$0xff]  ;;  %v3370_v34 = vld [vmem:[#allocation7 + $0x1120] sm:$0xff]  ;;  %v3340_v0 = vld [vmem:[#allocation7 + $0x1030] sm:$0xff] }
 0x8e0   :  { %9608 = vmatpush1.bf16.msra.mxu0 %v9607_v9  ;;  %9616 = vmatpush1.bf16.msra.mxu1 %v9615_v44  ;;  %v1972_v9 = vld [vmem:[#allocation7 + $0x9f0] sm:$0xff]  ;;  %v2003_v44 = vld [vmem:[#allocation7 + $0xae8] sm:$0xff] }
 0x8e1   :  { %9618 = vmatprep.subr.bf16.mxu0 %v9617_v49  ;;  %9626 = vmatprep.subr.bf16.mxu1 %v9625_v32  ;;  %v2037_v49 = vld [vmem:[#allocation7 + $0xbf8] sm:$0xff]  ;;  %v9651_v32 = vpack.c.bf16 %v1970_v40, %v1938_v5  ;;  %v9659_v47 = vpack.c.bf16 %v1972_v9, %v1940_v43  ;;  %v9653_v52 = vpack.c.bf16 %v2035_v45, %v2003_v44  ;;  %v3435_v5 = vld [vmem:[#allocation7 + $0x1328] sm:$0xff]  ;;  %v3402_v9 = vld [vmem:[#allocation7 + $0x1220] sm:$0xff] }
 0x8e2   :  { %v9661_v53 = vpack.c.bf16 %v2037_v49, %v2005_v48  ;;  %v3405_v40 = vld [vmem:[#allocation7 + $0x1238] sm:$0xff]  ;;  %v3434_v44 = vld [vmem:[#allocation7 + $0x1320] sm:$0xff]  ;;  %v3404_v49 = vld [vmem:[#allocation7 + $0x1230] sm:$0xff] }
 0x8e3   :  { %9258 = vmatmul.mubr.msk.f32.vlgmr.msra.gmra.mrb[28].mxu0 %vm171_vm3, %v10475_v46  ;;  %9259 = vmatmul.mubr.msk.f32.vlgmr.msra.gmra.mrb[28].mxu1 %vm171_vm3, %v10475_v46 }
 0x8e4   :  { %9620 = vmatpush1.bf16.msra.mxu0 %v9619_v55  ;;  %9628 = vmatpush1.bf16.msra.mxu1 %v9627_v56  ;;  %v2036_v55 = vld [vmem:[#allocation7 + $0xbf0] sm:$0xff]  ;;  %v3335_v56 = vld [vmem:[#allocation7 + $0x1008] sm:$0xff] }
 0x8e5   :  { %9622 = vmatprep.subr.bf16.mxu0 %v9621_v61  ;;  %9630 = vmatprep.subr.bf16.mxu1 %v9629_v62  ;;  %v3369_v61 = vld [vmem:[#allocation7 + $0x1118] sm:$0xff]  ;;  %v9655_v62 = vpack.c.bf16 %v2034_v51, %v2002_v50  ;;  %v9663_v63 = vpack.c.bf16 %v2036_v55, %v2004_v54  ;;  %v9665_v4 = vpack.c.bf16 %v3367_v57, %v3335_v56  ;;  %v3375_v50 = vld [vmem:[#allocation7 + $0x1148] sm:$0xff]  ;;  %v3342_v55 = vld [vmem:[#allocation7 + $0x1040] sm:$0xff] }
 0x8e6   :  { %2940 = vmatprep.mubr.f32.mxu0 %v12075_v1  ;;  %3011 = vmatprep.mubr.f32.mxu1 %v12075_v1  ;;  %v9673_v6 = vpack.c.bf16 %v3369_v61, %v3337_v60  ;;  %v3345_v51 = vld [vmem:[#allocation7 + $0x1058] sm:$0xff]  ;;  %v3374_v56 = vld [vmem:[#allocation7 + $0x1140] sm:$0xff]  ;;  %v3344_v61 = vld [vmem:[#allocation7 + $0x1050] sm:$0xff] }
 0x8e8   :  { %9624 = vmatpush1.bf16.msra.mxu0 %v9623_v11  ;;  %9632 = vmatpush1.bf16.msra.mxu1 %v9631_v12  ;;  %v3368_v11 = vld [vmem:[#allocation7 + $0x1110] sm:$0xff]  ;;  %v3399_v12 = vld [vmem:[#allocation7 + $0x1208] sm:$0xff] }
 0x8e9   :  { %9634 = vmatprep.subr.bf16.mxu0 %v9633_v15  ;;  %9642 = vmatprep.subr.bf16.mxu1 %v9641_v16  ;;  %v3433_v15 = vld [vmem:[#allocation7 + $0x1318] sm:$0xff]  ;;  %v9667_v16 = vpack.c.bf16 %v3366_v3, %v3334_v2  ;;  %v9675_v17 = vpack.c.bf16 %v3368_v11, %v3336_v10  ;;  %v9669_v20 = vpack.c.bf16 %v3431_v13, %v3399_v12  ;;  %v3439_v2 = vld [vmem:[#allocation7 + $0x1348] sm:$0xff]  ;;  %v3406_v11 = vld [vmem:[#allocation7 + $0x1240] sm:$0xff] }
 0x8ea   :  { %v9677_v21 = vpack.c.bf16 %v3433_v15, %v3401_v14  ;;  %v3409_v3 = vld [vmem:[#allocation7 + $0x1258] sm:$0xff]  ;;  %v3438_v12 = vld [vmem:[#allocation7 + $0x1340] sm:$0xff]  ;;  %v3408_v15 = vld [vmem:[#allocation7 + $0x1250] sm:$0xff] }
 0x8eb   :  { %9260 = vmatmul.mubr.msk.f32.vlgmr.msra.gmra.mrb[30].mxu0 %vm171_vm3, %v10475_v46  ;;  %9261 = vmatmul.mubr.msk.f32.vlgmr.msra.gmra.mrb[30].mxu1 %vm171_vm3, %v10475_v46 }
 0x8ec   :  { %9636 = vmatpush1.bf16.msra.mxu0 %v9635_v23  ;;  %9644 = vmatpush1.bf16.msra.mxu1 %v9643_v24  ;;  %v3432_v23 = vld [vmem:[#allocation7 + $0x1310] sm:$0xff]  ;;  %v3339_v24 = vld [vmem:[#allocation7 + $0x1028] sm:$0xff] }
 0x8ed   :  { %9638 = vmatprep.subr.bf16.mxu0 %v9637_v27  ;;  %9646 = vmatprep.subr.bf16.mxu1 %v9645_v28  ;;  %v3373_v27 = vld [vmem:[#allocation7 + $0x1138] sm:$0xff]  ;;  %v9671_v28 = vpack.c.bf16 %v3430_v19, %v3398_v18  ;;  %v9679_v31 = vpack.c.bf16 %v3432_v23, %v3400_v22  ;;  %v9681_v35 = vpack.c.bf16 %v3371_v25, %v3339_v24  ;;  %v3379_v18 = vld [vmem:[#allocation7 + $0x1168] sm:$0xff]  ;;  %v3346_v23 = vld [vmem:[#allocation7 + $0x1060] sm:$0xff] }
 0x8ee   :  { %3082 = vmatprep.mubr.f32.mxu0 %v12075_v1  ;;  %3153 = vmatprep.mubr.f32.mxu1 %v12075_v1  ;;  %v9689_v36 = vpack.c.bf16 %v3373_v27, %v3341_v26  ;;  %v3349_v19 = vld [vmem:[#allocation7 + $0x1078] sm:$0xff]  ;;  %v3378_v24 = vld [vmem:[#allocation7 + $0x1160] sm:$0xff]  ;;  %v3348_v27 = vld [vmem:[#allocation7 + $0x1070] sm:$0xff] }
 0x8f0   :  { %9640 = vmatpush1.bf16.msra.mxu0 %v9639_v37  ;;  %9648 = vmatpush1.bf16.msra.mxu1 %v9647_v39  ;;  %v3372_v37 = vld [vmem:[#allocation7 + $0x1130] sm:$0xff]  ;;  %v3403_v39 = vld [vmem:[#allocation7 + $0x1228] sm:$0xff] }
 0x8f1   :  { %9650 = vmatprep.subr.bf16.mxu0 %v9649_v41  ;;  %9658 = vmatprep.subr.bf16.mxu1 %v9657_v42  ;;  %v3437_v41 = vld [vmem:[#allocation7 + $0x1338] sm:$0xff]  ;;  %v9683_v42 = vpack.c.bf16 %v3370_v34, %v3338_v33  ;;  %v9691_v43 = vpack.c.bf16 %v3372_v37, %v3340_v0  ;;  %v9685_v45 = vpack.c.bf16 %v3435_v5, %v3403_v39  ;;  %v3443_v33 = vld [vmem:[#allocation7 + $0x1368] sm:$0xff]  ;;  %v3410_v37 = vld [vmem:[#allocation7 + $0x1260] sm:$0xff] }
 0x8f2   :  { %v9693_v48 = vpack.c.bf16 %v3437_v41, %v3405_v40  ;;  %v3413_v34 = vld [vmem:[#allocation7 + $0x1278] sm:$0xff]  ;;  %v3442_v39 = vld [vmem:[#allocation7 + $0x1360] sm:$0xff]  ;;  %v3412_v41 = vld [vmem:[#allocation7 + $0x1270] sm:$0xff] }
 0x8f3   :  { %9262 = vmatmul.mubr.msk.f32.vlgmr.msra.gmra.mrb[32].mxu0 %vm171_vm3, %v10475_v46  ;;  %9263 = vmatmul.mubr.msk.f32.vlgmr.msra.gmra.mrb[32].mxu1 %vm171_vm3, %v10475_v46 }
 0x8f4   :  { %9652 = vmatpush1.bf16.msra.mxu0 %v9651_v32  ;;  %9660 = vmatpush1.bf16.msra.mxu1 %v9659_v47  ;;  %v3436_v32 = vld [vmem:[#allocation7 + $0x1330] sm:$0xff]  ;;  %v3343_v47 = vld [vmem:[#allocation7 + $0x1048] sm:$0xff] }
 0x8f5   :  { %9654 = vmatprep.subr.bf16.mxu0 %v9653_v52  ;;  %9662 = vmatprep.subr.bf16.mxu1 %v9661_v53  ;;  %v3377_v52 = vld [vmem:[#allocation7 + $0x1158] sm:$0xff]  ;;  %v9687_v53 = vpack.c.bf16 %v3434_v44, %v3402_v9  ;;  %v9695_v54 = vpack.c.bf16 %v3436_v32, %v3404_v49  ;;  %v9697_v57 = vpack.c.bf16 %v3375_v50, %v3343_v47  ;;  %v3383_v9 = vld [vmem:[#allocation7 + $0x1188] sm:$0xff]  ;;  %v3350_v32 = vld [vmem:[#allocation7 + $0x1080] sm:$0xff] }
 0x8f6   :  { %3224 = vmatprep.mubr.f32.mxu0 %v12075_v1  ;;  %3295 = vmatprep.mubr.f32.mxu1 %v12075_v1  ;;  %v9705_v60 = vpack.c.bf16 %v3377_v52, %v3345_v51  ;;  %v3353_v44 = vld [vmem:[#allocation7 + $0x1098] sm:$0xff]  ;;  %v3382_v47 = vld [vmem:[#allocation7 + $0x1180] sm:$0xff]  ;;  %v3352_v52 = vld [vmem:[#allocation7 + $0x1090] sm:$0xff] }
 0x8f8   :  { %9656 = vmatpush1.bf16.msra.mxu0 %v9655_v62  ;;  %9664 = vmatpush1.bf16.msra.mxu1 %v9663_v63  ;;  %v3376_v62 = vld [vmem:[#allocation7 + $0x1150] sm:$0xff]  ;;  %v3407_v63 = vld [vmem:[#allocation7 + $0x1248] sm:$0xff] }
 0x8f9   :  { %9666 = vmatprep.subr.bf16.mxu0 %v9665_v4  ;;  %9674 = vmatprep.subr.bf16.mxu1 %v9673_v6  ;;  %v3441_v4 = vld [vmem:[#allocation7 + $0x1358] sm:$0xff]  ;;  %v9699_v6 = vpack.c.bf16 %v3374_v56, %v3342_v55  ;;  %v9707_v10 = vpack.c.bf16 %v3376_v62, %v3344_v61  ;;  %v9701_v13 = vpack.c.bf16 %v3439_v2, %v3407_v63  ;;  %v3447_v55 = vld [vmem:[#allocation7 + $0x1388] sm:$0xff]  ;;  %v3414_v62 = vld [vmem:[#allocation7 + $0x1280] sm:$0xff] }
 0x8fa   :  { %v9709_v14 = vpack.c.bf16 %v3441_v4, %v3409_v3  ;;  %v3417_v56 = vld [vmem:[#allocation7 + $0x1298] sm:$0xff]  ;;  %v3446_v63 = vld [vmem:[#allocation7 + $0x1380] sm:$0xff]  ;;  %v3416_v4 = vld [vmem:[#allocation7 + $0x1290] sm:$0xff] }
 0x8fb   :  { %9264 = vmatmul.mubr.msk.f32.vlgmr.msra.gmra.mrb[34].mxu0 %vm171_vm3, %v10475_v46  ;;  %9265 = vmatmul.mubr.msk.f32.vlgmr.msra.gmra.mrb[34].mxu1 %vm171_vm3, %v10475_v46 }
 0x8fc   :  { %9668 = vmatpush1.bf16.msra.mxu0 %v9667_v16  ;;  %9676 = vmatpush1.bf16.msra.mxu1 %v9675_v17  ;;  %v3440_v16 = vld [vmem:[#allocation7 + $0x1350] sm:$0xff]  ;;  %v3347_v17 = vld [vmem:[#allocation7 + $0x1068] sm:$0xff] }
 0x8fd   :  { %9670 = vmatprep.subr.bf16.mxu0 %v9669_v20  ;;  %9678 = vmatprep.subr.bf16.mxu1 %v9677_v21  ;;  %v3381_v20 = vld [vmem:[#allocation7 + $0x1178] sm:$0xff]  ;;  %v9703_v21 = vpack.c.bf16 %v3438_v12, %v3406_v11  ;;  %v9711_v22 = vpack.c.bf16 %v3440_v16, %v3408_v15  ;;  %v9713_v25 = vpack.c.bf16 %v3379_v18, %v3347_v17  ;;  %v3387_v11 = vld [vmem:[#allocation7 + $0x11a8] sm:$0xff]  ;;  %v3354_v16 = vld [vmem:[#allocation7 + $0x10a0] sm:$0xff] }
 0x8fe   :  { %3654 = vmatprep.mubr.f32.mxu0 %v12075_v1  ;;  %3725 = vmatprep.mubr.f32.mxu1 %v12075_v1  ;;  %v9721_v26 = vpack.c.bf16 %v3381_v20, %v3349_v19  ;;  %v3357_v12 = vld [vmem:[#allocation7 + $0x10b8] sm:$0xff]  ;;  %v3386_v17 = vld [vmem:[#allocation7 + $0x11a0] sm:$0xff]  ;;  %v3356_v20 = vld [vmem:[#allocation7 + $0x10b0] sm:$0xff] }
 0x900   :  { %9672 = vmatpush1.bf16.msra.mxu0 %v9671_v28  ;;  %9680 = vmatpush1.bf16.msra.mxu1 %v9679_v31  ;;  %v3380_v28 = vld [vmem:[#allocation7 + $0x1170] sm:$0xff]  ;;  %v3411_v31 = vld [vmem:[#allocation7 + $0x1268] sm:$0xff] }
 0x901   :  { %9682 = vmatprep.subr.bf16.mxu0 %v9681_v35  ;;  %9690 = vmatprep.subr.bf16.mxu1 %v9689_v36  ;;  %v3445_v35 = vld [vmem:[#allocation7 + $0x1378] sm:$0xff]  ;;  %v9715_v36 = vpack.c.bf16 %v3378_v24, %v3346_v23  ;;  %v9723_v0 = vpack.c.bf16 %v3380_v28, %v3348_v27  ;;  %v9717_v5 = vpack.c.bf16 %v3443_v33, %v3411_v31  ;;  %v3451_v23 = vld [vmem:[#allocation7 + $0x13a8] sm:$0xff]  ;;  %v3418_v28 = vld [vmem:[#allocation7 + $0x12a0] sm:$0xff] }
 0x902   :  { %v9725_v40 = vpack.c.bf16 %v3445_v35, %v3413_v34  ;;  %v3421_v24 = vld [vmem:[#allocation7 + $0x12b8] sm:$0xff]  ;;  %v3450_v31 = vld [vmem:[#allocation7 + $0x13a0] sm:$0xff]  ;;  %v3420_v35 = vld [vmem:[#allocation7 + $0x12b0] sm:$0xff] }
 0x903   :  { %9266 = vmatmul.mubr.msk.f32.vlgmr.msra.gmra.mrb[36].mxu0 %vm171_vm3, %v10475_v46  ;;  %9267 = vmatmul.mubr.msk.f32.vlgmr.msra.gmra.mrb[36].mxu1 %vm171_vm3, %v10475_v46 }
 0x904   :  { %9684 = vmatpush1.bf16.msra.mxu0 %v9683_v42  ;;  %9692 = vmatpush1.bf16.msra.mxu1 %v9691_v43  ;;  %v3444_v42 = vld [vmem:[#allocation7 + $0x1370] sm:$0xff]  ;;  %v3351_v43 = vld [vmem:[#allocation7 + $0x1088] sm:$0xff] }
 0x905   :  { %9686 = vmatprep.subr.bf16.mxu0 %v9685_v45  ;;  %9694 = vmatprep.subr.bf16.mxu1 %v9693_v48  ;;  %v3385_v45 = vld [vmem:[#allocation7 + $0x1198] sm:$0xff]  ;;  %v9719_v48 = vpack.c.bf16 %v3442_v39, %v3410_v37  ;;  %v9727_v49 = vpack.c.bf16 %v3444_v42, %v3412_v41  ;;  %v9729_v50 = vpack.c.bf16 %v3383_v9, %v3351_v43  ;;  %v3391_v37 = vld [vmem:[#allocation7 + $0x11c8] sm:$0xff]  ;;  %v3358_v42 = vld [vmem:[#allocation7 + $0x10c0] sm:$0xff] }
 0x906   :  { %3796 = vmatprep.mubr.f32.mxu0 %v12075_v1  ;;  %3867 = vmatprep.mubr.f32.mxu1 %v12075_v1  ;;  %v9737_v51 = vpack.c.bf16 %v3385_v45, %v3353_v44  ;;  %v3361_v39 = vld [vmem:[#allocation7 + $0x10d8] sm:$0xff]  ;;  %v3390_v43 = vld [vmem:[#allocation7 + $0x11c0] sm:$0xff]  ;;  %v3360_v45 = vld [vmem:[#allocation7 + $0x10d0] sm:$0xff] }
 0x908   :  { %9688 = vmatpush1.bf16.msra.mxu0 %v9687_v53  ;;  %9696 = vmatpush1.bf16.msra.mxu1 %v9695_v54  ;;  %v3384_v53 = vld [vmem:[#allocation7 + $0x1190] sm:$0xff]  ;;  %v3415_v54 = vld [vmem:[#allocation7 + $0x1288] sm:$0xff] }
 0x909   :  { %9698 = vmatprep.subr.bf16.mxu0 %v9697_v57  ;;  %9706 = vmatprep.subr.bf16.mxu1 %v9705_v60  ;;  %v3449_v57 = vld [vmem:[#allocation7 + $0x1398] sm:$0xff]  ;;  %v9731_v60 = vpack.c.bf16 %v3382_v47, %v3350_v32  ;;  %v9739_v61 = vpack.c.bf16 %v3384_v53, %v3352_v52  ;;  %v9733_v2 = vpack.c.bf16 %v3447_v55, %v3415_v54  ;;  %v3455_v32 = vld [vmem:[#allocation7 + $0x13c8] sm:$0xff]  ;;  %v3422_v53 = vld [vmem:[#allocation7 + $0x12c0] sm:$0xff] }
 0x90a   :  { %v9741_v3 = vpack.c.bf16 %v3449_v57, %v3417_v56  ;;  %v3425_v47 = vld [vmem:[#allocation7 + $0x12d8] sm:$0xff]  ;;  %v3454_v54 = vld [vmem:[#allocation7 + $0x13c0] sm:$0xff]  ;;  %v3424_v57 = vld [vmem:[#allocation7 + $0x12d0] sm:$0xff] }
 0x90b   :  { %9268 = vmatmul.mubr.msk.f32.vlgmr.msra.gmra.mrb[38].mxu0 %vm171_vm3, %v10475_v46  ;;  %9269 = vmatmul.mubr.msk.f32.vlgmr.msra.gmra.mrb[38].mxu1 %vm171_vm3, %v10475_v46 }
 0x90c   :  { %9700 = vmatpush1.bf16.msra.mxu0 %v9699_v6  ;;  %9708 = vmatpush1.bf16.msra.mxu1 %v9707_v10  ;;  %v3448_v6 = vld [vmem:[#allocation7 + $0x1390] sm:$0xff]  ;;  %v3355_v10 = vld [vmem:[#allocation7 + $0x10a8] sm:$0xff] }
 0x90d   :  { %9702 = vmatprep.subr.bf16.mxu0 %v9701_v13  ;;  %9710 = vmatprep.subr.bf16.mxu1 %v9709_v14  ;;  %v3389_v13 = vld [vmem:[#allocation7 + $0x11b8] sm:$0xff]  ;;  %v9735_v14 = vpack.c.bf16 %v3446_v63, %v3414_v62  ;;  %v9743_v15 = vpack.c.bf16 %v3448_v6, %v3416_v4  ;;  %v9745_v18 = vpack.c.bf16 %v3387_v11, %v3355_v10  ;;  %v3395_v62 = vld [vmem:[#allocation7 + $0x11e8] sm:$0xff]  ;;  %v3362_v6 = vld [vmem:[#allocation7 + $0x10e0] sm:$0xff] }
 0x90e   :  { %3938 = vmatprep.mubr.f32.mxu0 %v12075_v1  ;;  %4009 = vmatprep.mubr.f32.mxu1 %v12075_v1  ;;  %v9753_v19 = vpack.c.bf16 %v3389_v13, %v3357_v12  ;;  %v3365_v63 = vld [vmem:[#allocation7 + $0x10f8] sm:$0xff]  ;;  %v3394_v10 = vld [vmem:[#allocation7 + $0x11e0] sm:$0xff]  ;;  %v3364_v13 = vld [vmem:[#allocation7 + $0x10f0] sm:$0xff] }
 0x910   :  { %9704 = vmatpush1.bf16.msra.mxu0 %v9703_v21  ;;  %9712 = vmatpush1.bf16.msra.mxu1 %v9711_v22  ;;  %v3388_v21 = vld [vmem:[#allocation7 + $0x11b0] sm:$0xff]  ;;  %v3419_v22 = vld [vmem:[#allocation7 + $0x12a8] sm:$0xff] }
 0x911   :  { %9714 = vmatprep.subr.bf16.mxu0 %v9713_v25  ;;  %9722 = vmatprep.subr.bf16.mxu1 %v9721_v26  ;;  %v3453_v25 = vld [vmem:[#allocation7 + $0x13b8] sm:$0xff]  ;;  %v9747_v26 = vpack.c.bf16 %v3386_v17, %v3354_v16  ;;  %v9755_v27 = vpack.c.bf16 %v3388_v21, %v3356_v20  ;;  %v9749_v33 = vpack.c.bf16 %v3451_v23, %v3419_v22  ;;  %v3459_v16 = vld [vmem:[#allocation7 + $0x13e8] sm:$0xff]  ;;  %v3426_v21 = vld [vmem:[#allocation7 + $0x12e0] sm:$0xff] }
 0x912   :  { %v9757_v34 = vpack.c.bf16 %v3453_v25, %v3421_v24  ;;  %v3429_v17 = vld [vmem:[#allocation7 + $0x12f8] sm:$0xff]  ;;  %v3458_v22 = vld [vmem:[#allocation7 + $0x13e0] sm:$0xff]  ;;  %v3428_v25 = vld [vmem:[#allocation7 + $0x12f0] sm:$0xff] }
 0x913   :  { %9270 = vmatmul.mubr.msk.f32.vlgmr.msra.gmra.mrb[40].mxu0 %vm171_vm3, %v10475_v46  ;;  %9271 = vmatmul.mubr.msk.f32.vlgmr.msra.gmra.mrb[40].mxu1 %vm171_vm3, %v10475_v46 }
 0x914   :  { %9716 = vmatpush1.bf16.msra.mxu0 %v9715_v36  ;;  %9724 = vmatpush1.bf16.msra.mxu1 %v9723_v0  ;;  %v3452_v36 = vld [vmem:[#allocation7 + $0x13b0] sm:$0xff]  ;;  %v3359_v0 = vld [vmem:[#allocation7 + $0x10c8] sm:$0xff] }
 0x915   :  { %9718 = vmatprep.subr.bf16.mxu0 %v9717_v5  ;;  %9726 = vmatprep.subr.bf16.mxu1 %v9725_v40  ;;  %v3393_v5 = vld [vmem:[#allocation7 + $0x11d8] sm:$0xff]  ;;  %v9751_v40 = vpack.c.bf16 %v3450_v31, %v3418_v28  ;;  %v9759_v41 = vpack.c.bf16 %v3452_v36, %v3420_v35  ;;  %v9761_v9 = vpack.c.bf16 %v3391_v37, %v3359_v0  ;;  %v4791_v28 = vld [vmem:[#allocation7 + $0x508] sm:$0xff]  ;;  %v4758_v36 = vld [vmem:[#allocation7 + $0x400] sm:$0xff] }
 0x916   :  { %4080 = vmatprep.mubr.f32.mxu0 %v12075_v1  ;;  %4151 = vmatprep.mubr.f32.mxu1 %v12075_v1  ;;  %v9769_v44 = vpack.c.bf16 %v3393_v5, %v3361_v39  ;;  %v4761_v31 = vld [vmem:[#allocation7 + $0x418] sm:$0xff]  ;;  %v4790_v0 = vld [vmem:[#allocation7 + $0x500] sm:$0xff]  ;;  %v4760_v5 = vld [vmem:[#allocation7 + $0x410] sm:$0xff] }
 0x918   :  { %9720 = vmatpush1.bf16.msra.mxu0 %v9719_v48  ;;  %9728 = vmatpush1.bf16.msra.mxu1 %v9727_v49  ;;  %v3392_v48 = vld [vmem:[#allocation7 + $0x11d0] sm:$0xff]  ;;  %v3423_v49 = vld [vmem:[#allocation7 + $0x12c8] sm:$0xff] }
 0x919   :  { %9730 = vmatprep.subr.bf16.mxu0 %v9729_v50  ;;  %9738 = vmatprep.subr.bf16.mxu1 %v9737_v51  ;;  %v3457_v50 = vld [vmem:[#allocation7 + $0x13d8] sm:$0xff]  ;;  %v9763_v51 = vpack.c.bf16 %v3390_v43, %v3358_v42  ;;  %v9771_v52 = vpack.c.bf16 %v3392_v48, %v3360_v45  ;;  %v9765_v55 = vpack.c.bf16 %v3455_v32, %v3423_v49  ;;  %v4855_v42 = vld [vmem:[#allocation7 + $0x708] sm:$0xff]  ;;  %v4822_v48 = vld [vmem:[#allocation7 + $0x600] sm:$0xff] }
 0x91a   :  { %v9773_v56 = vpack.c.bf16 %v3457_v50, %v3425_v47  ;;  %v4825_v43 = vld [vmem:[#allocation7 + $0x618] sm:$0xff]  ;;  %v4854_v49 = vld [vmem:[#allocation7 + $0x700] sm:$0xff]  ;;  %v4824_v50 = vld [vmem:[#allocation7 + $0x610] sm:$0xff] }
 0x91b   :  { %9272 = vmatmul.mubr.msk.f32.vlgmr.msra.gmra.mrb[42].mxu0 %vm171_vm3, %v10475_v46  ;;  %9273 = vmatmul.mubr.msk.f32.vlgmr.msra.gmra.mrb[42].mxu1 %vm171_vm3, %v10475_v46 }
 0x91c   :  { %9732 = vmatpush1.bf16.msra.mxu0 %v9731_v60  ;;  %9740 = vmatpush1.bf16.msra.mxu1 %v9739_v61  ;;  %v3456_v60 = vld [vmem:[#allocation7 + $0x13d0] sm:$0xff]  ;;  %v3363_v61 = vld [vmem:[#allocation7 + $0x10e8] sm:$0xff] }
 0x91d   :  { %9734 = vmatprep.subr.bf16.mxu0 %v9733_v2  ;;  %9742 = vmatprep.subr.bf16.mxu1 %v9741_v3  ;;  %v3397_v2 = vld [vmem:[#allocation7 + $0x11f8] sm:$0xff]  ;;  %v9767_v3 = vpack.c.bf16 %v3454_v54, %v3422_v53  ;;  %v9775_v4 = vpack.c.bf16 %v3456_v60, %v3424_v57  ;;  %v9777_v11 = vpack.c.bf16 %v3395_v62, %v3363_v61  ;;  %v4795_v53 = vld [vmem:[#allocation7 + $0x528] sm:$0xff]  ;;  %v4762_v60 = vld [vmem:[#allocation7 + $0x420] sm:$0xff] }
 0x91e   :  { %4222 = vmatprep.mubr.f32.mxu0 %v12075_v1  ;;  %4293 = vmatprep.mubr.f32.mxu1 %v12075_v1  ;;  %v9785_v12 = vpack.c.bf16 %v3397_v2, %v3365_v63  ;;  %v4765_v54 = vld [vmem:[#allocation7 + $0x438] sm:$0xff]  ;;  %v4794_v61 = vld [vmem:[#allocation7 + $0x520] sm:$0xff]  ;;  %v4764_v2 = vld [vmem:[#allocation7 + $0x430] sm:$0xff] }
 0x920   :  { %9736 = vmatpush1.bf16.msra.mxu0 %v9735_v14  ;;  %9744 = vmatpush1.bf16.msra.mxu1 %v9743_v15  ;;  %v3396_v14 = vld [vmem:[#allocation7 + $0x11f0] sm:$0xff]  ;;  %v3427_v15 = vld [vmem:[#allocation7 + $0x12e8] sm:$0xff] }
 0x921   :  { %9746 = vmatprep.subr.bf16.mxu0 %v9745_v18  ;;  %9754 = vmatprep.subr.bf16.mxu1 %v9753_v19  ;;  %v3461_v18 = vld [vmem:[#allocation7 + $0x13f8] sm:$0xff]  ;;  %v9779_v19 = vpack.c.bf16 %v3394_v10, %v3362_v6  ;;  %v9787_v20 = vpack.c.bf16 %v3396_v14, %v3364_v13  ;;  %v9781_v23 = vpack.c.bf16 %v3459_v16, %v3427_v15  ;;  %v4859_v6 = vld [vmem:[#allocation7 + $0x728] sm:$0xff]  ;;  %v4826_v14 = vld [vmem:[#allocation7 + $0x620] sm:$0xff] }
 0x922   :  { %v9789_v24 = vpack.c.bf16 %v3461_v18, %v3429_v17  ;;  %v4829_v10 = vld [vmem:[#allocation7 + $0x638] sm:$0xff]  ;;  %v4858_v15 = vld [vmem:[#allocation7 + $0x720] sm:$0xff]  ;;  %v4828_v18 = vld [vmem:[#allocation7 + $0x630] sm:$0xff] }
 0x923   :  { %9274 = vmatmul.mubr.msk.f32.vlgmr.msra.gmra.mrb[44].mxu0 %vm171_vm3, %v10475_v46  ;;  %9275 = vmatmul.mubr.msk.f32.vlgmr.msra.gmra.mrb[44].mxu1 %vm171_vm3, %v10475_v46 }
 0x924   :  { %9748 = vmatpush1.bf16.msra.mxu0 %v9747_v26  ;;  %9756 = vmatpush1.bf16.msra.mxu1 %v9755_v27  ;;  %v3460_v26 = vld [vmem:[#allocation7 + $0x13f0] sm:$0xff]  ;;  %v4759_v27 = vld [vmem:[#allocation7 + $0x408] sm:$0xff] }
 0x925   :  { %9750 = vmatprep.subr.bf16.mxu0 %v9749_v33  ;;  %9758 = vmatprep.subr.bf16.mxu1 %v9757_v34  ;;  %v4793_v33 = vld [vmem:[#allocation7 + $0x518] sm:$0xff]  ;;  %v9783_v34 = vpack.c.bf16 %v3458_v22, %v3426_v21  ;;  %v9791_v35 = vpack.c.bf16 %v3460_v26, %v3428_v25  ;;  %v9793_v37 = vpack.c.bf16 %v4791_v28, %v4759_v27  ;;  %v4799_v21 = vld [vmem:[#allocation7 + $0x548] sm:$0xff]  ;;  %v4766_v26 = vld [vmem:[#allocation7 + $0x440] sm:$0xff] }
 0x926   :  { %4364 = vmatprep.mubr.f32.mxu0 %v12075_v1  ;;  %4435 = vmatprep.mubr.f32.mxu1 %v12075_v1  ;;  %v9801_v39 = vpack.c.bf16 %v4793_v33, %v4761_v31  ;;  %v4769_v22 = vld [vmem:[#allocation7 + $0x458] sm:$0xff]  ;;  %v4798_v27 = vld [vmem:[#allocation7 + $0x540] sm:$0xff]  ;;  %v4768_v33 = vld [vmem:[#allocation7 + $0x450] sm:$0xff] }
 0x928   :  { %9752 = vmatpush1.bf16.msra.mxu0 %v9751_v40  ;;  %9760 = vmatpush1.bf16.msra.mxu1 %v9759_v41  ;;  %v4792_v40 = vld [vmem:[#allocation7 + $0x510] sm:$0xff]  ;;  %v4823_v41 = vld [vmem:[#allocation7 + $0x608] sm:$0xff] }
 0x929   :  { %9762 = vmatprep.subr.bf16.mxu0 %v9761_v9  ;;  %9770 = vmatprep.subr.bf16.mxu1 %v9769_v44  ;;  %v4857_v9 = vld [vmem:[#allocation7 + $0x718] sm:$0xff]  ;;  %v9795_v44 = vpack.c.bf16 %v4790_v0, %v4758_v36  ;;  %v9803_v45 = vpack.c.bf16 %v4792_v40, %v4760_v5  ;;  %v9797_v32 = vpack.c.bf16 %v4855_v42, %v4823_v41  ;;  %v4863_v36 = vld [vmem:[#allocation7 + $0x748] sm:$0xff]  ;;  %v4830_v40 = vld [vmem:[#allocation7 + $0x640] sm:$0xff] }
 0x92a   :  { %v9805_v47 = vpack.c.bf16 %v4857_v9, %v4825_v43  ;;  %v4833_v0 = vld [vmem:[#allocation7 + $0x658] sm:$0xff]  ;;  %v4862_v41 = vld [vmem:[#allocation7 + $0x740] sm:$0xff]  ;;  %v4832_v9 = vld [vmem:[#allocation7 + $0x650] sm:$0xff] }
 0x92b   :  { %9276 = vmatmul.mubr.msk.f32.vlgmr.msra.gmra.mrb[46].mxu0 %vm171_vm3, %v10475_v46  ;;  %9277 = vmatmul.mubr.msk.f32.vlgmr.msra.gmra.mrb[46].mxu1 %vm171_vm3, %v10475_v46 }
 0x92c   :  { %9764 = vmatpush1.bf16.msra.mxu0 %v9763_v51  ;;  %9772 = vmatpush1.bf16.msra.mxu1 %v9771_v52  ;;  %v4856_v51 = vld [vmem:[#allocation7 + $0x710] sm:$0xff]  ;;  %v4763_v52 = vld [vmem:[#allocation7 + $0x428] sm:$0xff] }
 0x92d   :  { %9766 = vmatprep.subr.bf16.mxu0 %v9765_v55  ;;  %9774 = vmatprep.subr.bf16.mxu1 %v9773_v56  ;;  %v4797_v55 = vld [vmem:[#allocation7 + $0x538] sm:$0xff]  ;;  %v9799_v56 = vpack.c.bf16 %v4854_v49, %v4822_v48  ;;  %v9807_v57 = vpack.c.bf16 %v4856_v51, %v4824_v50  ;;  %v9809_v62 = vpack.c.bf16 %v4795_v53, %v4763_v52  ;;  %v4803_v48 = vld [vmem:[#allocation7 + $0x568] sm:$0xff]  ;;  %v4770_v51 = vld [vmem:[#allocation7 + $0x460] sm:$0xff] }
 0x92e   :  { %4506 = vmatprep.mubr.f32.mxu0 %v12075_v1  ;;  %4577 = vmatprep.mubr.f32.mxu1 %v12075_v1  ;;  %v9817_v63 = vpack.c.bf16 %v4797_v55, %v4765_v54  ;;  %v4773_v49 = vld [vmem:[#allocation7 + $0x478] sm:$0xff]  ;;  %v4802_v52 = vld [vmem:[#allocation7 + $0x560] sm:$0xff]  ;;  %v4772_v55 = vld [vmem:[#allocation7 + $0x470] sm:$0xff] }
 0x930   :  { %9768 = vmatpush1.bf16.msra.mxu0 %v9767_v3  ;;  %9776 = vmatpush1.bf16.msra.mxu1 %v9775_v4  ;;  %v4796_v3 = vld [vmem:[#allocation7 + $0x530] sm:$0xff]  ;;  %v4827_v4 = vld [vmem:[#allocation7 + $0x628] sm:$0xff] }
 0x931   :  { %9778 = vmatprep.subr.bf16.mxu0 %v9777_v11  ;;  %9786 = vmatprep.subr.bf16.mxu1 %v9785_v12  ;;  %v4861_v11 = vld [vmem:[#allocation7 + $0x738] sm:$0xff]  ;;  %v9811_v12 = vpack.c.bf16 %v4794_v61, %v4762_v60  ;;  %v9819_v13 = vpack.c.bf16 %v4796_v3, %v4764_v2  ;;  %v9813_v16 = vpack.c.bf16 %v4859_v6, %v4827_v4  ;;  %v4867_v60 = vld [vmem:[#allocation7 + $0x768] sm:$0xff]  ;;  %v4834_v3 = vld [vmem:[#allocation7 + $0x660] sm:$0xff] }
 0x932   :  { %v9821_v17 = vpack.c.bf16 %v4861_v11, %v4829_v10  ;;  %v4837_v61 = vld [vmem:[#allocation7 + $0x678] sm:$0xff]  ;;  %v4866_v4 = vld [vmem:[#allocation7 + $0x760] sm:$0xff]  ;;  %v4836_v11 = vld [vmem:[#allocation7 + $0x670] sm:$0xff] }
 0x933   :  { %9278 = vmatmul.mubr.msk.f32.vlgmr.msra.gmra.mrb[48].mxu0 %vm171_vm3, %v10475_v46  ;;  %9279 = vmatmul.mubr.msk.f32.vlgmr.msra.gmra.mrb[48].mxu1 %vm171_vm3, %v10475_v46 }
 0x934   :  { %9780 = vmatpush1.bf16.msra.mxu0 %v9779_v19  ;;  %9788 = vmatpush1.bf16.msra.mxu1 %v9787_v20  ;;  %v4860_v19 = vld [vmem:[#allocation7 + $0x730] sm:$0xff]  ;;  %v4767_v20 = vld [vmem:[#allocation7 + $0x448] sm:$0xff] }
 0x935   :  { %9782 = vmatprep.subr.bf16.mxu0 %v9781_v23  ;;  %9790 = vmatprep.subr.bf16.mxu1 %v9789_v24  ;;  %v4801_v23 = vld [vmem:[#allocation7 + $0x558] sm:$0xff]  ;;  %v9815_v24 = vpack.c.bf16 %v4858_v15, %v4826_v14  ;;  %v9823_v25 = vpack.c.bf16 %v4860_v19, %v4828_v18  ;;  %v9825_v28 = vpack.c.bf16 %v4799_v21, %v4767_v20  ;;  %v4807_v14 = vld [vmem:[#allocation7 + $0x588] sm:$0xff]  ;;  %v4774_v19 = vld [vmem:[#allocation7 + $0x480] sm:$0xff] }
 0x936   :  { %4648 = vmatprep.mubr.f32.mxu0 %v12075_v1  ;;  %4719 = vmatprep.mubr.f32.mxu1 %v12075_v1  ;;  %v9833_v31 = vpack.c.bf16 %v4801_v23, %v4769_v22  ;;  %v4777_v15 = vld [vmem:[#allocation7 + $0x498] sm:$0xff]  ;;  %v4806_v20 = vld [vmem:[#allocation7 + $0x580] sm:$0xff]  ;;  %v4776_v23 = vld [vmem:[#allocation7 + $0x490] sm:$0xff] }
 0x938   :  { %9784 = vmatpush1.bf16.msra.mxu0 %v9783_v34  ;;  %9792 = vmatpush1.bf16.msra.mxu1 %v9791_v35  ;;  %v4800_v34 = vld [vmem:[#allocation7 + $0x550] sm:$0xff]  ;;  %v4831_v35 = vld [vmem:[#allocation7 + $0x648] sm:$0xff] }
 0x939   :  { %9794 = vmatprep.subr.bf16.mxu0 %v9793_v37  ;;  %9802 = vmatprep.subr.bf16.mxu1 %v9801_v39  ;;  %v4865_v37 = vld [vmem:[#allocation7 + $0x758] sm:$0xff]  ;;  %v9827_v39 = vpack.c.bf16 %v4798_v27, %v4766_v26  ;;  %v9835_v5 = vpack.c.bf16 %v4800_v34, %v4768_v33  ;;  %v9829_v42 = vpack.c.bf16 %v4863_v36, %v4831_v35 }
 0x93a   :  { %v9837_v43 = vpack.c.bf16 %v4865_v37, %v4833_v0  ;;  %v4873_v33 = vld [vmem:[#allocation7 + $0x798] sm:$0xff]  ;;  %v9859_v36 = vpack.c.bf16 %v4806_v20, %v4774_v19  ;;  %v4838_v37 = vld [vmem:[#allocation7 + $0x680] sm:$0xff] }
 0x93b   :  { %9280 = vmatmul.mubr.msk.f32.vlgmr.msra.gmra.mrb[50].mxu0 %vm171_vm3, %v10475_v46  ;;  %9281 = vmatmul.mubr.msk.f32.vlgmr.msra.gmra.mrb[50].mxu1 %vm171_vm3, %v10475_v46  ;;  %v4782_v20 = vld [vmem:[#allocation7 + $0x4c0] sm:$0xff] }
 0x93c   :  { %9796 = vmatpush1.bf16.msra.mxu0 %v9795_v44  ;;  %9804 = vmatpush1.bf16.msra.mxu1 %v9803_v45  ;;  %v4864_v44 = vld [vmem:[#allocation7 + $0x750] sm:$0xff]  ;;  %v4771_v45 = vld [vmem:[#allocation7 + $0x468] sm:$0xff] }
 0x93d   :  { %9798 = vmatprep.subr.bf16.mxu0 %v9797_v32  ;;  %9806 = vmatprep.subr.bf16.mxu1 %v9805_v47  ;;  %v4805_v32 = vld [vmem:[#allocation7 + $0x578] sm:$0xff]  ;;  %v9831_v47 = vpack.c.bf16 %v4862_v41, %v4830_v40  ;;  %v9839_v50 = vpack.c.bf16 %v4864_v44, %v4832_v9  ;;  %v9841_v53 = vpack.c.bf16 %v4803_v48, %v4771_v45  ;;  %v4840_v41 = vld [vmem:[#allocation7 + $0x690] sm:$0xff]  ;;  %v4811_v9 = vld [vmem:[#allocation7 + $0x5a8] sm:$0xff] }
 0x93e   :  { %5078 = vmatprep.mubr.f32.mxu0 %v12075_v1  ;;  %5149 = vmatprep.mubr.f32.mxu1 %v12075_v1  ;;  %v9849_v54 = vpack.c.bf16 %v4805_v32, %v4773_v49  ;;  %v4781_v44 = vld [vmem:[#allocation7 + $0x4b8] sm:$0xff]  ;;  %v4778_v32 = vld [vmem:[#allocation7 + $0x4a0] sm:$0xff] }
 0x93f   :  { %v4813_v45 = vld [vmem:[#allocation7 + $0x5b8] sm:$0xff] }
 0x940   :  { %9800 = vmatpush1.bf16.msra.mxu0 %v9799_v56  ;;  %9808 = vmatpush1.bf16.msra.mxu1 %v9807_v57  ;;  %v4804_v56 = vld [vmem:[#allocation7 + $0x570] sm:$0xff]  ;;  %v4835_v57 = vld [vmem:[#allocation7 + $0x668] sm:$0xff] }
 0x941   :  { %9810 = vmatprep.subr.bf16.mxu0 %v9809_v62  ;;  %9818 = vmatprep.subr.bf16.mxu1 %v9817_v63  ;;  %v4869_v62 = vld [vmem:[#allocation7 + $0x778] sm:$0xff]  ;;  %v9843_v63 = vpack.c.bf16 %v4802_v52, %v4770_v51  ;;  %v9851_v2 = vpack.c.bf16 %v4804_v56, %v4772_v55  ;;  %v9845_v6 = vpack.c.bf16 %v4867_v60, %v4835_v57  ;;  %v4780_v52 = vld [vmem:[#allocation7 + $0x4b0] sm:$0xff]  ;;  %v4875_v57 = vld [vmem:[#allocation7 + $0x7a8] sm:$0xff] }
 0x942   :  { %v9853_v10 = vpack.c.bf16 %v4869_v62, %v4837_v61  ;;  %v9881_v51 = vpack.c.bf16 %v4813_v45, %v4781_v44  ;;  %v4845_v60 = vld [vmem:[#allocation7 + $0x6b8] sm:$0xff]  ;;  %v4848_v45 = vld [vmem:[#allocation7 + $0x6d0] sm:$0xff] }
 0x943   :  { %9282 = vmatmul.mubr.msk.f32.vlgmr.msra.gmra.mrb[52].mxu0 %vm171_vm3, %v10475_v46  ;;  %9283 = vmatmul.mubr.msk.f32.vlgmr.msra.gmra.mrb[52].mxu1 %vm171_vm3, %v10475_v46  ;;  %v4877_v61 = vld [vmem:[#allocation7 + $0x7b8] sm:$0xff] }
 0x944   :  { %9812 = vmatpush1.bf16.msra.mxu0 %v9811_v12  ;;  %9820 = vmatpush1.bf16.msra.mxu1 %v9819_v13  ;;  %v4868_v12 = vld [vmem:[#allocation7 + $0x770] sm:$0xff]  ;;  %v4775_v13 = vld [vmem:[#allocation7 + $0x488] sm:$0xff] }
 0x945   :  { %9814 = vmatprep.subr.bf16.mxu0 %v9813_v16  ;;  %9822 = vmatprep.subr.bf16.mxu1 %v9821_v17  ;;  %v4809_v16 = vld [vmem:[#allocation7 + $0x598] sm:$0xff]  ;;  %v9847_v17 = vpack.c.bf16 %v4866_v4, %v4834_v3  ;;  %v9855_v18 = vpack.c.bf16 %v4868_v12, %v4836_v11  ;;  %v9857_v21 = vpack.c.bf16 %v4807_v14, %v4775_v13  ;;  %v4842_v4 = vld [vmem:[#allocation7 + $0x6a0] sm:$0xff]  ;;  %v4844_v12 = vld [vmem:[#allocation7 + $0x6b0] sm:$0xff] }
 0x946   :  { %5220 = vmatprep.mubr.f32.mxu0 %v12075_v1  ;;  %5291 = vmatprep.mubr.f32.mxu1 %v12075_v1  ;;  %v9865_v22 = vpack.c.bf16 %v4809_v16, %v4777_v15  ;;  %v9885_v11 = vpack.c.bf16 %v4877_v61, %v4845_v60  ;;  %v4876_v13 = vld [vmem:[#allocation7 + $0x7b0] sm:$0xff]  ;;  %v4783_v14 = vld [vmem:[#allocation7 + $0x4c8] sm:$0xff]  ;;  %v4785_v16 = vld [vmem:[#allocation7 + $0x4d8] sm:$0xff] }
 0x947   :  { %v4815_v15 = vld [vmem:[#allocation7 + $0x5c8] sm:$0xff]  ;;  %v9887_v19 = vpack.c.bf16 %v4876_v13, %v4844_v12  ;;  %v4788_v61 = vld [vmem:[#allocation7 + $0x4f0] sm:$0xff]  ;;  %v4885_v12 = vld [vmem:[#allocation7 + $0x7f8] sm:$0xff] }
 0x948   :  { %9816 = vmatpush1.bf16.msra.mxu0 %v9815_v24  ;;  %9824 = vmatpush1.bf16.msra.mxu1 %v9823_v25  ;;  %v4808_v24 = vld [vmem:[#allocation7 + $0x590] sm:$0xff]  ;;  %v4839_v25 = vld [vmem:[#allocation7 + $0x688] sm:$0xff] }
 0x949   :  { %9826 = vmatprep.subr.bf16.mxu0 %v9825_v28  ;;  %9834 = vmatprep.subr.bf16.mxu1 %v9833_v31  ;;  %v4871_v28 = vld [vmem:[#allocation7 + $0x788] sm:$0xff]  ;;  %v4841_v31 = vld [vmem:[#allocation7 + $0x698] sm:$0xff]  ;;  %v9867_v0 = vpack.c.bf16 %v4808_v24, %v4776_v23  ;;  %v4784_v24 = vld [vmem:[#allocation7 + $0x4d0] sm:$0xff] }
 0x94a   :  { %v9869_v40 = vpack.c.bf16 %v4873_v33, %v4841_v31 }
 0x94b   :  { %9284 = vmatmul.mubr.msk.f32.vlgmr.msra.gmra.mrb[54].mxu0 %vm171_vm3, %v10475_v46  ;;  %9285 = vmatmul.mubr.msk.f32.vlgmr.msra.gmra.mrb[54].mxu1 %vm171_vm3, %v10475_v46 }
 0x94c   :  { %9828 = vmatpush1.bf16.msra.mxu0 %v9827_v39  ;;  %9836 = vmatpush1.bf16.msra.mxu1 %v9835_v5  ;;  %v4870_v39 = vld [vmem:[#allocation7 + $0x780] sm:$0xff]  ;;  %v9861_v5 = vpack.c.bf16 %v4871_v28, %v4839_v25  ;;  %v4816_v25 = vld [vmem:[#allocation7 + $0x5d0] sm:$0xff]  ;;  %v4847_v28 = vld [vmem:[#allocation7 + $0x6c8] sm:$0xff] }
 0x94d   :  { %9830 = vmatprep.subr.bf16.mxu0 %v9829_v42  ;;  %9838 = vmatprep.subr.bf16.mxu1 %v9837_v43  ;;  %v4872_v42 = vld [vmem:[#allocation7 + $0x790] sm:$0xff]  ;;  %v4779_v43 = vld [vmem:[#allocation7 + $0x4a8] sm:$0xff]  ;;  %v9863_v48 = vpack.c.bf16 %v4870_v39, %v4838_v37  ;;  %v4881_v37 = vld [vmem:[#allocation7 + $0x7d8] sm:$0xff] }
 0x94e   :  { %5362 = vmatprep.mubr.f32.mxu0 %v12075_v1  ;;  %5433 = vmatprep.mubr.f32.mxu1 %v12075_v1  ;;  %v9871_v49 = vpack.c.bf16 %v4872_v42, %v4840_v41  ;;  %v9899_v41 = vpack.c.bf16 %v4816_v25, %v4784_v24  ;;  %v4846_v42 = vld [vmem:[#allocation7 + $0x6c0] sm:$0xff]  ;;  %v6183_v24 = vld [vmem:[#allocation7 + $0xd08] sm:$0xff]  ;;  %v6153_v25 = vld [vmem:[#allocation7 + $0xc18] sm:$0xff] }
 0x950   :  { %9832 = vmatpush1.bf16.msra.mxu0 %v9831_v47  ;;  %9840 = vmatpush1.bf16.msra.mxu1 %v9839_v50  ;;  %v4810_v47 = vld [vmem:[#allocation7 + $0x5a0] sm:$0xff]  ;;  %v9873_v50 = vpack.c.bf16 %v4811_v9, %v4779_v43 }
 0x951   :  { %9842 = vmatprep.subr.bf16.mxu0 %v9841_v53  ;;  %9850 = vmatprep.subr.bf16.mxu1 %v9849_v54  ;;  %v4812_v53 = vld [vmem:[#allocation7 + $0x5b0] sm:$0xff]  ;;  %v4843_v54 = vld [vmem:[#allocation7 + $0x6a8] sm:$0xff]  ;;  %v4878_v43 = vld [vmem:[#allocation7 + $0x7c0] sm:$0xff] }
 0x952   :  { %v9883_v3 = vpack.c.bf16 %v4812_v53, %v4780_v52  ;;  %v4786_v53 = vld [vmem:[#allocation7 + $0x4e0] sm:$0xff] }
 0x953   :  { %9286 = vmatmul.mubr.msk.f32.vlgmr.msra.gmra.mrb[56].mxu0 %vm171_vm3, %v10475_v46  ;;  %9287 = vmatmul.mubr.msk.f32.vlgmr.msra.gmra.mrb[56].mxu1 %vm171_vm3, %v10475_v46 }
 0x954   :  { %9844 = vmatpush1.bf16.msra.mxu0 %v9843_v63  ;;  %9852 = vmatpush1.bf16.msra.mxu1 %v9851_v2  ;;  %v9875_v2 = vpack.c.bf16 %v4810_v47, %v4778_v32  ;;  %v4819_v32 = vld [vmem:[#allocation7 + $0x5e8] sm:$0xff]  ;;  %v4789_v47 = vld [vmem:[#allocation7 + $0x4f8] sm:$0xff] }
 0x955   :  { %9846 = vmatprep.subr.bf16.mxu0 %v9845_v6  ;;  %9854 = vmatprep.subr.bf16.mxu1 %v9853_v10  ;;  %v4874_v6 = vld [vmem:[#allocation7 + $0x7a0] sm:$0xff]  ;;  %v9877_v10 = vpack.c.bf16 %v4875_v57, %v4843_v54 }
 0x956   :  { %v10637_v26 = vpop.f32.mrb[4].mxu0  ;;  %v10639_v27 = vpop.f32.mrb[4].mxu1  ;;  %5504 = vmatprep.mubr.f32.mxu0 %v12075_v1  ;;  %5575 = vmatprep.mubr.f32.mxu1 %v12075_v1  ;;  %v4818_v54 = vld [vmem:[#allocation7 + $0x5e0] sm:$0xff] }
 0x957   :  { %v10643_v34 = vpop.f32.mrb[5].mxu0  ;;  %v10645_v35 = vpop.f32.mrb[5].mxu1 }
 0x958   :  { %9848 = vmatpush1.bf16.msra.mxu0 %v9847_v17  ;;  %9856 = vmatpush1.bf16.msra.mxu1 %v9855_v18  ;;  %v4817_v17 = vld [vmem:[#allocation7 + $0x5d8] sm:$0xff]  ;;  %v9879_v18 = vpack.c.bf16 %v4874_v6, %v4842_v4 }
 0x959   :  { %9858 = vmatprep.subr.bf16.mxu0 %v9857_v21  ;;  %9866 = vmatprep.subr.bf16.mxu1 %v9865_v22  ;;  %v4814_v21 = vld [vmem:[#allocation7 + $0x5c0] sm:$0xff]  ;;  %v9889_v22 = vpack.c.bf16 %v4815_v15, %v4783_v14  ;;  %v9897_v23 = vpack.c.bf16 %v4817_v17, %v4785_v16  ;;  %v9907_v15 = vpack.c.bf16 %v4818_v54, %v4786_v53 }
 0x95a   :  { %v4850_v17 = vld [vmem:[#allocation7 + $0x6e0] sm:$0xff] }
 0x95b   :  { %9288 = vmatmul.mubr.msk.f32.vlgmr.msra.gmra.mrb[58].mxu0 %vm171_vm3, %v10475_v46  ;;  %9289 = vmatmul.mubr.msk.f32.vlgmr.msra.gmra.mrb[58].mxu1 %vm171_vm3, %v10475_v46  ;;  %v6214_v54 = vld [vmem:[#allocation7 + $0xe00] sm:$0xff] }
 0x95c   :  { %9860 = vmatpush1.bf16.msra.mxu0 %v9859_v36  ;;  %9868 = vmatpush1.bf16.msra.mxu1 %v9867_v0  ;;  %v4879_v36 = vld [vmem:[#allocation7 + $0x7c8] sm:$0xff]  ;;  %v4849_v0 = vld [vmem:[#allocation7 + $0x6d8] sm:$0xff] }
 0x95d   :  { %9862 = vmatprep.subr.bf16.mxu0 %v9861_v5  ;;  %9870 = vmatprep.subr.bf16.mxu1 %v9869_v40  ;;  %v9891_v40 = vpack.c.bf16 %v4814_v21, %v4782_v20  ;;  %v9893_v9 = vpack.c.bf16 %v4879_v36, %v4847_v28  ;;  %v9901_v44 = vpack.c.bf16 %v4881_v37, %v4849_v0  ;;  %v4852_v21 = vld [vmem:[#allocation7 + $0x6f0] sm:$0xff]  ;;  %v6185_v28 = vld [vmem:[#allocation7 + $0xd18] sm:$0xff]  ;;  %v6150_v37 = vld [vmem:[#allocation7 + $0xc00] sm:$0xff] }
 0x95e   :  { %v10651_v55 = vpop.f32.mrb[6].mxu0  ;;  %v10653_v56 = vpop.f32.mrb[6].mxu1  ;;  %5646 = vmatprep.mubr.f32.mxu0 %v12075_v1  ;;  %5717 = vmatprep.mubr.f32.mxu1 %v12075_v1 }
 0x95f   :  { %v10657_v62 = vpop.f32.mrb[7].mxu0  ;;  %v10659_v63 = vpop.f32.mrb[7].mxu1 }
 0x960   :  { %9864 = vmatpush1.bf16.msra.mxu0 %v9863_v48  ;;  %9872 = vmatpush1.bf16.msra.mxu1 %v9871_v49  ;;  %v4880_v48 = vld [vmem:[#allocation7 + $0x7d0] sm:$0xff]  ;;  %v4787_v49 = vld [vmem:[#allocation7 + $0x4e8] sm:$0xff] }
 0x961   :  { %9874 = vmatprep.subr.bf16.mxu0 %v9873_v50  ;;  %9882 = vmatprep.subr.bf16.mxu1 %v9881_v51  ;;  %v4821_v50 = vld [vmem:[#allocation7 + $0x5f8] sm:$0xff]  ;;  %v9895_v51 = vpack.c.bf16 %v4878_v43, %v4846_v42  ;;  %v9903_v52 = vpack.c.bf16 %v4880_v48, %v4848_v45  ;;  %v9905_v57 = vpack.c.bf16 %v4819_v32, %v4787_v49  ;;  %v6152_v43 = vld [vmem:[#allocation7 + $0xc10] sm:$0xff]  ;;  %v6247_v49 = vld [vmem:[#allocation7 + $0xf08] sm:$0xff] }
 0x962   :  { %v9913_v60 = vpack.c.bf16 %v4821_v50, %v4789_v47  ;;  %v9929_v42 = vpack.c.bf16 %v6185_v28, %v6153_v25  ;;  %v6217_v32 = vld [vmem:[#allocation7 + $0xe18] sm:$0xff] }
 0x963   :  { %9290 = vmatmul.mubr.msk.f32.vlgmr.msra.gmra.mrb[60].mxu0 %vm171_vm3, %v10475_v46  ;;  %9291 = vmatmul.mubr.msk.f32.vlgmr.msra.gmra.mrb[60].mxu1 %vm171_vm3, %v10475_v46  ;;  %v6249_v47 = vld [vmem:[#allocation7 + $0xf18] sm:$0xff] }
 0x964   :  { %9876 = vmatpush1.bf16.msra.mxu0 %v9875_v2  ;;  %9884 = vmatpush1.bf16.msra.mxu1 %v9883_v3  ;;  %v4820_v2 = vld [vmem:[#allocation7 + $0x5f0] sm:$0xff]  ;;  %v4851_v3 = vld [vmem:[#allocation7 + $0x6e8] sm:$0xff] }
 0x965   :  { %9878 = vmatprep.subr.bf16.mxu0 %v9877_v10  ;;  %9886 = vmatprep.subr.bf16.mxu1 %v9885_v11  ;;  %v4883_v10 = vld [vmem:[#allocation7 + $0x7e8] sm:$0xff]  ;;  %v4853_v11 = vld [vmem:[#allocation7 + $0x6f8] sm:$0xff]  ;;  %v9915_v16 = vpack.c.bf16 %v4820_v2, %v4788_v61  ;;  %v9933_v61 = vpack.c.bf16 %v6249_v47, %v6217_v32  ;;  %v6216_v2 = vld [vmem:[#allocation7 + $0xe10] sm:$0xff] }
 0x966   :  { %v10665_v31 = vpop.f32.mrb[8].mxu0  ;;  %v10667_v33 = vpop.f32.mrb[8].mxu1  ;;  %5788 = vmatprep.mubr.f32.mxu0 %v12075_v1  ;;  %5859 = vmatprep.mubr.f32.mxu1 %v12075_v1  ;;  %v9917_v20 = vpack.c.bf16 %v4885_v12, %v4853_v11  ;;  %v6187_v11 = vld [vmem:[#allocation7 + $0xd28] sm:$0xff]  ;;  %v6157_v12 = vld [vmem:[#allocation7 + $0xc38] sm:$0xff]  ;;  %v6220_v47 = vld [vmem:[#allocation7 + $0xe30] sm:$0xff] }
 0x967   :  { %v10671_v39 = vpop.f32.mrb[9].mxu0  ;;  %v10673_v5 = vpop.f32.mrb[9].mxu1 }
 0x968   :  { %9880 = vmatpush1.bf16.msra.mxu0 %v9879_v18  ;;  %9888 = vmatpush1.bf16.msra.mxu1 %v9887_v19  ;;  %v4882_v18 = vld [vmem:[#allocation7 + $0x7e0] sm:$0xff]  ;;  %v9909_v19 = vpack.c.bf16 %v4883_v10, %v4851_v3  ;;  %v6248_v3 = vld [vmem:[#allocation7 + $0xf10] sm:$0xff]  ;;  %v6155_v10 = vld [vmem:[#allocation7 + $0xc28] sm:$0xff] }
 0x969   :  { %9890 = vmatprep.subr.bf16.mxu0 %v9889_v22  ;;  %9898 = vmatprep.subr.bf16.mxu1 %v9897_v23  ;;  %v4884_v22 = vld [vmem:[#allocation7 + $0x7f0] sm:$0xff]  ;;  %v6151_v23 = vld [vmem:[#allocation7 + $0xc08] sm:$0xff]  ;;  %v9911_v36 = vpack.c.bf16 %v4882_v18, %v4850_v17  ;;  %v9935_v17 = vpack.c.bf16 %v6248_v3, %v6216_v2  ;;  %v6154_v18 = vld [vmem:[#allocation7 + $0xc20] sm:$0xff] }
 0x96a   :  { %v9919_v0 = vpack.c.bf16 %v4884_v22, %v4852_v21  ;;  %v6156_v22 = vld [vmem:[#allocation7 + $0xc30] sm:$0xff]  ;;  %v6158_v3 = vld [vmem:[#allocation7 + $0xc40] sm:$0xff] }
 0x96b   :  { %9292 = vmatmul.mubr.msk.f32.vlgmr.msra.gmra.mrb[62].mxu0 %vm171_vm3, %v10475_v46  ;;  %9293 = vmatmul.mubr.msk.f32.vlgmr.msra.gmra.mrb[62].mxu1 %vm171_vm3, %v10475_v46 }
 0x96c   :  { %9892 = vmatpush1.bf16.msra.mxu0 %v9891_v40  ;;  %9900 = vmatpush1.bf16.msra.mxu1 %v9899_v41  ;;  %v6182_v40 = vld [vmem:[#allocation7 + $0xd00] sm:$0xff]  ;;  %v9921_v41 = vpack.c.bf16 %v6183_v24, %v6151_v23  ;;  %v6188_v23 = vld [vmem:[#allocation7 + $0xd30] sm:$0xff]  ;;  %v6219_v24 = vld [vmem:[#allocation7 + $0xe28] sm:$0xff] }
 0x96d   :  { %9894 = vmatprep.subr.bf16.mxu0 %v9893_v9  ;;  %9902 = vmatprep.subr.bf16.mxu1 %v9901_v44  ;;  %v6184_v9 = vld [vmem:[#allocation7 + $0xd10] sm:$0xff]  ;;  %v6215_v44 = vld [vmem:[#allocation7 + $0xe08] sm:$0xff] }
 0x96e   :  { %v10679_v4 = vpop.f32.mrb[10].mxu0  ;;  %v10681_v6 = vpop.f32.mrb[10].mxu1  ;;  %5930 = vmatprep.mubr.f32.mxu0 %v12075_v1  ;;  %6001 = vmatprep.mubr.f32.mxu1 %v12075_v1  ;;  %v9931_v53 = vpack.c.bf16 %v6184_v9, %v6152_v43  ;;  %v9947_v43 = vpack.c.bf16 %v6188_v23, %v6156_v22  ;;  %v6218_v9 = vld [vmem:[#allocation7 + $0xe20] sm:$0xff]  ;;  %v6225_v22 = vld [vmem:[#allocation7 + $0xe58] sm:$0xff] }
 0x96f   :  { %v10685_v13 = vpop.f32.mrb[11].mxu0  ;;  %v10687_v14 = vpop.f32.mrb[11].mxu1  ;;  %v6257_v23 = vld [vmem:[#allocation7 + $0xf58] sm:$0xff] }
 0x970   :  { %12131 = vst [vmem:[#allocation17_spill] sm:$0xff] %v10685_v13  ;;  %12132 = vst [vmem:[#allocation18_spill] sm:$0xff] %v10687_v14  ;;  %9896 = vmatpush1.bf16.msra.mxu0 %v9895_v51  ;;  %9904 = vmatpush1.bf16.msra.mxu1 %v9903_v52  ;;  %v9923_v52 = vpack.c.bf16 %v6182_v40, %v6150_v37  ;;  %v6253_v37 = vld [vmem:[#allocation7 + $0xf38] sm:$0xff] }
 0x971   :  { %9906 = vmatprep.subr.bf16.mxu0 %v9905_v57  ;;  %9914 = vmatprep.subr.bf16.mxu1 %v9913_v60  ;;  %v6246_v57 = vld [vmem:[#allocation7 + $0xf00] sm:$0xff]  ;;  %v9925_v60 = vpack.c.bf16 %v6247_v49, %v6215_v44 }
 0x972   :  { %v6250_v44 = vld [vmem:[#allocation7 + $0xf20] sm:$0xff] }
 0x973   :  { %9294 = vmatmul.mubr.msk.f32.vlgmr.msra.gmra.mrb[64].mxu0 %vm171_vm3, %v10475_v46  ;;  %9295 = vmatmul.mubr.msk.f32.vlgmr.msra.gmra.mrb[64].mxu1 %vm171_vm3, %v10475_v46 }
 0x974   :  { %9908 = vmatpush1.bf16.msra.mxu0 %v9907_v15  ;;  %9916 = vmatpush1.bf16.msra.mxu1 %v9915_v16  ;;  %v6189_v15 = vld [vmem:[#allocation7 + $0xd38] sm:$0xff]  ;;  %v9927_v16 = vpack.c.bf16 %v6246_v57, %v6214_v54  ;;  %v6191_v54 = vld [vmem:[#allocation7 + $0xd48] sm:$0xff] }
 0x975   :  { %9910 = vmatprep.subr.bf16.mxu0 %v9909_v19  ;;  %9918 = vmatprep.subr.bf16.mxu1 %v9917_v20  ;;  %v6186_v19 = vld [vmem:[#allocation7 + $0xd20] sm:$0xff]  ;;  %v9937_v20 = vpack.c.bf16 %v6187_v11, %v6155_v10  ;;  %v9945_v21 = vpack.c.bf16 %v6189_v15, %v6157_v12  ;;  %v6161_v57 = vld [vmem:[#allocation7 + $0xc58] sm:$0xff]  ;;  %v6160_v15 = vld [vmem:[#allocation7 + $0xc50] sm:$0xff] }
 0x976   :  { %v10693_v45 = vpop.f32.mrb[12].mxu0  ;;  %v10695_v48 = vpop.f32.mrb[12].mxu1  ;;  %6072 = vmatprep.mubr.f32.mxu0 %v12075_v1  ;;  %6143 = vmatprep.mubr.f32.mxu1 %v12075_v1  ;;  %v6190_v10 = vld [vmem:[#allocation7 + $0xd40] sm:$0xff] }
 0x977   :  { %12133 = vst [vmem:[#allocation19_spill] sm:$0xff] %v10693_v45  ;;  %12134 = vst [vmem:[#allocation20_spill] sm:$0xff] %v10695_v48  ;;  %v10699_v50 = vpop.f32.mrb[13].mxu0  ;;  %v10701_v51 = vpop.f32.mrb[13].mxu1  ;;  %v6169_v48 = vld [vmem:[#allocation7 + $0xc98] sm:$0xff] }
 0x978   :  { %12135 = vst [vmem:[#allocation21_spill] sm:$0xff] %v10699_v50  ;;  %12136 = vst [vmem:[#allocation22_spill] sm:$0xff] %v10701_v51  ;;  %9912 = vmatpush1.bf16.msra.mxu0 %v9911_v36  ;;  %9920 = vmatpush1.bf16.msra.mxu1 %v9919_v0  ;;  %v6251_v36 = vld [vmem:[#allocation7 + $0xf28] sm:$0xff]  ;;  %v6221_v0 = vld [vmem:[#allocation7 + $0xe38] sm:$0xff] }
 0x979   :  { %9922 = vmatprep.subr.bf16.mxu0 %v9921_v41  ;;  %9930 = vmatprep.subr.bf16.mxu1 %v9929_v42  ;;  %v9939_v42 = vpack.c.bf16 %v6186_v19, %v6154_v18  ;;  %v9941_v49 = vpack.c.bf16 %v6251_v36, %v6219_v24  ;;  %v9949_v32 = vpack.c.bf16 %v6253_v37, %v6221_v0  ;;  %v10721_v18 = vld [vmem:[#allocation7 + $0x1800] sm:$0xff]  ;;  %v10729_v24 = vld [vmem:[#allocation7 + $0x1810] sm:$0xff]  ;;  %v10731_v36 = vld [vmem:[#allocation7 + $0x1808] sm:$0xff] }
 0x97a   :  { %v10733_v0 = vld [vmem:[#allocation7 + $0x1818] sm:$0xff]  ;;  %v6199_v50 = vld [vmem:[#allocation7 + $0xd88] sm:$0xff] }
 0x97b   :  { %9296 = vmatmul.mubr.msk.f32.vlgmr.msra.gmra.mrb[66].mxu0 %vm171_vm3, %v10475_v46  ;;  %9297 = vmatmul.mubr.msk.f32.vlgmr.msra.gmra.mrb[66].mxu1 %vm171_vm3, %v10475_v46  ;;  %v6201_v45 = vld [vmem:[#allocation7 + $0xd98] sm:$0xff] }
 0x97c   :  { %9924 = vmatpush1.bf16.msra.mxu0 %v9923_v52  ;;  %9932 = vmatpush1.bf16.msra.mxu1 %v9931_v53  ;;  %v6252_v52 = vld [vmem:[#allocation7 + $0xf30] sm:$0xff]  ;;  %v6159_v53 = vld [vmem:[#allocation7 + $0xc48] sm:$0xff] }
 0x97d   :  { %9926 = vmatprep.subr.bf16.mxu0 %v9925_v60  ;;  %9934 = vmatprep.subr.bf16.mxu1 %v9933_v61  ;;  %v6193_v60 = vld [vmem:[#allocation7 + $0xd58] sm:$0xff]  ;;  %v9943_v61 = vpack.c.bf16 %v6250_v44, %v6218_v9  ;;  %v9951_v2 = vpack.c.bf16 %v6252_v52, %v6220_v47  ;;  %v9953_v11 = vpack.c.bf16 %v6191_v54, %v6159_v53  ;;  %v10745_v47 = vld [vmem:[#allocation7 + $0x1830] sm:$0xff]  ;;  %v10747_v52 = vld [vmem:[#allocation7 + $0x1828] sm:$0xff] }
 0x97e   :  { %v10707_v25 = vpop.f32.mrb[14].mxu0  ;;  %v10709_v28 = vpop.f32.mrb[14].mxu1  ;;  %6470 = vmatprep.mubr.f32.mxu0 %v12075_v1  ;;  %6541 = vmatprep.mubr.f32.mxu1 %v12075_v1  ;;  %v9961_v12 = vpack.c.bf16 %v6193_v60, %v6161_v57  ;;  %v9955_v9 = vpack.c.bf16 %v6190_v10, %v6158_v3  ;;  %v10749_v53 = vld [vmem:[#allocation7 + $0x1838] sm:$0xff]  ;;  %v9965_v57 = vpack.c.bf16 %v6257_v23, %v6225_v22  ;;  %v6224_v60 = vld [vmem:[#allocation7 + $0xe50] sm:$0xff]  ;;  %v6195_v10 = vld [vmem:[#allocation7 + $0xd68] sm:$0xff] }
 0x97f   :  { %12137 = vst [vmem:[#allocation23_spill] sm:$0xff] %v10707_v25  ;;  %12138 = vst [vmem:[#allocation24_spill] sm:$0xff] %v10709_v28  ;;  %v10713_v40 = vpop.f32.mrb[15].mxu0  ;;  %v10715_v41 = vpop.f32.mrb[15].mxu1  ;;  %v10753_v3 = vld [vmem:[#allocation7 + $0x1850] sm:$0xff]  ;;  %v10820_v25 = vld [vmem:[#allocation7 + $0xc88] sm:$0xff] }
 0x980   :  { %12139 = vst [vmem:[#allocation25_spill] sm:$0xff] %v10713_v40  ;;  %12140 = vst [vmem:[#allocation26_spill] sm:$0xff] %v10715_v41  ;;  %9928 = vmatpush1.bf16.msra.mxu0 %v9927_v16  ;;  %9936 = vmatpush1.bf16.msra.mxu1 %v9935_v17  ;;  %v6192_v16 = vld [vmem:[#allocation7 + $0xd50] sm:$0xff]  ;;  %v6223_v17 = vld [vmem:[#allocation7 + $0xe48] sm:$0xff] }
 0x981   :  { %9938 = vmatprep.subr.bf16.mxu0 %v9937_v20  ;;  %9946 = vmatprep.subr.bf16.mxu1 %v9945_v21  ;;  %v6255_v21 = vld [vmem:[#allocation7 + $0xf48] sm:$0xff]  ;;  %v9963_v44 = vpack.c.bf16 %v6192_v16, %v6160_v15  ;;  %v6165_v15 = vld [vmem:[#allocation7 + $0xc78] sm:$0xff]  ;;  %v10773_v23 = vld [vmem:[#allocation7 + $0x1870] sm:$0xff] }
 0x982   :  { %v9957_v54 = vpack.c.bf16 %v6255_v21, %v6223_v17  ;;  %v6197_v16 = vld [vmem:[#allocation7 + $0xd78] sm:$0xff]  ;;  %v10765_v21 = vld [vmem:[#allocation7 + $0x1860] sm:$0xff]  ;;  %v6164_v22 = vld [vmem:[#allocation7 + $0xc70] sm:$0xff] }
 0x983   :  { %9298 = vmatmul.mubr.msk.f32.vlgmr.msra.gmra.mrb[68].mxu0 %vm171_vm3, %v10475_v46  ;;  %9299 = vmatmul.mubr.msk.f32.vlgmr.msra.gmra.mrb[68].mxu1 %vm171_vm3, %v10475_v46  ;;  %v10763_v17 = vld [vmem:[#allocation7 + $0x1858] sm:$0xff]  ;;  %v10813_v41 = vld [vmem:[#allocation7 + $0xe60] sm:$0xff]  ;;  %v6228_v28 = vld [vmem:[#allocation7 + $0xe70] sm:$0xff] }
 0x984   :  { %9940 = vmatpush1.bf16.msra.mxu0 %v9939_v42  ;;  %9948 = vmatpush1.bf16.msra.mxu1 %v9947_v43  ;;  %v10739_v43 = vld [vmem:[#allocation7 + $0x1820] sm:$0xff] }
 0x985   :  { %9942 = vmatprep.subr.bf16.mxu0 %v9941_v49  ;;  %9950 = vmatprep.subr.bf16.mxu1 %v9949_v32  ;;  %v10741_v49 = vld [vmem:[#allocation7 + $0xe40] sm:$0xff] }
 0x986   :  { %v10723_v19 = vpop.f32.mrb[16].mxu0  ;;  %v10725_v20 = vpop.f32.mrb[16].mxu1  ;;  %6612 = vmatprep.mubr.f32.mxu0 %v12075_v1  ;;  %6683 = vmatprep.mubr.f32.mxu1 %v12075_v1  ;;  %v10743_v32 = vld [vmem:[#allocation7 + $0xf40] sm:$0xff]  ;;  %v6256_v1 = vld [vmem:[#allocation7 + $0xf50] sm:$0xff] }
 0x987   :  { %12141 = vst [vmem:[#allocation27_spill] sm:$0xff] %v10723_v19  ;;  %12142 = vst [vmem:[#allocation28_spill] sm:$0xff] %v10725_v20  ;;  %v10735_v37 = vpop.f32.mrb[17].mxu0  ;;  %v10737_v42 = vpop.f32.mrb[17].mxu1  ;;  %v9967_v59 = vpack.c.bf16 %v6256_v1, %v6224_v60  ;;  %v6196_v20 = vld [vmem:[#allocation7 + $0xd70] sm:$0xff]  ;;  %v10815_v40 = vld [vmem:[#allocation7 + $0xf60] sm:$0xff]  ;;  %v9971_v60 = vpack.c.bf16 %v6194_v38, %v10777_v7  ;;  %v2053_v38 = vrot.slane %v10733_v0, %v10423_v30 }
 0x988   :  { %12143 = vst [vmem:[#allocation29_spill] sm:$0xff] %v10735_v37  ;;  %12144 = vst [vmem:[#allocation30_spill] sm:$0xff] %v10737_v42  ;;  %9944 = vmatpush1.bf16.msra.mxu0 %v9943_v61  ;;  %9952 = vmatpush1.bf16.msra.mxu1 %v9951_v2  ;;  %v6163_v61 = vld [vmem:[#allocation7 + $0xc68] sm:$0xff]  ;;  %v10751_v2 = vld [vmem:[#allocation7 + $0x1840] sm:$0xff]  ;;  %v9975_v7 = vpack.c.bf16 %v10815_v40, %v10813_v41 }
 0x989   :  { %9954 = vmatprep.subr.bf16.mxu0 %v9953_v11  ;;  %9962 = vmatprep.subr.bf16.mxu1 %v9961_v12  ;;  %v10761_v12 = vld [vmem:[#allocation7 + $0x1848] sm:$0xff]  ;;  %v9959_v11 = vpack.c.bf16 %v10743_v32, %v10741_v49  ;;  %v10783_v42 = vld [vmem:[#allocation7 + $0x1878] sm:$0xff]  ;;  %v10785_v37 = vld [vmem:[#allocation7 + $0x1880] sm:$0xff] }
 0x98a   :  { %12145 = vst [vmem:[#allocation31_spill] sm:$0xff] %v10785_v37  ;;  %v6227_v49 = vld [vmem:[#allocation7 + $0xe68] sm:$0xff]  ;;  %v10807_v1 = vld [vmem:[#allocation7 + $0x1890] sm:$0xff]  ;;  %v12152_v37 = vrot.slane %v10721_v18, %v10409_v8  ;;  %v10881_v40 = vld [vmem:[#allocation7 + $0x1898] sm:$0xff] }
 0x98b   :  { %9300 = vmatmul.mubr.msk.f32.vlgmr.msra.gmra.mrb[70].mxu0 %vm171_vm3, %v10475_v46  ;;  %9301 = vmatmul.mubr.msk.f32.vlgmr.msra.gmra.mrb[70].mxu1 %vm171_vm3, %v10475_v46  ;;  %12149 = vst [vmem:[#allocation34_spill] sm:$0xff] %v10807_v1  ;;  %v6260_v32 = vld [vmem:[#allocation7 + $0xf70] sm:$0xff] }
 0x98c   :  { %9956 = vmatpush1.bf16.msra.mxu0 %v9955_v9  ;;  %9964 = vmatpush1.bf16.msra.mxu1 %v9963_v44  ;;  %v9969_v9 = vpack.c.bf16 %v6195_v10, %v6163_v61  ;;  %v9977_v44 = vpack.c.bf16 %v6197_v16, %v6165_v15  ;;  %v6229_v61 = vld [vmem:[#allocation7 + $0xe78] sm:$0xff]  ;;  %v9979_v16 = vpack.c.bf16 %v6196_v20, %v6164_v22  ;;  %v10834_v22 = vld [vmem:[#allocation7 + $0xd80] sm:$0xff]  ;;  %v10852_v20 = vld [vmem:[#allocation7 + $0xf88] sm:$0xff] }
 0x98d   :  { %9958 = vmatprep.subr.bf16.mxu0 %v9957_v54  ;;  %9966 = vmatprep.subr.bf16.mxu1 %v9965_v57  ;;  %v12148_v54 = vmov 0.0   ;;  %v6259_v57 = vld [vmem:[#allocation7 + $0xf68] sm:$0xff]  ;;  %v6261_v10 = vld [vmem:[#allocation7 + $0xf78] sm:$0xff]  ;;  %v9993_v15 = vpack.c.bf16 %v6201_v45, %v6169_v48 }
 0x98e   :  { %v10793_v29 = vpop.f32.mrb[18].mxu0  ;;  %v10795_v19 = vpop.f32.mrb[18].mxu1  ;;  %6754 = vmatprep.mubr.f32.mxu0 %v12148_v54  ;;  %6825 = vmatprep.mubr.f32.mxu1 %v12148_v54  ;;  %v9981_v51 = vpack.c.bf16 %v6261_v10, %v6229_v61  ;;  %v10848_v61 = vld [vmem:[#allocation7 + $0xd90] sm:$0xff]  ;;  %v10850_v10 = vld [vmem:[#allocation7 + $0xe88] sm:$0xff]  ;;  %v6233_v48 = vld [vmem:[#allocation7 + $0xe98] sm:$0xff] }
 0x98f   :  { %12146 = vst [vmem:[#allocation32_spill] sm:$0xff] %v10793_v29  ;;  %12147 = vst [vmem:[#allocation33_spill] sm:$0xff] %v10795_v19  ;;  %v10809_v19 = vpop.f32.mrb[19].mxu0  ;;  %v10811_v29 = vpop.f32.mrb[19].mxu1  ;;  %v9989_v45 = vpack.c.bf16 %v10852_v20, %v10850_v10  ;;  %v10885_v20 = vld [vmem:[#allocation7 + $0xf80] sm:$0xff]  ;;  %v6173_v10 = vld [vmem:[#allocation7 + $0xcb8] sm:$0xff] }
 0x990   :  { %12150 = vst [vmem:[#allocation35_spill] sm:$0xff] %v10809_v19  ;;  %12151 = vst [vmem:[#allocation36_spill] sm:$0xff] %v10811_v29  ;;  %9960 = vmatpush1.bf16.msra.mxu0 %v9959_v11  ;;  %9968 = vmatpush1.bf16.msra.mxu1 %v9967_v59  ;;  %v9973_v29 = vpack.c.bf16 %v6259_v57, %v6227_v49  ;;  %v10832_v11 = vld [vmem:[#allocation7 + $0xc80] sm:$0xff]  ;;  %v2049_v49 = vrot.slane %v10729_v24, %v10423_v30 }
 0x991   :  { %9970 = vmatprep.subr.bf16.mxu0 %v9969_v9  ;;  %9978 = vmatprep.subr.bf16.mxu1 %v9977_v44  ;;  %v10836_v9 = vld [vmem:[#allocation7 + $0xc90] sm:$0xff]  ;;  %v2041_v44 = vrot.slane %v10721_v18, %v10423_v30  ;;  %v2045_v57 = vrot.slane %v10731_v36, %v10423_v30  ;;  %v9983_v59 = vpack.c.bf16 %v6260_v32, %v6228_v28 }
 0x992   :  { %v9985_v19 = vpack.c.bf16 %v6199_v50, %v10820_v25  ;;  %v9987_v1 = vpack.c.bf16 %v10834_v22, %v10832_v11  ;;  %v6265_v50 = vld [vmem:[#allocation7 + $0xf98] sm:$0xff]  ;;  %v12154_v25 = vrot.slane %v10731_v36, %v10409_v8  ;;  %v10883_v11 = vld [vmem:[#allocation7 + $0xe80] sm:$0xff]  ;;  %v6264_v36 = vld [vmem:[#allocation7 + $0xf90] sm:$0xff] }
 0x993   :  { %9302 = vmatmul.mubr.msk.f32.vlgmr.msra.gmra.mrb[72].mxu0 %vm171_vm3, %v10475_v46  ;;  %9303 = vmatmul.mubr.msk.f32.vlgmr.msra.gmra.mrb[72].mxu1 %vm171_vm3, %v10475_v46 }
 0x994   :  { %9972 = vmatpush1.bf16.msra.mxu0 %v9971_v60  ;;  %9980 = vmatpush1.bf16.msra.mxu1 %v9979_v16  ;;  %v841_v60 = vadd.f32 %v10637_v26, %v12152_v37  ;;  %v10865_v16 = vld [vmem:[#allocation7 + $0x1888] sm:$0xff]  ;;  %v843_v28 = vadd.f32 %v10643_v34, %v12154_v25  ;;  %v6232_v34 = vld [vmem:[#allocation7 + $0xe90] sm:$0xff] }
 0x995   :  { %9974 = vmatprep.subr.bf16.mxu0 %v9973_v29  ;;  %9982 = vmatprep.subr.bf16.mxu1 %v9981_v51  ;;  %v9995_v29 = vpack.c.bf16 %v10848_v61, %v10836_v9  ;;  %v12153_v51 = vrot.slane %v10729_v24, %v10409_v8  ;;  %v12155_v24 = vrot.slane %v10733_v0, %v10409_v8  ;;  %v10891_v61 = vld [vmem:[#allocation7 + $0xca8] sm:$0xff]  ;;  %v6205_v0 = vld [vmem:[#allocation7 + $0xdb8] sm:$0xff] }
 0x996   :  { %v2232_v14 = vpop.f32.mrb[20].mxu0  ;;  %v2303_v13 = vpop.f32.mrb[20].mxu1  ;;  %6896 = vmatprep.mubr.f32.mxu0 %v12148_v54  ;;  %6967 = vmatprep.mubr.f32.mxu1 %v12148_v54  ;;  %v10925_v25 = vld [vmem:[#allocation7 + $0xfa8] sm:$0xff] }
 0x997   :  { %v912_v26 = vadd.f32 %v10639_v27, %v12153_v51  ;;  %v2233_v41 = vadd.f32 %v2232_v14, %v2041_v44  ;;  %v2304_v18 = vadd.f32 %v2303_v13, %v2049_v49  ;;  %v2234_v37 = vpop.f32.mrb[21].mxu0  ;;  %v2305_v32 = vpop.f32.mrb[21].mxu1  ;;  %v914_v27 = vadd.f32 %v10645_v35, %v12155_v24  ;;  %v6203_v49 = vld [vmem:[#allocation7 + $0xda8] sm:$0xff]  ;;  %v10921_v51 = vld [vmem:[#allocation7 + $0xdb0] sm:$0xff] }
 0x998   :  { %v2235_v22 = vadd.f32 %v2234_v37, %v2045_v57  ;;  %v2306_v9 = vadd.f32 %v2305_v32, %v2053_v38  ;;  %9976 = vmatpush1.bf16.msra.mxu0 %v9975_v7  ;;  %9984 = vmatpush1.bf16.msra.mxu1 %v9983_v59  ;;  %v9997_v44 = vpack.c.bf16 %v6265_v50, %v6233_v48  ;;  %v10905_v57 = vld [vmem:[#allocation7 + $0xca0] sm:$0xff] }
 0x999   :  { %v10893_v13 = vmul.f32 %v2233_v41, %v841_v60  ;;  %v10895_v14 = vmul.f32 %v2304_v18, %v912_v26  ;;  %9986 = vmatprep.subr.bf16.mxu0 %v9985_v19  ;;  %9994 = vmatprep.subr.bf16.mxu1 %v9993_v15  ;;  %v714_v35 = vrot.slane %v10865_v16, %v10409_v8  ;;  %v10907_v60 = vld [vmem:[#allocation7 + $0xda0] sm:$0xff]  ;;  %v10909_v19 = vld [vmem:[#allocation7 + $0xcb0] sm:$0xff]  ;;  %v10923_v26 = vld [vmem:[#allocation7 + $0xea8] sm:$0xff] }
 0x99a   :  { %v722_v59 = vrot.slane %v10881_v40, %v10409_v8  ;;  %v10901_v7 = vmul.f32 %v2235_v22, %v843_v28  ;;  %v10903_v38 = vmul.f32 %v2306_v9, %v914_v27  ;;  %v2057_v15 = vrot.slane %v10739_v43, %v10423_v30 }
 0x99b   :  { %9304 = vmatmul.mubr.msk.f32.vlgmr.msra.gmra.mrb[74].mxu0 %vm171_vm3, %v10475_v46  ;;  %9305 = vmatmul.mubr.msk.f32.vlgmr.msra.gmra.mrb[74].mxu1 %vm171_vm3, %v10475_v46  ;;  %v2065_v48 = vrot.slane %v10745_v47, %v10423_v30  ;;  %v2061_v50 = vrot.slane %v10747_v52, %v10423_v30  ;;  %v2069_v28 = vrot.slane %v10749_v53, %v10423_v30 }
 0x99c   :  { %9988 = vmatpush1.bf16.msra.mxu0 %v9987_v1  ;;  %9996 = vmatpush1.bf16.msra.mxu1 %v9995_v29  ;;  %v9991_v41 = vpack.c.bf16 %v10885_v20, %v10883_v11  ;;  %v9999_v18 = vpack.c.bf16 %v6264_v36, %v6232_v34  ;;  %v10001_v37 = vpack.c.bf16 %v6203_v49, %v10891_v61  ;;  %v10938_v29 = vld [vmem:[#allocation7 + $0x18a0] sm:$0xff]  ;;  %v6237_v20 = vld [vmem:[#allocation7 + $0xeb8] sm:$0xff] }
 0x99d   :  { %9990 = vmatprep.subr.bf16.mxu0 %v9989_v45  ;;  %9998 = vmatprep.subr.bf16.mxu1 %v9997_v44  ;;  %v10009_v32 = vpack.c.bf16 %v6205_v0, %v6173_v10  ;;  %v10003_v24 = vpack.c.bf16 %v10907_v60, %v10905_v57  ;;  %v12156_v27 = vrot.slane %v10739_v43, %v10409_v8  ;;  %v6269_v34 = vld [vmem:[#allocation7 + $0xfb8] sm:$0xff]  ;;  %v10954_v44 = vld [vmem:[#allocation7 + $0x18b0] sm:$0xff]  ;;  %v10956_v60 = vld [vmem:[#allocation7 + $0xea0] sm:$0xff] }
 0x99e   :  { %v2374_v22 = vpop.f32.mrb[22].mxu0  ;;  %v2445_v9 = vpop.f32.mrb[22].mxu1  ;;  %7038 = vmatprep.mubr.f32.mxu0 %v12148_v54  ;;  %7109 = vmatprep.mubr.f32.mxu1 %v12148_v54  ;;  %v10011_v45 = vpack.c.bf16 %v10921_v51, %v10909_v19  ;;  %v10005_v11 = vpack.c.bf16 %v10925_v25, %v10923_v26  ;;  %v12157_v43 = vrot.slane %v10745_v47, %v10409_v8  ;;  %v10958_v19 = vld [vmem:[#allocation7 + $0xfa0] sm:$0xff]  ;;  %v10964_v25 = vld [vmem:[#allocation7 + $0xcc8] sm:$0xff] }
 0x99f   :  { %v983_v1 = vadd.f32 %v10651_v55, %v12156_v27  ;;  %v12158_v36 = vrot.slane %v10747_v52, %v10409_v8  ;;  %v2375_v49 = vadd.f32 %v2374_v22, %v2057_v15  ;;  %v2446_v10 = vadd.f32 %v2445_v9, %v2065_v48  ;;  %v2376_v0 = vpop.f32.mrb[23].mxu0  ;;  %v2447_v57 = vpop.f32.mrb[23].mxu1  ;;  %v6268_v52 = vld [vmem:[#allocation7 + $0xfb0] sm:$0xff]  ;;  %v6207_v22 = vld [vmem:[#allocation7 + $0xdc8] sm:$0xff]  ;;  %v6177_v9 = vld [vmem:[#allocation7 + $0xcd8] sm:$0xff] }
 0x9a0   :  { %v1054_v55 = vadd.f32 %v10653_v56, %v12157_v43  ;;  %v12159_v47 = vrot.slane %v10749_v53, %v10409_v8  ;;  %v2377_v51 = vadd.f32 %v2376_v0, %v2061_v50  ;;  %v2448_v26 = vadd.f32 %v2447_v57, %v2069_v28  ;;  %9992 = vmatpush1.bf16.msra.mxu0 %v9991_v41  ;;  %v6209_v53 = vld [vmem:[#allocation7 + $0xdd8] sm:$0xff]  ;;  %v10994_v43 = vld [vmem:[#allocation7 + $0xdd0] sm:$0xff] }
 0x9a1   :  { %v985_v61 = vadd.f32 %v10657_v62, %v12158_v36  ;;  %10000 = vmatpush1.bf16.msra.mxu1 %v9999_v18  ;;  %v6236_v62 = vld [vmem:[#allocation7 + $0xeb0] sm:$0xff]  ;;  %v10966_v15 = vmul.f32 %v2375_v49, %v983_v1  ;;  %10002 = vmatprep.subr.bf16.mxu0 %v10001_v37  ;;  %v10013_v27 = vpack.c.bf16 %v6269_v34, %v6237_v20  ;;  %v10978_v18 = vld [vmem:[#allocation7 + $0xcc0] sm:$0xff]  ;;  %v10998_v36 = vld [vmem:[#allocation7 + $0xfc8] sm:$0xff] }
 0x9a2   :  { %v1056_v56 = vadd.f32 %v10659_v63, %v12159_v47  ;;  %v10968_v48 = vmul.f32 %v2446_v10, %v1054_v55  ;;  %10010 = vmatprep.subr.bf16.mxu1 %v10009_v32  ;;  %v726_v63 = vrot.slane %v10938_v29, %v10409_v8  ;;  %v10980_v1 = vld [vmem:[#allocation7 + $0xdc0] sm:$0xff]  ;;  %v10982_v37 = vld [vmem:[#allocation7 + $0xcd0] sm:$0xff]  ;;  %v2073_v32 = vrot.slane %v10751_v2, %v10423_v30  ;;  %v10996_v55 = vld [vmem:[#allocation7 + $0xec8] sm:$0xff] }
 0x9a3   :  { %v10974_v28 = vmul.f32 %v2377_v51, %v985_v61  ;;  %9306 = vmatmul.mubr.msk.f32.vlgmr.msra.gmra.mrb[76].mxu0 %vm171_vm3, %v10475_v46  ;;  %v2081_v20 = vrot.slane %v10753_v3, %v10423_v30  ;;  %v2077_v34 = vrot.slane %v10761_v12, %v10423_v30  ;;  %v2085_v61 = vrot.slane %v10763_v17, %v10423_v30 }
 0x9a4   :  { %v10976_v41 = vmul.f32 %v2448_v26, %v1056_v56  ;;  %9307 = vmatmul.mubr.msk.f32.vlgmr.msra.gmra.mrb[76].mxu1 %vm171_vm3, %v10475_v46  ;;  %10004 = vmatpush1.bf16.msra.mxu0 %v10003_v24  ;;  %v10007_v49 = vpack.c.bf16 %v10958_v19, %v10956_v60  ;;  %v10015_v10 = vpack.c.bf16 %v6268_v52, %v6236_v62  ;;  %v6241_v19 = vld [vmem:[#allocation7 + $0xed8] sm:$0xff] }
 0x9a5   :  { %10012 = vmatpush1.bf16.msra.mxu1 %v10011_v45  ;;  %10006 = vmatprep.subr.bf16.mxu0 %v10005_v11  ;;  %v10017_v0 = vpack.c.bf16 %v6207_v22, %v10964_v25  ;;  %v10025_v57 = vpack.c.bf16 %v6209_v53, %v6177_v9  ;;  %v10019_v47 = vpack.c.bf16 %v10980_v1, %v10978_v18  ;;  %v11011_v45 = vld [vmem:[#allocation7 + $0x18a8] sm:$0xff]  ;;  %v6273_v62 = vld [vmem:[#allocation7 + $0xfd8] sm:$0xff]  ;;  %v11029_v1 = vld [vmem:[#allocation7 + $0xec0] sm:$0xff] }
 0x9a6   :  { %10014 = vmatprep.subr.bf16.mxu1 %v10013_v27  ;;  %v12160_v56 = vrot.slane %v10751_v2, %v10409_v8  ;;  %v2516_v51 = vpop.f32.mrb[24].mxu0  ;;  %v2587_v26 = vpop.f32.mrb[24].mxu1  ;;  %7180 = vmatprep.mubr.f32.mxu0 %v12148_v54  ;;  %v10027_v11 = vpack.c.bf16 %v10994_v43, %v10982_v37  ;;  %v10021_v60 = vpack.c.bf16 %v10998_v36, %v10996_v55  ;;  %v11027_v27 = vld [vmem:[#allocation7 + $0x18b8] sm:$0xff]  ;;  %v11031_v37 = vld [vmem:[#allocation7 + $0xfc0] sm:$0xff]  ;;  %v11037_v36 = vld [vmem:[#allocation7 + $0xce8] sm:$0xff] }
 0x9a7   :  { %7251 = vmatprep.mubr.f32.mxu1 %v12148_v54  ;;  %v12161_v2 = vrot.slane %v10753_v3, %v10409_v8  ;;  %v12162_v52 = vrot.slane %v10761_v12, %v10409_v8  ;;  %v2517_v22 = vadd.f32 %v2516_v51, %v2073_v32  ;;  %v2588_v9 = vadd.f32 %v2587_v26, %v2081_v20  ;;  %v2518_v53 = vpop.f32.mrb[25].mxu0  ;;  %v2589_v18 = vpop.f32.mrb[25].mxu1  ;;  %v6272_v12 = vld [vmem:[#allocation7 + $0xfd0] sm:$0xff]  ;;  %v6211_v51 = vld [vmem:[#allocation7 + $0xde8] sm:$0xff]  ;;  %v6181_v26 = vld [vmem:[#allocation7 + $0xcf8] sm:$0xff] }
 0x9a8   :  { %v1125_v24 = vadd.f32 %v10665_v31, %v12160_v56  ;;  %v12163_v3 = vrot.slane %v10763_v17, %v10409_v8  ;;  %v2519_v43 = vadd.f32 %v2518_v53, %v2077_v34  ;;  %v2590_v55 = vadd.f32 %v2589_v18, %v2085_v61  ;;  %10008 = vmatpush1.bf16.msra.mxu0 %v10007_v49  ;;  %v6213_v17 = vld [vmem:[#allocation7 + $0xdf8] sm:$0xff]  ;;  %v11157_v34 = vld [vmem:[#allocation7 + $0x18c8] sm:$0xff] }
 0x9a9   :  { %v1196_v31 = vadd.f32 %v10667_v33, %v12161_v2  ;;  %v1127_v25 = vadd.f32 %v10671_v39, %v12162_v52  ;;  %10016 = vmatpush1.bf16.msra.mxu1 %v10015_v10  ;;  %v6240_v39 = vld [vmem:[#allocation7 + $0xed0] sm:$0xff]  ;;  %10018 = vmatprep.subr.bf16.mxu0 %v10017_v0  ;;  %v10029_v56 = vpack.c.bf16 %v6273_v62, %v6241_v19  ;;  %v11051_v10 = vld [vmem:[#allocation7 + $0xce0] sm:$0xff]  ;;  %v11071_v52 = vld [vmem:[#allocation7 + $0xfe8] sm:$0xff] }
 0x9aa   :  { %v1198_v33 = vadd.f32 %v10673_v5, %v12163_v3  ;;  %v11039_v32 = vmul.f32 %v2517_v22, %v1125_v24  ;;  %10026 = vmatprep.subr.bf16.mxu1 %v10025_v57  ;;  %v11053_v24 = vld [vmem:[#allocation7 + $0xde0] sm:$0xff]  ;;  %v11055_v0 = vld [vmem:[#allocation7 + $0xcf0] sm:$0xff]  ;;  %v2089_v57 = vrot.slane %v10765_v21, %v10423_v30  ;;  %v2097_v19 = vrot.slane %v10773_v23, %v10423_v30 }
 0x9ab   :  { %v11041_v20 = vmul.f32 %v2588_v9, %v1196_v31  ;;  %v11047_v61 = vmul.f32 %v2519_v43, %v1127_v25  ;;  %9308 = vmatmul.mubr.msk.f32.vlgmr.msra.gmra.mrb[78].mxu0 %vm171_vm3, %v10475_v46  ;;  %v2093_v62 = vrot.slane %v10781_v58, %v10423_v30  ;;  %v11067_v2 = vld [vmem:[#allocation7 + $0xdf0] sm:$0xff]  ;;  %v11069_v31 = vld [vmem:[#allocation7 + $0xee8] sm:$0xff]  ;;  %v2101_v25 = vrot.slane %v10783_v42, %v10423_v30 }
 0x9ac   :  { %v11049_v49 = vmul.f32 %v2590_v55, %v1198_v33  ;;  %9309 = vmatmul.mubr.msk.f32.vlgmr.msra.gmra.mrb[78].mxu1 %vm171_vm3, %v10475_v46  ;;  %10020 = vmatpush1.bf16.msra.mxu0 %v10019_v47  ;;  %v10023_v22 = vpack.c.bf16 %v11031_v37, %v11029_v1  ;;  %v10031_v9 = vpack.c.bf16 %v6272_v12, %v6240_v39  ;;  %v6245_v37 = vld [vmem:[#allocation7 + $0xef8] sm:$0xff] }
 0x9ad   :  { %10028 = vmatpush1.bf16.msra.mxu1 %v10027_v11  ;;  %10022 = vmatprep.subr.bf16.mxu0 %v10021_v60  ;;  %v10033_v53 = vpack.c.bf16 %v6211_v51, %v11037_v36  ;;  %v10041_v18 = vpack.c.bf16 %v6213_v17, %v6181_v26  ;;  %v10035_v3 = vpack.c.bf16 %v11053_v24, %v11051_v10  ;;  %v11084_v11 = vld [vmem:[#allocation7 + $0x18c0] sm:$0xff]  ;;  %v6277_v39 = vld [vmem:[#allocation7 + $0xff8] sm:$0xff]  ;;  %v12167_v36 = vld [vmem:[#allocation17_spill] sm:$0xff] }
 0x9ae   :  { %10030 = vmatprep.subr.bf16.mxu1 %v10029_v56  ;;  %v12164_v33 = vrot.slane %v10765_v21, %v10409_v8  ;;  %v2658_v43 = vpop.f32.mrb[26].mxu0  ;;  %v2729_v55 = vpop.f32.mrb[26].mxu1  ;;  %7322 = vmatprep.mubr.f32.mxu0 %v12148_v54  ;;  %v10043_v60 = vpack.c.bf16 %v11067_v2, %v11055_v0  ;;  %v10037_v1 = vpack.c.bf16 %v11071_v52, %v11069_v31  ;;  %v11100_v51 = vld [vmem:[#allocation7 + $0x18d0] sm:$0xff]  ;;  %v11102_v0 = vld [vmem:[#allocation7 + $0xee0] sm:$0xff] }
 0x9af   :  { %7393 = vmatprep.mubr.f32.mxu1 %v12148_v54  ;;  %v12165_v21 = vrot.slane %v10773_v23, %v10409_v8  ;;  %v12166_v12 = vrot.slane %v10781_v58, %v10409_v8  ;;  %v2659_v26 = vadd.f32 %v2658_v43, %v2089_v57  ;;  %v2730_v17 = vadd.f32 %v2729_v55, %v2097_v19  ;;  %v2660_v10 = vpop.f32.mrb[27].mxu0  ;;  %v2731_v24 = vpop.f32.mrb[27].mxu1  ;;  %v11104_v2 = vld [vmem:[#allocation7 + $0xfe0] sm:$0xff]  ;;  %v12169_v31 = vld [vmem:[#allocation18_spill] sm:$0xff]  ;;  %v7607_v55 = vld [vmem:[#allocation7 + $0x1508] sm:$0xff] }
 0x9b0   :  { %v1267_v47 = vadd.f32 %v10679_v4, %v12164_v33  ;;  %v12168_v23 = vrot.slane %v10783_v42, %v10409_v8  ;;  %v2661_v52 = vadd.f32 %v2660_v10, %v2093_v62  ;;  %v2732_v33 = vadd.f32 %v2731_v24, %v2101_v25  ;;  %10024 = vmatpush1.bf16.msra.mxu0 %v10023_v22  ;;  %v6244_v58 = vld [vmem:[#allocation7 + $0xef0] sm:$0xff]  ;;  %v7609_v42 = vld [vmem:[#allocation7 + $0x1518] sm:$0xff]  ;;  %v11142_v10 = vld [vmem:[#allocation7 + $0x1608] sm:$0xff] }
 0x9b1   :  { %v1338_v4 = vadd.f32 %v10681_v6, %v12165_v21  ;;  %v1269_v56 = vadd.f32 %v12167_v36, %v12166_v12  ;;  %10032 = vmatpush1.bf16.msra.mxu1 %v10031_v9  ;;  %v6276_v21 = vld [vmem:[#allocation7 + $0xff0] sm:$0xff]  ;;  %v11110_v12 = vld [vmem:[#allocation7 + $0x1408] sm:$0xff]  ;;  %10034 = vmatprep.subr.bf16.mxu0 %v10033_v53  ;;  %v10045_v43 = vpack.c.bf16 %v6277_v39, %v6245_v37  ;;  %v7577_v36 = vld [vmem:[#allocation7 + $0x1418] sm:$0xff] }
 0x9b2   :  { %v1340_v6 = vadd.f32 %v12169_v31, %v12168_v23  ;;  %v11112_v57 = vmul.f32 %v2659_v26, %v1267_v47  ;;  %10042 = vmatprep.subr.bf16.mxu1 %v10041_v18  ;;  %v11124_v47 = vld [vmem:[#allocation7 + $0x1400] sm:$0xff]  ;;  %v11128_v53 = vld [vmem:[#allocation7 + $0x1410] sm:$0xff]  ;;  %v12170_v18 = vld [vmem:[#allocation31_spill] sm:$0xff]  ;;  %v2109_v26 = vrot.slane %v10865_v16, %v10423_v30  ;;  %v2117_v23 = vrot.slane %v10881_v40, %v10423_v30 }
 0x9b3   :  { %v11114_v19 = vmul.f32 %v2730_v17, %v1338_v4  ;;  %v11120_v22 = vmul.f32 %v2661_v52, %v1269_v56  ;;  %v11126_v4 = vld [vmem:[#allocation7 + $0x1500] sm:$0xff]  ;;  %9310 = vmatmul.mubr.msk.f32.vlgmr.msra.gmra.mrb[80].mxu0 %vm171_vm3, %v10475_v46  ;;  %v2105_v37 = vrot.slane %v12170_v18, %v10423_v30  ;;  %v12171_v39 = vld [vmem:[#allocation34_spill] sm:$0xff]  ;;  %v11144_v24 = vld [vmem:[#allocation7 + $0x1708] sm:$0xff]  ;;  %v10039_v31 = vpack.c.bf16 %v11104_v2, %v11102_v0 }
 0x9b4   :  { %v11122_v9 = vmul.f32 %v2732_v33, %v1340_v6  ;;  %9311 = vmatmul.mubr.msk.f32.vlgmr.msra.gmra.mrb[80].mxu1 %vm171_vm3, %v10475_v46  ;;  %v2113_v56 = vrot.slane %v12171_v39, %v10423_v30  ;;  %v11140_v17 = vld [vmem:[#allocation7 + $0x1510] sm:$0xff]  ;;  %10036 = vmatpush1.bf16.msra.mxu0 %v10035_v3  ;;  %v10047_v6 = vpack.c.bf16 %v6276_v21, %v6244_v58  ;;  %v12173_v3 = vld [vmem:[#allocation19_spill] sm:$0xff] }
 0x9b5   :  { %10044 = vmatpush1.bf16.msra.mxu1 %v10043_v60  ;;  %10038 = vmatprep.subr.bf16.mxu0 %v10037_v1  ;;  %v10049_v52 = vpack.c.bf16 %v7607_v55, %v11110_v12  ;;  %v10057_v33 = vpack.c.bf16 %v7609_v42, %v7577_v36  ;;  %v10051_v25 = vpack.c.bf16 %v11126_v4, %v11124_v47  ;;  %v7641_v2 = vld [vmem:[#allocation7 + $0x1618] sm:$0xff]  ;;  %v12176_v12 = vld [vmem:[#allocation20_spill] sm:$0xff]  ;;  %v12177_v55 = vld [vmem:[#allocation21_spill] sm:$0xff] }
 0x9b6   :  { %10046 = vmatprep.subr.bf16.mxu1 %v10045_v43  ;;  %v12172_v62 = vrot.slane %v12170_v18, %v10409_v8  ;;  %12174 = vst [vmem:[#allocation17_spill] sm:$0xff] %v11157_v34  ;;  %v2800_v5 = vpop.f32.mrb[28].mxu0  ;;  %v2871_v50 = vpop.f32.mrb[28].mxu1  ;;  %7464 = vmatprep.mubr.f32.mxu0 %v12148_v54  ;;  %v10059_v1 = vpack.c.bf16 %v11140_v17, %v11128_v53  ;;  %v7673_v58 = vld [vmem:[#allocation7 + $0x1718] sm:$0xff]  ;;  %v11175_v18 = vld [vmem:[#allocation7 + $0x1600] sm:$0xff]  ;;  %v7640_v16 = vld [vmem:[#allocation7 + $0x1610] sm:$0xff] }
 0x9b7   :  { %7535 = vmatprep.mubr.f32.mxu1 %v12148_v54  ;;  %v10053_v0 = vpack.c.bf16 %v11144_v24, %v11142_v10  ;;  %v12175_v21 = vrot.slane %v12171_v39, %v10409_v8  ;;  %v1411_v36 = vadd.f32 %v12177_v55, %v714_v35  ;;  %v11173_v42 = vld [vmem:[#allocation7 + $0x18d8] sm:$0xff]  ;;  %v2872_v47 = vadd.f32 %v2871_v50, %v2113_v56  ;;  %v2802_v4 = vpop.f32.mrb[29].mxu0  ;;  %v2873_v53 = vpop.f32.mrb[29].mxu1  ;;  %v11177_v17 = vld [vmem:[#allocation7 + $0x1700] sm:$0xff]  ;;  %v12178_v39 = vld [vmem:[#allocation22_spill] sm:$0xff] }
 0x9b8   :  { %v1409_v60 = vadd.f32 %v12173_v3, %v12172_v62  ;;  %v2801_v62 = vadd.f32 %v2800_v5, %v2105_v37  ;;  %v1482_v10 = vadd.f32 %v12178_v39, %v722_v59  ;;  %v2803_v24 = vadd.f32 %v2802_v4, %v2109_v26  ;;  %10040 = vmatpush1.bf16.msra.mxu0 %v10039_v31  ;;  %v7672_v35 = vld [vmem:[#allocation7 + $0x1710] sm:$0xff]  ;;  %v7611_v56 = vld [vmem:[#allocation7 + $0x1528] sm:$0xff]  ;;  %v7613_v40 = vld [vmem:[#allocation7 + $0x1538] sm:$0xff] }
 0x9b9   :  { %v1480_v43 = vadd.f32 %v12176_v12, %v12175_v21  ;;  %v2874_v3 = vadd.f32 %v2873_v53, %v2117_v23  ;;  %10048 = vmatpush1.bf16.msra.mxu1 %v10047_v6  ;;  %v11183_v21 = vld [vmem:[#allocation7 + $0x1428] sm:$0xff]  ;;  %10050 = vmatprep.subr.bf16.mxu0 %v10049_v52  ;;  %v10061_v37 = vpack.c.bf16 %v7673_v58, %v7641_v2  ;;  %v7581_v12 = vld [vmem:[#allocation7 + $0x1438] sm:$0xff]  ;;  %v11197_v6 = vld [vmem:[#allocation7 + $0x1420] sm:$0xff] }
 0x9ba   :  { %v11185_v50 = vmul.f32 %v2801_v62, %v1409_v60  ;;  %10058 = vmatprep.subr.bf16.mxu1 %v10057_v33  ;;  %v11193_v23 = vmul.f32 %v2803_v24, %v1411_v36  ;;  %v11199_v60 = vld [vmem:[#allocation7 + $0x1520] sm:$0xff]  ;;  %v11201_v52 = vld [vmem:[#allocation7 + $0x1430] sm:$0xff]  ;;  %v2121_v33 = vrot.slane %v10938_v29, %v10423_v30  ;;  %v2129_v2 = vrot.slane %v10954_v44, %v10423_v30  ;;  %v11215_v55 = vld [vmem:[#allocation7 + $0x1628] sm:$0xff] }
 0x9bb   :  { %v11187_v5 = vmul.f32 %v2872_v47, %v1480_v43  ;;  %v11195_v31 = vmul.f32 %v2874_v3, %v1482_v10  ;;  %9312 = vmatmul.mubr.msk.f32.vlgmr.msra.gmra.mrb[82].mxu0 %vm171_vm3, %v10475_v46  ;;  %v2125_v58 = vrot.slane %v11011_v45, %v10423_v30  ;;  %v11213_v43 = vld [vmem:[#allocation7 + $0x1530] sm:$0xff]  ;;  %v11217_v36 = vld [vmem:[#allocation7 + $0x1728] sm:$0xff]  ;;  %v2133_v62 = vrot.slane %v11027_v27, %v10423_v30  ;;  %v11230_v24 = vld [vmem:[#allocation7 + $0x18e0] sm:$0xff] }
 0x9bc   :  { %9313 = vmatmul.mubr.msk.f32.vlgmr.msra.gmra.mrb[82].mxu1 %vm171_vm3, %v10475_v46  ;;  %10052 = vmatpush1.bf16.msra.mxu0 %v10051_v25  ;;  %v10055_v47 = vpack.c.bf16 %v11177_v17, %v11175_v18  ;;  %v10063_v4 = vpack.c.bf16 %v7672_v35, %v7640_v16  ;;  %v10065_v53 = vpack.c.bf16 %v7611_v56, %v11183_v21  ;;  %v12179_v25 = vld [vmem:[#allocation23_spill] sm:$0xff] }
 0x9bd   :  { %10060 = vmatpush1.bf16.msra.mxu1 %v10059_v1  ;;  %10054 = vmatprep.subr.bf16.mxu0 %v10053_v0  ;;  %v10073_v39 = vpack.c.bf16 %v7613_v40, %v7581_v12  ;;  %v10067_v10 = vpack.c.bf16 %v11199_v60, %v11197_v6  ;;  %v1551_v1 = vadd.f32 %v12179_v25, %v726_v63  ;;  %v7645_v17 = vld [vmem:[#allocation7 + $0x1638] sm:$0xff]  ;;  %v12181_v63 = vld [vmem:[#allocation24_spill] sm:$0xff]  ;;  %v11246_v12 = vld [vmem:[#allocation7 + $0x18f0] sm:$0xff] }
 0x9be   :  { %10062 = vmatprep.subr.bf16.mxu1 %v10061_v37  ;;  %v2942_v3 = vpop.f32.mrb[30].mxu0  ;;  %v3013_v26 = vpop.f32.mrb[30].mxu1  ;;  %7894 = vmatprep.mubr.f32.mxu0 %v12148_v54  ;;  %v10075_v0 = vpack.c.bf16 %v11213_v43, %v11201_v52  ;;  %v10069_v18 = vpack.c.bf16 %v11217_v36, %v11215_v55  ;;  %v7677_v16 = vld [vmem:[#allocation7 + $0x1738] sm:$0xff]  ;;  %v12180_v29 = vrot.slane %v10954_v44, %v10409_v8  ;;  %v12183_v37 = vld [vmem:[#allocation25_spill] sm:$0xff]  ;;  %v11248_v43 = vld [vmem:[#allocation7 + $0x1620] sm:$0xff] }
 0x9bf   :  { %7965 = vmatprep.mubr.f32.mxu1 %v12148_v54  ;;  %v12182_v21 = vrot.slane %v11011_v45, %v10409_v8  ;;  %v2943_v40 = vadd.f32 %v2942_v3, %v2121_v33  ;;  %v3014_v6 = vadd.f32 %v3013_v26, %v2129_v2  ;;  %v2944_v60 = vpop.f32.mrb[31].mxu0  ;;  %v3015_v52 = vpop.f32.mrb[31].mxu1  ;;  %v11250_v55 = vld [vmem:[#allocation7 + $0x1720] sm:$0xff]  ;;  %v12184_v44 = vrot.slane %v11027_v27, %v10409_v8  ;;  %v12185_v36 = vld [vmem:[#allocation26_spill] sm:$0xff]  ;;  %v7615_v3 = vld [vmem:[#allocation7 + $0x1548] sm:$0xff] }
 0x9c0   :  { %v1622_v35 = vadd.f32 %v12181_v63, %v12180_v29  ;;  %v2945_v29 = vadd.f32 %v2944_v60, %v2125_v58  ;;  %v3016_v63 = vadd.f32 %v3015_v52, %v2133_v62  ;;  %10056 = vmatpush1.bf16.msra.mxu0 %v10055_v47  ;;  %v7644_v45 = vld [vmem:[#allocation7 + $0x1630] sm:$0xff]  ;;  %v10077_v2 = vpack.c.bf16 %v7677_v16, %v7645_v17  ;;  %v7585_v59 = vld [vmem:[#allocation7 + $0x1458] sm:$0xff]  ;;  %v11303_v62 = vld [vmem:[#allocation7 + $0x18e8] sm:$0xff] }
 0x9c1   :  { %v1553_v56 = vadd.f32 %v12183_v37, %v12182_v21  ;;  %v1624_v25 = vadd.f32 %v12185_v36, %v12184_v44  ;;  %10064 = vmatpush1.bf16.msra.mxu1 %v10063_v4  ;;  %v7676_v21 = vld [vmem:[#allocation7 + $0x1730] sm:$0xff]  ;;  %v11256_v37 = vld [vmem:[#allocation7 + $0x1448] sm:$0xff]  ;;  %v11258_v26 = vmul.f32 %v2943_v40, %v1551_v1  ;;  %10066 = vmatprep.subr.bf16.mxu0 %v10065_v53  ;;  %v7617_v27 = vld [vmem:[#allocation7 + $0x1558] sm:$0xff] }
 0x9c2   :  { %v11260_v33 = vmul.f32 %v3014_v6, %v1622_v35  ;;  %10074 = vmatprep.subr.bf16.mxu1 %v10073_v39  ;;  %v11270_v1 = vld [vmem:[#allocation7 + $0x1440] sm:$0xff]  ;;  %v11274_v53 = vld [vmem:[#allocation7 + $0x1450] sm:$0xff]  ;;  %v2137_v39 = vrot.slane %v11084_v11, %v10423_v30  ;;  %v2145_v17 = vrot.slane %v11100_v51, %v10423_v30  ;;  %v2141_v16 = vrot.slane %v11157_v34, %v10423_v30  ;;  %v11288_v40 = vld [vmem:[#allocation7 + $0x1648] sm:$0xff] }
 0x9c3   :  { %v11266_v47 = vmul.f32 %v2945_v29, %v1553_v56  ;;  %v11268_v4 = vmul.f32 %v3016_v63, %v1624_v25  ;;  %v11272_v35 = vld [vmem:[#allocation7 + $0x1540] sm:$0xff]  ;;  %9314 = vmatmul.mubr.msk.f32.vlgmr.msra.gmra.mrb[84].mxu0 %vm171_vm3, %v10475_v46  ;;  %v11286_v56 = vld [vmem:[#allocation7 + $0x1550] sm:$0xff]  ;;  %v11290_v6 = vld [vmem:[#allocation7 + $0x1748] sm:$0xff]  ;;  %v2149_v60 = vrot.slane %v11173_v42, %v10423_v30  ;;  %v10071_v52 = vpack.c.bf16 %v11250_v55, %v11248_v43 }
 0x9c4   :  { %12186 = vst [vmem:[#allocation18_spill] sm:$0xff] %v11260_v33  ;;  %9315 = vmatmul.mubr.msk.f32.vlgmr.msra.gmra.mrb[84].mxu1 %vm171_vm3, %v10475_v46  ;;  %10068 = vmatpush1.bf16.msra.mxu0 %v10067_v10  ;;  %v10079_v44 = vpack.c.bf16 %v7676_v21, %v7644_v45  ;;  %v10081_v36 = vpack.c.bf16 %v7615_v3, %v11256_v37  ;;  %v12190_v10 = vld [vmem:[#allocation27_spill] sm:$0xff]  ;;  %12191 = vst [vmem:[#allocation19_spill] sm:$0xff] %v11303_v62  ;;  %v12193_v45 = vld [vmem:[#allocation28_spill] sm:$0xff] }
 0x9c5   :  { %12187 = vst [vmem:[#allocation31_spill] sm:$0xff] %v11266_v47  ;;  %12188 = vst [vmem:[#allocation34_spill] sm:$0xff] %v11268_v4  ;;  %10076 = vmatpush1.bf16.msra.mxu1 %v10075_v0  ;;  %10070 = vmatprep.subr.bf16.mxu0 %v10069_v18  ;;  %v10089_v25 = vpack.c.bf16 %v7617_v27, %v7585_v59  ;;  %v10083_v29 = vpack.c.bf16 %v11272_v35, %v11270_v1  ;;  %v7649_v43 = vld [vmem:[#allocation7 + $0x1658] sm:$0xff] }
 0x9c6   :  { %10078 = vmatprep.subr.bf16.mxu1 %v10077_v2  ;;  %v12189_v63 = vrot.slane %v11084_v11, %v10409_v8  ;;  %v3084_v58 = vpop.f32.mrb[32].mxu0  ;;  %v3155_v4 = vpop.f32.mrb[32].mxu1  ;;  %8036 = vmatprep.mubr.f32.mxu0 %v12148_v54  ;;  %v10091_v18 = vpack.c.bf16 %v11286_v56, %v11274_v53  ;;  %v10085_v59 = vpack.c.bf16 %v11290_v6, %v11288_v40  ;;  %v7681_v55 = vld [vmem:[#allocation7 + $0x1758] sm:$0xff]  ;;  %v12195_v2 = vld [vmem:[#allocation29_spill] sm:$0xff]  ;;  %v7678_v40 = vld [vmem:[#allocation7 + $0x1740] sm:$0xff] }
 0x9c7   :  { %8107 = vmatprep.mubr.f32.mxu1 %v12148_v54  ;;  %v12192_v11 = vrot.slane %v11100_v51, %v10409_v8  ;;  %v12194_v37 = vrot.slane %v11157_v34, %v10409_v8  ;;  %v11319_v27 = vld [vmem:[#allocation7 + $0x18f8] sm:$0xff]  ;;  %v3085_v1 = vadd.f32 %v3084_v58, %v2137_v39  ;;  %v3156_v35 = vadd.f32 %v3155_v4, %v2145_v17  ;;  %v3086_v53 = vpop.f32.mrb[33].mxu0  ;;  %v3157_v56 = vpop.f32.mrb[33].mxu1  ;;  %v7680_v34 = vld [vmem:[#allocation7 + $0x1750] sm:$0xff]  ;;  %v7619_v39 = vld [vmem:[#allocation7 + $0x1568] sm:$0xff] }
 0x9c8   :  { %v1693_v0 = vadd.f32 %v12190_v10, %v12189_v63  ;;  %12196 = vst [vmem:[#allocation20_spill] sm:$0xff] %v11319_v27  ;;  %v7646_v63 = vld [vmem:[#allocation7 + $0x1640] sm:$0xff]  ;;  %v12197_v6 = vrot.slane %v11173_v42, %v10409_v8  ;;  %v12198_v10 = vld [vmem:[#allocation30_spill] sm:$0xff]  ;;  %v3087_v47 = vadd.f32 %v3086_v53, %v2141_v16  ;;  %10072 = vmatpush1.bf16.msra.mxu0 %v10071_v52  ;;  %v7589_v17 = vld [vmem:[#allocation7 + $0x1478] sm:$0xff] }
 0x9c9   :  { %v1764_v21 = vadd.f32 %v12193_v45, %v12192_v11  ;;  %v1695_v3 = vadd.f32 %v12195_v2, %v12194_v37  ;;  %v3158_v11 = vadd.f32 %v3157_v56, %v2149_v60  ;;  %10080 = vmatpush1.bf16.msra.mxu1 %v10079_v44  ;;  %v7648_v45 = vld [vmem:[#allocation7 + $0x1650] sm:$0xff]  ;;  %v7587_v37 = vld [vmem:[#allocation7 + $0x1468] sm:$0xff]  ;;  %10082 = vmatprep.subr.bf16.mxu0 %v10081_v36  ;;  %v7621_v33 = vld [vmem:[#allocation7 + $0x1578] sm:$0xff] }
 0x9ca   :  { %v1766_v51 = vadd.f32 %v12198_v10, %v12197_v6  ;;  %v11325_v2 = vmul.f32 %v3085_v1, %v1693_v0  ;;  %10090 = vmatprep.subr.bf16.mxu1 %v10089_v25  ;;  %v10093_v4 = vpack.c.bf16 %v7681_v55, %v7649_v43  ;;  %v762_v6 = vrot.slane %v11303_v62, %v10409_v8  ;;  %v11337_v44 = vld [vmem:[#allocation7 + $0x1460] sm:$0xff]  ;;  %v11341_v36 = vld [vmem:[#allocation7 + $0x1470] sm:$0xff] }
 0x9cb   :  { %v11327_v58 = vmul.f32 %v3156_v35, %v1764_v21  ;;  %v770_v16 = vrot.slane %v11319_v27, %v10409_v8  ;;  %v11333_v60 = vmul.f32 %v3087_v47, %v1695_v3  ;;  %v11339_v0 = vld [vmem:[#allocation7 + $0x1560] sm:$0xff]  ;;  %9316 = vmatmul.mubr.msk.f32.vlgmr.msra.gmra.mrb[86].mxu0 %vm171_vm3, %v10475_v46  ;;  %v2153_v25 = vrot.slane %v11230_v24, %v10423_v30  ;;  %v7620_v55 = vld [vmem:[#allocation7 + $0x1570] sm:$0xff]  ;;  %v11353_v21 = vld [vmem:[#allocation7 + $0x1668] sm:$0xff] }
 0x9cc   :  { %v11335_v52 = vmul.f32 %v3158_v11, %v1766_v51  ;;  %9317 = vmatmul.mubr.msk.f32.vlgmr.msra.gmra.mrb[86].mxu1 %vm171_vm3, %v10475_v46  ;;  %v2161_v47 = vrot.slane %v11246_v12, %v10423_v30  ;;  %v2157_v43 = vrot.slane %v11303_v62, %v10423_v30  ;;  %v11355_v3 = vld [vmem:[#allocation7 + $0x1768] sm:$0xff]  ;;  %10084 = vmatpush1.bf16.msra.mxu0 %v10083_v29  ;;  %v12202_v62 = vld [vmem:[#allocation32_spill] sm:$0xff] }
 0x9cd   :  { %12199 = vst [vmem:[#allocation21_spill] sm:$0xff] %v11333_v60  ;;  %10092 = vmatpush1.bf16.msra.mxu1 %v10091_v18  ;;  %v2165_v1 = vrot.slane %v11319_v27, %v10423_v30  ;;  %v10087_v35 = vpack.c.bf16 %v7678_v40, %v7646_v63  ;;  %v10095_v53 = vpack.c.bf16 %v7680_v34, %v7648_v45  ;;  %v7685_v18 = vld [vmem:[#allocation7 + $0x1778] sm:$0xff]  ;;  %v12204_v63 = vld [vmem:[#allocation33_spill] sm:$0xff] }
 0x9ce   :  { %12200 = vst [vmem:[#allocation22_spill] sm:$0xff] %v11335_v52  ;;  %10086 = vmatprep.subr.bf16.mxu0 %v10085_v59  ;;  %10094 = vmatprep.subr.bf16.mxu1 %v10093_v4  ;;  %v10097_v56 = vpack.c.bf16 %v7619_v39, %v7587_v37  ;;  %v10105_v10 = vpack.c.bf16 %v7621_v33, %v7589_v17  ;;  %v3226_v60 = vpop.f32.mrb[34].mxu0  ;;  %v3297_v29 = vpop.f32.mrb[34].mxu1  ;;  %v7653_v33 = vld [vmem:[#allocation7 + $0x1678] sm:$0xff] }
 0x9cf   :  { %v10099_v51 = vpack.c.bf16 %v11339_v0, %v11337_v44  ;;  %v12201_v11 = vrot.slane %v11230_v24, %v10409_v8  ;;  %8178 = vmatprep.mubr.f32.mxu0 %v12148_v54  ;;  %8249 = vmatprep.mubr.f32.mxu1 %v12148_v54  ;;  %v10107_v30 = vpack.c.bf16 %v7620_v55, %v11341_v36  ;;  %v12205_v45 = vld [vmem:[#allocation35_spill] sm:$0xff]  ;;  %v3228_v39 = vpop.f32.mrb[35].mxu0  ;;  %v3299_v17 = vpop.f32.mrb[35].mxu1  ;;  %v12206_v44 = vld [vmem:[#allocation36_spill] sm:$0xff] }
 0x9d0   :  { %v10101_v34 = vpack.c.bf16 %v11355_v3, %v11353_v21  ;;  %v12203_v59 = vrot.slane %v11246_v12, %v10409_v8  ;;  %v3227_v37 = vadd.f32 %v3226_v60, %v2153_v25  ;;  %v3298_v4 = vadd.f32 %v3297_v29, %v2161_v47  ;;  %10088 = vmatpush1.bf16.msra.mxu0 %v10087_v35  ;;  %v7650_v55 = vld [vmem:[#allocation7 + $0x1660] sm:$0xff]  ;;  %v7684_v60 = vld [vmem:[#allocation7 + $0x1770] sm:$0xff]  ;;  %v7591_v25 = vld [vmem:[#allocation7 + $0x1488] sm:$0xff] }
 0x9d1   :  { %v1835_v52 = vadd.f32 %v12202_v62, %v12201_v11  ;;  %v1837_v62 = vadd.f32 %v12205_v45, %v762_v6  ;;  %v1908_v0 = vadd.f32 %v12206_v44, %v770_v16  ;;  %v3229_v11 = vadd.f32 %v3228_v39, %v2157_v43  ;;  %10096 = vmatpush1.bf16.msra.mxu1 %v10095_v53  ;;  %v7682_v21 = vld [vmem:[#allocation7 + $0x1760] sm:$0xff]  ;;  %v7652_v6 = vld [vmem:[#allocation7 + $0x1670] sm:$0xff]  ;;  %v7623_v16 = vld [vmem:[#allocation7 + $0x1588] sm:$0xff] }
 0x9d2   :  { %v1906_v40 = vadd.f32 %v12204_v63, %v12203_v59  ;;  %v3300_v36 = vadd.f32 %v3299_v17, %v2165_v1  ;;  %10098 = vmatprep.subr.bf16.mxu0 %v10097_v56  ;;  %10106 = vmatprep.subr.bf16.mxu1 %v10105_v10  ;;  %v10109_v8 = vpack.c.bf16 %v7685_v18, %v7653_v33  ;;  %v7593_v43 = vld [vmem:[#allocation7 + $0x1498] sm:$0xff]  ;;  %v11392_v56 = vld [vmem:[#allocation7 + $0x1810] sm:$0xff]  ;;  %v11396_v33 = vld [vmem:[#allocation7 + $0x1808] sm:$0xff] }
 0x9d3   :  { %v11376_v3 = vmul.f32 %v3227_v37, %v1835_v52  ;;  %v11380_v47 = vmul.f32 %v3229_v11, %v1837_v62  ;;  %v7625_v1 = vld [vmem:[#allocation7 + $0x1598] sm:$0xff]  ;;  %9318 = vmatmul.mubr.msk.f32.vlgmr.msra.gmra.mrb[88].mxu0 %vm171_vm3, %v10475_v46  ;;  %v11388_v52 = vld [vmem:[#allocation7 + $0x1800] sm:$0xff]  ;;  %12209 = vst [vmem:[#allocation24_spill] sm:$0xff] %v11392_v56  ;;  %12210 = vst [vmem:[#allocation25_spill] sm:$0xff] %v11396_v33  ;;  %v10103_v45 = vpack.c.bf16 %v7682_v21, %v7650_v55 }
 0x9d4   :  { %v11378_v27 = vmul.f32 %v3298_v4, %v1906_v40  ;;  %v11382_v29 = vmul.f32 %v3300_v36, %v1908_v0  ;;  %9319 = vmatmul.mubr.msk.f32.vlgmr.msra.gmra.mrb[88].mxu1 %vm171_vm3, %v10475_v46  ;;  %12207 = vst [vmem:[#allocation23_spill] sm:$0xff] %v11388_v52  ;;  %v12208_v35 = vld [vmem:[#allocation15_spill] sm:$0xff]  ;;  %v7590_v59 = vld [vmem:[#allocation7 + $0x1480] sm:$0xff]  ;;  %10100 = vmatpush1.bf16.msra.mxu0 %v10099_v51  ;;  %v7592_v4 = vld [vmem:[#allocation7 + $0x1490] sm:$0xff] }
 0x9d5   :  { %v3465_v53 = vrot.slane %v11388_v52, %v12208_v35  ;;  %v3473_v10 = vrot.slane %v11392_v56, %v12208_v35  ;;  %v3469_v18 = vrot.slane %v11396_v33, %v12208_v35  ;;  %10108 = vmatpush1.bf16.msra.mxu1 %v10107_v30  ;;  %v11400_v63 = vld [vmem:[#allocation7 + $0x1818] sm:$0xff]  ;;  %v10111_v62 = vpack.c.bf16 %v7684_v60, %v7652_v6  ;;  %v7622_v37 = vld [vmem:[#allocation7 + $0x1580] sm:$0xff]  ;;  %v7624_v39 = vld [vmem:[#allocation7 + $0x1590] sm:$0xff] }
 0x9d6   :  { %12211 = vst [vmem:[#allocation26_spill] sm:$0xff] %v11400_v63  ;;  %v3477_v40 = vrot.slane %v11400_v63, %v12208_v35  ;;  %10102 = vmatprep.subr.bf16.mxu0 %v10101_v34  ;;  %10110 = vmatprep.subr.bf16.mxu1 %v10109_v8  ;;  %v10113_v17 = vpack.c.bf16 %v7623_v16, %v7591_v25  ;;  %v7655_v0 = vld [vmem:[#allocation7 + $0x1688] sm:$0xff]  ;;  %v3656_v36 = vpop.f32.mrb[36].mxu0  ;;  %v3727_v33 = vpop.f32.mrb[36].mxu1  ;;  %v7657_v51 = vld [vmem:[#allocation7 + $0x1698] sm:$0xff]  ;;  %v7654_v16 = vld [vmem:[#allocation7 + $0x1680] sm:$0xff] }
 0x9d7   :  { %v10121_v44 = vpack.c.bf16 %v7625_v1, %v7593_v43  ;;  %v7687_v11 = vld [vmem:[#allocation7 + $0x1788] sm:$0xff]  ;;  %8320 = vmatprep.mubr.f32.mxu0 %v12148_v54  ;;  %8391 = vmatprep.mubr.f32.mxu1 %v12148_v54  ;;  %v7689_v30 = vld [vmem:[#allocation7 + $0x1798] sm:$0xff]  ;;  %v3657_v63 = vadd.f32 %v3656_v36, %v3465_v53  ;;  %v3728_v55 = vadd.f32 %v3727_v33, %v3473_v10  ;;  %v3658_v21 = vpop.f32.mrb[37].mxu0  ;;  %v3729_v6 = vpop.f32.mrb[37].mxu1  ;;  %v7686_v43 = vld [vmem:[#allocation7 + $0x1780] sm:$0xff] }
 0x9d8   :  { %v10115_v60 = vpack.c.bf16 %v7622_v37, %v7590_v59  ;;  %v10123_v56 = vpack.c.bf16 %v7624_v39, %v7592_v4  ;;  %v3659_v34 = vadd.f32 %v3658_v21, %v3469_v18  ;;  %v3730_v8 = vadd.f32 %v3729_v6, %v3477_v40  ;;  %10104 = vmatpush1.bf16.msra.mxu0 %v10103_v45  ;;  %v7656_v10 = vld [vmem:[#allocation7 + $0x1690] sm:$0xff]  ;;  %v7595_v59 = vld [vmem:[#allocation7 + $0x14a8] sm:$0xff]  ;;  %v7629_v37 = vld [vmem:[#allocation7 + $0x15b8] sm:$0xff] }
 0x9d9   :  { %10112 = vmatpush1.bf16.msra.mxu1 %v10111_v62  ;;  %v10117_v25 = vpack.c.bf16 %v7687_v11, %v7655_v0  ;;  %v11407_v1 = vmul.f32 %v3657_v63, %v10893_v13  ;;  %v11410_v52 = vmul.f32 %v3728_v55, %v10895_v14  ;;  %10114 = vmatprep.subr.bf16.mxu0 %v10113_v17  ;;  %v7688_v33 = vld [vmem:[#allocation7 + $0x1790] sm:$0xff]  ;;  %v7627_v45 = vld [vmem:[#allocation7 + $0x15a8] sm:$0xff]  ;;  %v7597_v62 = vld [vmem:[#allocation7 + $0x14b8] sm:$0xff] }
 0x9da   :  { %10122 = vmatprep.subr.bf16.mxu1 %v10121_v44  ;;  %v10125_v53 = vpack.c.bf16 %v7689_v30, %v7657_v51  ;;  %v11413_v18 = vmul.f32 %v3659_v34, %v10901_v7  ;;  %v11416_v40 = vmul.f32 %v3730_v8, %v10903_v38  ;;  %v11422_v13 = vld [vmem:[#allocation7 + $0x1820] sm:$0xff]  ;;  %v11426_v63 = vld [vmem:[#allocation7 + $0x1830] sm:$0xff]  ;;  %v11430_v38 = vld [vmem:[#allocation7 + $0x1828] sm:$0xff]  ;;  %v10119_v0 = vpack.c.bf16 %v7686_v43, %v7654_v16 }
 0x9db   :  { %12212 = vst [vmem:[#allocation27_spill] sm:$0xff] %v11407_v1  ;;  %12213 = vst [vmem:[#allocation28_spill] sm:$0xff] %v11410_v52  ;;  %9320 = vmatmul.mubr.msk.f32.vlgmr.msra.gmra.mrb[90].mxu0 %vm171_vm3, %v10475_v46  ;;  %v3481_v14 = vrot.slane %v11422_v13, %v12208_v35  ;;  %v3489_v7 = vrot.slane %v11426_v63, %v12208_v35  ;;  %v3485_v4 = vrot.slane %v11430_v38, %v12208_v35  ;;  %v7594_v39 = vld [vmem:[#allocation7 + $0x14a0] sm:$0xff]  ;;  %v11434_v17 = vld [vmem:[#allocation7 + $0x1838] sm:$0xff] }
 0x9dc   :  { %12214 = vst [vmem:[#allocation29_spill] sm:$0xff] %v11413_v18  ;;  %12215 = vst [vmem:[#allocation30_spill] sm:$0xff] %v11416_v40  ;;  %9321 = vmatmul.mubr.msk.f32.vlgmr.msra.gmra.mrb[90].mxu1 %vm171_vm3, %v10475_v46  ;;  %10116 = vmatpush1.bf16.msra.mxu0 %v10115_v60  ;;  %v3493_v44 = vrot.slane %v11434_v17, %v12208_v35  ;;  %v10127_v11 = vpack.c.bf16 %v7688_v33, %v7656_v10  ;;  %v7626_v36 = vld [vmem:[#allocation7 + $0x15a0] sm:$0xff]  ;;  %v7596_v51 = vld [vmem:[#allocation7 + $0x14b0] sm:$0xff] }
 0x9dd   :  { %10124 = vmatpush1.bf16.msra.mxu1 %v10123_v56  ;;  %v7628_v30 = vld [vmem:[#allocation7 + $0x15b0] sm:$0xff]  ;;  %10118 = vmatprep.subr.bf16.mxu0 %v10117_v25  ;;  %v10129_v55 = vpack.c.bf16 %v7627_v45, %v7595_v59  ;;  %v10137_v21 = vpack.c.bf16 %v7629_v37, %v7597_v62  ;;  %v7659_v6 = vld [vmem:[#allocation7 + $0x16a8] sm:$0xff]  ;;  %v7661_v56 = vld [vmem:[#allocation7 + $0x16b8] sm:$0xff]  ;;  %v10131_v33 = vpack.c.bf16 %v7626_v36, %v7594_v39 }
 0x9de   :  { %10126 = vmatprep.subr.bf16.mxu1 %v10125_v53  ;;  %v7691_v34 = vld [vmem:[#allocation7 + $0x17a8] sm:$0xff]  ;;  %v3798_v8 = vpop.f32.mrb[38].mxu0  ;;  %v3869_v40 = vpop.f32.mrb[38].mxu1  ;;  %8462 = vmatprep.mubr.f32.mxu0 %v12148_v54  ;;  %v7693_v60 = vld [vmem:[#allocation7 + $0x17b8] sm:$0xff]  ;;  %v10139_v52 = vpack.c.bf16 %v7628_v30, %v7596_v51  ;;  %v7658_v45 = vld [vmem:[#allocation7 + $0x16a0] sm:$0xff] }
 0x9df   :  { %8533 = vmatprep.mubr.f32.mxu1 %v12148_v54  ;;  %v3799_v18 = vadd.f32 %v3798_v8, %v3481_v14  ;;  %v3870_v16 = vadd.f32 %v3869_v40, %v3489_v7  ;;  %v3800_v43 = vpop.f32.mrb[39].mxu0  ;;  %v3871_v10 = vpop.f32.mrb[39].mxu1  ;;  %v10133_v59 = vpack.c.bf16 %v7691_v34, %v7659_v6  ;;  %v7690_v62 = vld [vmem:[#allocation7 + $0x17a0] sm:$0xff]  ;;  %v10141_v40 = vpack.c.bf16 %v7693_v60, %v7661_v56  ;;  %v7660_v14 = vld [vmem:[#allocation7 + $0x16b0] sm:$0xff]  ;;  %v7599_v39 = vld [vmem:[#allocation7 + $0x14c8] sm:$0xff] }
 0x9e0   :  { %v3801_v25 = vadd.f32 %v3800_v43, %v3485_v4  ;;  %v3872_v53 = vadd.f32 %v3871_v10, %v3493_v44  ;;  %10120 = vmatpush1.bf16.msra.mxu0 %v10119_v0  ;;  %v7692_v7 = vld [vmem:[#allocation7 + $0x17b0] sm:$0xff]  ;;  %v7631_v0 = vld [vmem:[#allocation7 + $0x15c8] sm:$0xff]  ;;  %v7633_v36 = vld [vmem:[#allocation7 + $0x15d8] sm:$0xff]  ;;  %v10135_v6 = vpack.c.bf16 %v7690_v62, %v7658_v45 }
 0x9e1   :  { %10128 = vmatpush1.bf16.msra.mxu1 %v10127_v11  ;;  %v11441_v37 = vmul.f32 %v3799_v18, %v10966_v15  ;;  %v11444_v1 = vmul.f32 %v3870_v16, %v10968_v48  ;;  %10130 = vmatprep.subr.bf16.mxu0 %v10129_v55  ;;  %v7601_v11 = vld [vmem:[#allocation7 + $0x14d8] sm:$0xff]  ;;  %v11456_v15 = vld [vmem:[#allocation7 + $0x1840] sm:$0xff]  ;;  %v11460_v18 = vld [vmem:[#allocation7 + $0x1850] sm:$0xff]  ;;  %v10143_v34 = vpack.c.bf16 %v7692_v7, %v7660_v14 }
 0x9e2   :  { %10138 = vmatprep.subr.bf16.mxu1 %v10137_v21  ;;  %v11447_v4 = vmul.f32 %v3801_v25, %v10974_v28  ;;  %v11450_v44 = vmul.f32 %v3872_v53, %v10976_v41  ;;  %v3497_v48 = vrot.slane %v11456_v15, %v12208_v35  ;;  %v3505_v28 = vrot.slane %v11460_v18, %v12208_v35  ;;  %v11464_v41 = vld [vmem:[#allocation7 + $0x1848] sm:$0xff]  ;;  %v7598_v30 = vld [vmem:[#allocation7 + $0x14c0] sm:$0xff]  ;;  %v11468_v55 = vld [vmem:[#allocation7 + $0x1858] sm:$0xff] }
 0x9e3   :  { %12216 = vst [vmem:[#allocation32_spill] sm:$0xff] %v11441_v37  ;;  %12217 = vst [vmem:[#allocation33_spill] sm:$0xff] %v11444_v1  ;;  %9322 = vmatmul.mubr.msk.f32.vlgmr.msra.gmra.mrb[92].mxu0 %vm171_vm3, %v10475_v46  ;;  %v3501_v51 = vrot.slane %v11464_v41, %v12208_v35  ;;  %v3509_v21 = vrot.slane %v11468_v55, %v12208_v35  ;;  %v7630_v8 = vld [vmem:[#allocation7 + $0x15c0] sm:$0xff]  ;;  %v7600_v56 = vld [vmem:[#allocation7 + $0x14d0] sm:$0xff]  ;;  %v10145_v16 = vpack.c.bf16 %v7631_v0, %v7599_v39 }
 0x9e4   :  { %12218 = vst [vmem:[#allocation35_spill] sm:$0xff] %v11447_v4  ;;  %12219 = vst [vmem:[#allocation36_spill] sm:$0xff] %v11450_v44  ;;  %9323 = vmatmul.mubr.msk.f32.vlgmr.msra.gmra.mrb[92].mxu1 %vm171_vm3, %v10475_v46  ;;  %10132 = vmatpush1.bf16.msra.mxu0 %v10131_v33  ;;  %v7632_v60 = vld [vmem:[#allocation7 + $0x15d0] sm:$0xff]  ;;  %v10153_v43 = vpack.c.bf16 %v7633_v36, %v7601_v11  ;;  %v7663_v10 = vld [vmem:[#allocation7 + $0x16c8] sm:$0xff]  ;;  %v10147_v7 = vpack.c.bf16 %v7630_v8, %v7598_v30 }
 0x9e5   :  { %10140 = vmatpush1.bf16.msra.mxu1 %v10139_v52  ;;  %10134 = vmatprep.subr.bf16.mxu0 %v10133_v59  ;;  %v7695_v25 = vld [vmem:[#allocation7 + $0x17c8] sm:$0xff]  ;;  %v7665_v52 = vld [vmem:[#allocation7 + $0x16d8] sm:$0xff]  ;;  %v10155_v1 = vpack.c.bf16 %v7632_v60, %v7600_v56  ;;  %v7662_v0 = vld [vmem:[#allocation7 + $0x16c0] sm:$0xff] }
 0x9e6   :  { %10142 = vmatprep.subr.bf16.mxu1 %v10141_v40  ;;  %v3940_v53 = vpop.f32.mrb[40].mxu0  ;;  %v4011_v44 = vpop.f32.mrb[40].mxu1  ;;  %8604 = vmatprep.mubr.f32.mxu0 %v12148_v54  ;;  %v7697_v33 = vld [vmem:[#allocation7 + $0x17d8] sm:$0xff]  ;;  %v10149_v39 = vpack.c.bf16 %v7695_v25, %v7663_v10  ;;  %v7694_v11 = vld [vmem:[#allocation7 + $0x17c0] sm:$0xff]  ;;  %v7603_v30 = vld [vmem:[#allocation7 + $0x14e8] sm:$0xff] }
 0x9e7   :  { %8675 = vmatprep.mubr.f32.mxu1 %v12148_v54  ;;  %v3941_v4 = vadd.f32 %v3940_v53, %v3497_v48  ;;  %v4012_v45 = vadd.f32 %v4011_v44, %v3505_v28  ;;  %v3942_v62 = vpop.f32.mrb[41].mxu0  ;;  %v4013_v14 = vpop.f32.mrb[41].mxu1  ;;  %v10157_v44 = vpack.c.bf16 %v7697_v33, %v7665_v52  ;;  %v7664_v48 = vld [vmem:[#allocation7 + $0x16d0] sm:$0xff]  ;;  %v7637_v8 = vld [vmem:[#allocation7 + $0x15f8] sm:$0xff]  ;;  %v7602_v60 = vld [vmem:[#allocation7 + $0x14e0] sm:$0xff]  ;;  %v10151_v10 = vpack.c.bf16 %v7694_v11, %v7662_v0 }
 0x9e8   :  { %v3943_v59 = vadd.f32 %v3942_v62, %v3501_v51  ;;  %v4014_v40 = vadd.f32 %v4013_v14, %v3509_v21  ;;  %10136 = vmatpush1.bf16.msra.mxu0 %v10135_v6  ;;  %v7696_v28 = vld [vmem:[#allocation7 + $0x17d0] sm:$0xff]  ;;  %v7635_v6 = vld [vmem:[#allocation7 + $0x15e8] sm:$0xff]  ;;  %v7634_v53 = vld [vmem:[#allocation7 + $0x15e0] sm:$0xff] }
 0x9e9   :  { %10144 = vmatpush1.bf16.msra.mxu1 %v10143_v34  ;;  %v11475_v36 = vmul.f32 %v3941_v4, %v11039_v32  ;;  %v11478_v37 = vmul.f32 %v4012_v45, %v11041_v20  ;;  %10146 = vmatprep.subr.bf16.mxu0 %v10145_v16  ;;  %v7605_v34 = vld [vmem:[#allocation7 + $0x14f8] sm:$0xff]  ;;  %v11490_v32 = vld [vmem:[#allocation7 + $0x1860] sm:$0xff]  ;;  %v11494_v4 = vld [vmem:[#allocation7 + $0x1870] sm:$0xff]  ;;  %v10159_v25 = vpack.c.bf16 %v7696_v28, %v7664_v48 }
 0x9ea   :  { %10154 = vmatprep.subr.bf16.mxu1 %v10153_v43  ;;  %v11481_v51 = vmul.f32 %v3943_v59, %v11047_v61  ;;  %v11484_v21 = vmul.f32 %v4014_v40, %v11049_v49  ;;  %v3513_v20 = vrot.slane %v11490_v32, %v12208_v35  ;;  %v3521_v61 = vrot.slane %v11494_v4, %v12208_v35  ;;  %v11498_v49 = vld [vmem:[#allocation7 + $0x1868] sm:$0xff]  ;;  %v11502_v16 = vld [vmem:[#allocation7 + $0x1878] sm:$0xff]  ;;  %v7604_v52 = vld [vmem:[#allocation7 + $0x14f0] sm:$0xff] }
 0x9eb   :  { %12220 = vst [vmem:[#allocation15_spill] sm:$0xff] %v11475_v36  ;;  %12221 = vst [vmem:[#allocation37_spill] sm:$0xff] %v11478_v37  ;;  %9324 = vmatmul.mubr.msk.f32.vlgmr.msra.gmra.mrb[94].mxu0 %vm171_vm3, %v10475_v46  ;;  %v3517_v56 = vrot.slane %v11498_v49, %v12208_v35  ;;  %v3525_v43 = vrot.slane %v11502_v16, %v12208_v35  ;;  %v7636_v33 = vld [vmem:[#allocation7 + $0x15f0] sm:$0xff]  ;;  %v10161_v45 = vpack.c.bf16 %v7635_v6, %v7603_v30  ;;  %v7667_v14 = vld [vmem:[#allocation7 + $0x16e8] sm:$0xff] }
 0x9ec   :  { %12222 = vst [vmem:[#allocation38_spill] sm:$0xff] %v11481_v51  ;;  %12223 = vst [vmem:[#allocation39_spill] sm:$0xff] %v11484_v21  ;;  %9325 = vmatmul.mubr.msk.f32.vlgmr.msra.gmra.mrb[94].mxu1 %vm171_vm3, %v10475_v46  ;;  %10148 = vmatpush1.bf16.msra.mxu0 %v10147_v7  ;;  %v10169_v62 = vpack.c.bf16 %v7637_v8, %v7605_v34  ;;  %v7699_v59 = vld [vmem:[#allocation7 + $0x17e8] sm:$0xff]  ;;  %v7701_v7 = vld [vmem:[#allocation7 + $0x17f8] sm:$0xff]  ;;  %v10163_v28 = vpack.c.bf16 %v7634_v53, %v7602_v60 }
 0x9ed   :  { %10156 = vmatpush1.bf16.msra.mxu1 %v10155_v1  ;;  %10150 = vmatprep.subr.bf16.mxu0 %v10149_v39  ;;  %v7669_v1 = vld [vmem:[#allocation7 + $0x16f8] sm:$0xff]  ;;  %v10171_v37 = vpack.c.bf16 %v7636_v33, %v7604_v52  ;;  %v10165_v30 = vpack.c.bf16 %v7699_v59, %v7667_v14  ;;  %v7666_v6 = vld [vmem:[#allocation7 + $0x16e0] sm:$0xff] }
 0x9ee   :  { %10158 = vmatprep.subr.bf16.mxu1 %v10157_v44  ;;  %v4082_v40 = vpop.f32.mrb[42].mxu0  ;;  %v4153_v21 = vpop.f32.mrb[42].mxu1  ;;  %8746 = vmatprep.mubr.f32.mxu0 %v12148_v54 }
 0x9ef   :  { %8817 = vmatprep.mubr.f32.mxu1 %v12148_v54  ;;  %v4083_v51 = vadd.f32 %v4082_v40, %v3513_v20  ;;  %v4154_v0 = vadd.f32 %v4153_v21, %v3521_v61  ;;  %v4084_v11 = vpop.f32.mrb[43].mxu0  ;;  %v4155_v48 = vpop.f32.mrb[43].mxu1  ;;  %v10173_v20 = vpack.c.bf16 %v7701_v7, %v7669_v1  ;;  %v7698_v21 = vld [vmem:[#allocation7 + $0x17e0] sm:$0xff]  ;;  %v7668_v61 = vld [vmem:[#allocation7 + $0x16f0] sm:$0xff] }
 0x9f0   :  { %v4085_v39 = vadd.f32 %v4084_v11, %v3517_v56  ;;  %v4156_v44 = vadd.f32 %v4155_v48, %v3525_v43  ;;  %10152 = vmatpush1.bf16.msra.mxu0 %v10151_v10  ;;  %v7700_v40 = vld [vmem:[#allocation7 + $0x17f0] sm:$0xff]  ;;  %v11532_v43 = vld [vmem:[#allocation7 + $0x1888] sm:$0xff]  ;;  %v11536_v10 = vld [vmem:[#allocation7 + $0x1898] sm:$0xff]  ;;  %v10167_v53 = vpack.c.bf16 %v7698_v21, %v7666_v6 }
 0x9f1   :  { %10160 = vmatpush1.bf16.msra.mxu1 %v10159_v25  ;;  %v11509_v34 = vmul.f32 %v4083_v51, %v11112_v57  ;;  %v11512_v8 = vmul.f32 %v4154_v0, %v11114_v19  ;;  %10162 = vmatprep.subr.bf16.mxu0 %v10161_v45  ;;  %v11524_v57 = vld [vmem:[#allocation7 + $0x1880] sm:$0xff]  ;;  %v11528_v51 = vld [vmem:[#allocation7 + $0x1890] sm:$0xff]  ;;  %v3541_v25 = vrot.slane %v11536_v10, %v12208_v35 }
 0x9f2   :  { %10170 = vmatprep.subr.bf16.mxu1 %v10169_v62  ;;  %v11515_v60 = vmul.f32 %v4085_v39, %v11120_v22  ;;  %v11518_v56 = vmul.f32 %v4156_v44, %v11122_v9  ;;  %v3529_v19 = vrot.slane %v11524_v57, %v12208_v35  ;;  %v3537_v22 = vrot.slane %v11528_v51, %v12208_v35  ;;  %v11562_v39 = vld [vmem:[#allocation7 + $0x18b0] sm:$0xff]  ;;  %v11570_v44 = vld [vmem:[#allocation7 + $0x18b8] sm:$0xff] }
 0x9f3   :  { %12224 = vst [vmem:[#allocation40_spill] sm:$0xff] %v11509_v34  ;;  %12225 = vst [vmem:[#allocation41_spill] sm:$0xff] %v11512_v8  ;;  %9326 = vmatmul.mubr.msk.f32.vlgmr.msra.gmra.mrb[96].mxu0 %vm171_vm3, %v10475_v46  ;;  %v3533_v9 = vrot.slane %v11532_v43, %v12208_v35  ;;  %v10175_v52 = vpack.c.bf16 %v7700_v40, %v7668_v61  ;;  %v12274_v34 = vld [vmem:[#allocation25_spill] sm:$0xff] }
 0x9f4   :  { %12226 = vst [vmem:[#allocation42_spill] sm:$0xff] %v11515_v60  ;;  %12227 = vst [vmem:[#allocation43_spill] sm:$0xff] %v11518_v56  ;;  %9327 = vmatmul.mubr.msk.f32.vlgmr.msra.gmra.mrb[96].mxu1 %vm171_vm3, %v10475_v46  ;;  %10164 = vmatpush1.bf16.msra.mxu0 %v10163_v28  ;;  %v12273_v56 = vld [vmem:[#allocation14_spill] sm:$0xff] }
 0x9f5   :  { %10172 = vmatpush1.bf16.msra.mxu1 %v10171_v37  ;;  %10166 = vmatprep.subr.bf16.mxu0 %v10165_v30  ;;  %12233 = vst [vmem:[#allocation49_spill] sm:$0xff] %v11562_v39  ;;  %12235 = vst [vmem:[#allocation51_spill] sm:$0xff] %v11570_v44 }
 0x9f6   :  { %10174 = vmatprep.subr.bf16.mxu1 %v10173_v20  ;;  %v4224_v33 = vpop.f32.mrb[44].mxu0  ;;  %v4295_v45 = vpop.f32.mrb[44].mxu1  ;;  %8888 = vmatprep.mubr.f32.mxu0 %v12148_v54 }
 0x9f7   :  { %8959 = vmatprep.mubr.f32.mxu1 %v12148_v54  ;;  %v4225_v62 = vadd.f32 %v4224_v33, %v3529_v19  ;;  %v4296_v14 = vadd.f32 %v4295_v45, %v3537_v22  ;;  %v4226_v59 = vpop.f32.mrb[45].mxu0  ;;  %v4297_v1 = vpop.f32.mrb[45].mxu1  ;;  %v11558_v54 = vld [vmem:[#allocation7 + $0x18a0] sm:$0xff]  ;;  %v12241_v45 = vld [vmem:[#allocation34_spill] sm:$0xff] }
 0x9f8   :  { %v4227_v37 = vadd.f32 %v4226_v59, %v3533_v9  ;;  %v4298_v7 = vadd.f32 %v4297_v1, %v3541_v25  ;;  %10168 = vmatpush1.bf16.msra.mxu0 %v10167_v53  ;;  %12232 = vst [vmem:[#allocation48_spill] sm:$0xff] %v11558_v54  ;;  %v12237_v25 = vld [vmem:[#allocation18_spill] sm:$0xff] }
 0x9f9   :  { %10176 = vmatpush1.bf16.msra.mxu1 %v10175_v52  ;;  %v11543_v0 = vmul.f32 %v4225_v62, %v11185_v50  ;;  %v11546_v11 = vmul.f32 %v4296_v14, %v11187_v5  ;;  %v3545_v50 = vrot.slane %v11558_v54, %v12208_v35  ;;  %v3553_v5 = vrot.slane %v11562_v39, %v12208_v35  ;;  %v12239_v52 = vld [vmem:[#allocation31_spill] sm:$0xff]  ;;  %v11586_v14 = vld [vmem:[#allocation7 + $0x18c0] sm:$0xff]  ;;  %v11590_v1 = vld [vmem:[#allocation7 + $0x18d0] sm:$0xff] }
 0x9fa   :  { %v11549_v48 = vmul.f32 %v4227_v37, %v11193_v23  ;;  %v11552_v28 = vmul.f32 %v4298_v7, %v11195_v31  ;;  %v11566_v23 = vld [vmem:[#allocation7 + $0x18a8] sm:$0xff]  ;;  %12243 = vst [vmem:[#allocation53_spill] sm:$0xff] %v11586_v14  ;;  %v3561_v59 = vrot.slane %v11586_v14, %v12208_v35  ;;  %12244 = vst [vmem:[#allocation54_spill] sm:$0xff] %v11590_v1 }
 0x9fb   :  { %12228 = vst [vmem:[#allocation44_spill] sm:$0xff] %v11543_v0  ;;  %12229 = vst [vmem:[#allocation45_spill] sm:$0xff] %v11546_v11  ;;  %9328 = vmatmul.mubr.msk.f32.vlgmr.msra.gmra.mrb[98].mxu0 %vm171_vm3, %v10475_v46  ;;  %v3549_v31 = vrot.slane %v11566_v23, %v12208_v35  ;;  %v12245_v37 = vld [vmem:[#allocation17_spill] sm:$0xff]  ;;  %v12272_v11 = vld [vmem:[#allocation24_spill] sm:$0xff] }
 0x9fc   :  { %12230 = vst [vmem:[#allocation46_spill] sm:$0xff] %v11549_v48  ;;  %12231 = vst [vmem:[#allocation47_spill] sm:$0xff] %v11552_v28  ;;  %9329 = vmatmul.mubr.msk.f32.vlgmr.msra.gmra.mrb[98].mxu1 %vm171_vm3, %v10475_v46  ;;  %v3557_v46 = vrot.slane %v11570_v44, %v12208_v35  ;;  %v3565_v7 = vrot.slane %v12245_v37, %v12208_v35  ;;  %v12271_v28 = vld [vmem:[#allocation23_spill] sm:$0xff]  ;;  %v6289_v8 = vrot.slane %v12272_v11, %v12273_v56 }
 0x9fd   :  { %12234 = vst [vmem:[#allocation50_spill] sm:$0xff] %v11566_v23  ;;  %v6281_v60 = vrot.slane %v12271_v28, %v12273_v56 }
 0x9fe   :  { %v4366_v30 = vpop.f32.mrb[46].mxu0  ;;  %v4437_v6 = vpop.f32.mrb[46].mxu1 }
 0x9ff   :  { %v4367_v20 = vadd.f32 %v4366_v30, %v3545_v50  ;;  %v4438_v21 = vadd.f32 %v4437_v6, %v3553_v5  ;;  %v4368_v61 = vpop.f32.mrb[47].mxu0  ;;  %v4439_v40 = vpop.f32.mrb[47].mxu1  ;;  %v3573_v50 = vrot.slane %v11173_v42, %v12208_v35  ;;  %v3577_v42 = vrot.slane %v11230_v24, %v12208_v35 }
 0xa00   :  { %v4369_v19 = vadd.f32 %v4368_v61, %v3549_v31  ;;  %v4440_v22 = vadd.f32 %v4439_v40, %v3557_v46 }
 0xa01   :  { %v11575_v9 = vmul.f32 %v4367_v20, %v11258_v26  ;;  %v11578_v53 = vmul.f32 %v4438_v21, %v12237_v25  ;;  %v3569_v26 = vrot.slane %v11590_v1, %v12208_v35 }
 0xa02   :  { %v11581_v33 = vmul.f32 %v4369_v19, %v12239_v52  ;;  %v11584_v62 = vmul.f32 %v4440_v22, %v12241_v45  ;;  %v12248_v22 = vld [vmem:[#allocation21_spill] sm:$0xff]  ;;  %v12250_v52 = vld [vmem:[#allocation22_spill] sm:$0xff] }
 0xa03   :  { %12236 = vst [vmem:[#allocation52_spill] sm:$0xff] %v11575_v9  ;;  %12238 = vst [vmem:[#allocation18_spill] sm:$0xff] %v11578_v53  ;;  %v12270_v9 = vld [vmem:[#allocation13_spill] sm:$0xff] }
 0xa04   :  { %12240 = vst [vmem:[#allocation31_spill] sm:$0xff] %v11581_v33  ;;  %12242 = vst [vmem:[#allocation34_spill] sm:$0xff] %v11584_v62  ;;  %v4889_v48 = vrot.slane %v12271_v28, %v12270_v9  ;;  %v4897_v0 = vrot.slane %v12272_v11, %v12270_v9  ;;  %v4893_v36 = vrot.slane %v12274_v34, %v12270_v9 }
 0xa06   :  { %v4508_v5 = vpop.f32.mrb[48].mxu0  ;;  %v4579_v31 = vpop.f32.mrb[48].mxu1 }
 0xa07   :  { %v4509_v46 = vadd.f32 %v4508_v5, %v3561_v59  ;;  %v4580_v30 = vadd.f32 %v4579_v31, %v3569_v26  ;;  %v4510_v6 = vpop.f32.mrb[49].mxu0  ;;  %v4581_v20 = vpop.f32.mrb[49].mxu1  ;;  %v3585_v59 = vrot.slane %v11246_v12, %v12208_v35  ;;  %v12252_v26 = vld [vmem:[#allocation19_spill] sm:$0xff] }
 0xa08   :  { %v4511_v21 = vadd.f32 %v4510_v6, %v3565_v7  ;;  %v4582_v61 = vadd.f32 %v4581_v20, %v3573_v50  ;;  %v3581_v37 = vrot.slane %v12252_v26, %v12208_v35 }
 0xa09   :  { %v11599_v40 = vmul.f32 %v4509_v46, %v11325_v2  ;;  %v11602_v19 = vmul.f32 %v4580_v30, %v11327_v58  ;;  %v12253_v2 = vld [vmem:[#allocation20_spill] sm:$0xff] }
 0xa0a   :  { %v11605_v25 = vmul.f32 %v4511_v21, %v12248_v22  ;;  %v11608_v45 = vmul.f32 %v4582_v61, %v12250_v52  ;;  %v3589_v7 = vrot.slane %v12253_v2, %v12208_v35 }
 0xa0b   :  { %12246 = vst [vmem:[#allocation17_spill] sm:$0xff] %v11599_v40  ;;  %12247 = vst [vmem:[#allocation55_spill] sm:$0xff] %v11602_v19 }
 0xa0c   :  { %12249 = vst [vmem:[#allocation21_spill] sm:$0xff] %v11605_v25  ;;  %12251 = vst [vmem:[#allocation22_spill] sm:$0xff] %v11608_v45 }
 0xa0e   :  { %v4650_v58 = vpop.f32.mrb[50].mxu0  ;;  %v4721_v50 = vpop.f32.mrb[50].mxu1 }
 0xa0f   :  { %v4651_v5 = vadd.f32 %v4650_v58, %v3577_v42  ;;  %v4722_v31 = vadd.f32 %v4721_v50, %v3585_v59  ;;  %v4652_v46 = vpop.f32.mrb[51].mxu0  ;;  %v4723_v30 = vpop.f32.mrb[51].mxu1 }
 0xa10   :  { %v4653_v6 = vadd.f32 %v4652_v46, %v3581_v37  ;;  %v4724_v20 = vadd.f32 %v4723_v30, %v3589_v7 }
 0xa11   :  { %v11619_v21 = vmul.f32 %v4651_v5, %v11376_v3  ;;  %v11622_v24 = vmul.f32 %v4722_v31, %v11378_v27 }
 0xa12   :  { %v11625_v12 = vmul.f32 %v4653_v6, %v11380_v47  ;;  %v11628_v61 = vmul.f32 %v4724_v20, %v11382_v29 }
 0xa13   :  { %12254 = vst [vmem:[#allocation19_spill] sm:$0xff] %v11619_v21  ;;  %12255 = vst [vmem:[#allocation20_spill] sm:$0xff] %v11622_v24 }
 0xa14   :  { %12256 = vst [vmem:[#allocation56_spill] sm:$0xff] %v11625_v12  ;;  %12257 = vst [vmem:[#allocation57_spill] sm:$0xff] %v11628_v61 }
 0xa16   :  { %v5080_v35 = vpop.f32.mrb[52].mxu0  ;;  %v5151_v22 = vpop.f32.mrb[52].mxu1 }
 0xa17   :  { %v5082_v52 = vpop.f32.mrb[53].mxu0  ;;  %v5153_v42 = vpop.f32.mrb[53].mxu1 }
 0xa1e   :  { %v5222_v59 = vpop.f32.mrb[54].mxu0  ;;  %v5293_v26 = vpop.f32.mrb[54].mxu1 }
 0xa1f   :  { %v11630_v37 = vpop.f32.mrb[55].mxu0  ;;  %v11632_v2 = vpop.f32.mrb[55].mxu1 }
 0xa26   :  { %v11634_v3 = vpop.f32.mrb[56].mxu0  ;;  %v11636_v27 = vpop.f32.mrb[56].mxu1 }
 0xa27   :  { %v11638_v7 = vpop.f32.mrb[57].mxu0  ;;  %v11640_v47 = vpop.f32.mrb[57].mxu1 }
 0xa2e   :  { %v11642_v29 = vpop.f32.mrb[58].mxu0  ;;  %v11644_v58 = vpop.f32.mrb[58].mxu1 }
 0xa2f   :  { %v11646_v50 = vpop.f32.mrb[59].mxu0  ;;  %v11648_v5 = vpop.f32.mrb[59].mxu1 }
 0xa36   :  { %v11650_v31 = vpop.f32.mrb[60].mxu0  ;;  %v11652_v46 = vpop.f32.mrb[60].mxu1 }
 0xa37   :  { %v11654_v30 = vpop.f32.mrb[61].mxu0  ;;  %v11656_v6 = vpop.f32.mrb[61].mxu1 }
 0xa3e   :  { %v11658_v20 = vpop.f32.mrb[62].mxu0  ;;  %v11660_v61 = vpop.f32.mrb[62].mxu1 }
 0xa3f   :  { %12258 = vst [vmem:[#allocation58_spill] sm:$0xff] %v11658_v20  ;;  %12259 = vst [vmem:[#allocation59_spill] sm:$0xff] %v11660_v61  ;;  %v11662_v12 = vpop.f32.mrb[63].mxu0  ;;  %v11664_v24 = vpop.f32.mrb[63].mxu1 }
 0xa40   :  { %12260 = vst [vmem:[#allocation60_spill] sm:$0xff] %v11662_v12  ;;  %12261 = vst [vmem:[#allocation61_spill] sm:$0xff] %v11664_v24  ;;  %v5083_v24 = vadd.f32 %v5082_v52, %v4893_v36  ;;  %v6297_v36 = vrot.slane %v11422_v13, %v12273_v56 }
 0xa46   :  { %v11666_v21 = vpop.f32.mrb[64].mxu0  ;;  %v11668_v45 = vpop.f32.mrb[64].mxu1 }
 0xa47   :  { %12262 = vst [vmem:[#allocation62_spill] sm:$0xff] %v11666_v21  ;;  %12263 = vst [vmem:[#allocation63_spill] sm:$0xff] %v11668_v45  ;;  %v11670_v25 = vpop.f32.mrb[65].mxu0  ;;  %v11672_v19 = vpop.f32.mrb[65].mxu1  ;;  %v5081_v45 = vadd.f32 %v5080_v35, %v4889_v48  ;;  %v5152_v21 = vadd.f32 %v5151_v22, %v4897_v0  ;;  %v4905_v48 = vrot.slane %v11422_v13, %v12270_v9 }
 0xa48   :  { %12264 = vst [vmem:[#allocation64_spill] sm:$0xff] %v11670_v25  ;;  %12265 = vst [vmem:[#allocation65_spill] sm:$0xff] %v11672_v19  ;;  %v4909_v0 = vrot.slane %v11430_v38, %v12270_v9 }
 0xa4e   :  { %v11674_v40 = vpop.f32.mrb[66].mxu0  ;;  %v11676_v62 = vpop.f32.mrb[66].mxu1 }
 0xa4f   :  { %12266 = vst [vmem:[#allocation66_spill] sm:$0xff] %v11674_v40  ;;  %12267 = vst [vmem:[#allocation67_spill] sm:$0xff] %v11676_v62  ;;  %v11678_v33 = vpop.f32.mrb[67].mxu0  ;;  %v11680_v53 = vpop.f32.mrb[67].mxu1  ;;  %v12275_v62 = vld [vmem:[#allocation26_spill] sm:$0xff] }
 0xa50   :  { %12268 = vst [vmem:[#allocation68_spill] sm:$0xff] %v11678_v33  ;;  %12269 = vst [vmem:[#allocation69_spill] sm:$0xff] %v11680_v53  ;;  %v4901_v33 = vrot.slane %v12275_v62, %v12270_v9  ;;  %v6285_v53 = vrot.slane %v12274_v34, %v12273_v56  ;;  %v6293_v40 = vrot.slane %v12275_v62, %v12273_v56 }
 0xa52   :  { %v5154_v12 = vadd.f32 %v5153_v42, %v4901_v33 }
 0xa56   :  { %v6472_v19 = vpop.f32.mrb[68].mxu0  ;;  %v6543_v25 = vpop.f32.mrb[68].mxu1 }
 0xa57   :  { %v6473_v28 = vadd.f32 %v6472_v19, %v6281_v60  ;;  %v6544_v1 = vadd.f32 %v6543_v25, %v6289_v8  ;;  %v6474_v14 = vpop.f32.mrb[69].mxu0  ;;  %v6545_v11 = vpop.f32.mrb[69].mxu1  ;;  %v4913_v8 = vrot.slane %v11426_v63, %v12270_v9  ;;  %v6305_v60 = vrot.slane %v11426_v63, %v12273_v56 }
 0xa58   :  { %v6475_v61 = vadd.f32 %v6474_v14, %v6285_v53  ;;  %v6546_v20 = vadd.f32 %v6545_v11, %v6293_v40  ;;  %v4917_v11 = vrot.slane %v11434_v17, %v12270_v9  ;;  %v6309_v53 = vrot.slane %v11434_v17, %v12273_v56 }
 0xa59   :  { %v11698_v44 = vmul.f32 %v6473_v28, %v5081_v45  ;;  %v11700_v23 = vmul.f32 %v6544_v1, %v5152_v21  ;;  %v6301_v28 = vrot.slane %v11430_v38, %v12273_v56  ;;  %v5223_v1 = vadd.f32 %v5222_v59, %v4905_v48 }
 0xa5a   :  { %v11702_v34 = vmul.f32 %v6475_v61, %v5083_v24  ;;  %v11704_v39 = vmul.f32 %v6546_v20, %v5154_v12  ;;  %v5294_v40 = vadd.f32 %v5293_v26, %v4913_v8  ;;  %v5225_v24 = vadd.f32 %v11630_v37, %v4909_v0 }
 0xa5b   :  { %v5296_v12 = vadd.f32 %v11632_v2, %v4917_v11  ;;  %v4921_v59 = vrot.slane %v11456_v15, %v12270_v9  ;;  %v4929_v26 = vrot.slane %v11460_v18, %v12270_v9  ;;  %v6313_v37 = vrot.slane %v11456_v15, %v12273_v56 }
 0xa5c   :  { %v6321_v2 = vrot.slane %v11460_v18, %v12273_v56  ;;  %v4925_v48 = vrot.slane %v11464_v41, %v12270_v9  ;;  %v4933_v8 = vrot.slane %v11468_v55, %v12270_v9 }
 0xa5e   :  { %v6614_v33 = vpop.f32.mrb[70].mxu0  ;;  %v6685_v14 = vpop.f32.mrb[70].mxu1 }
 0xa5f   :  { %v6615_v19 = vadd.f32 %v6614_v33, %v6297_v36  ;;  %v6686_v25 = vadd.f32 %v6685_v14, %v6305_v60  ;;  %v6616_v45 = vpop.f32.mrb[71].mxu0  ;;  %v6687_v21 = vpop.f32.mrb[71].mxu1  ;;  %v6317_v36 = vrot.slane %v11464_v41, %v12273_v56  ;;  %v6325_v60 = vrot.slane %v11468_v55, %v12273_v56 }
 0xa60   :  { %v6617_v61 = vadd.f32 %v6616_v45, %v6301_v28  ;;  %v6688_v35 = vadd.f32 %v6687_v21, %v6309_v53  ;;  %v5365_v28 = vadd.f32 %v11634_v3, %v4921_v59  ;;  %v5436_v53 = vadd.f32 %v11636_v27, %v4929_v26 }
 0xa61   :  { %v11724_v22 = vmul.f32 %v6615_v19, %v5223_v1  ;;  %v11726_v52 = vmul.f32 %v6686_v25, %v5294_v40  ;;  %v5367_v19 = vadd.f32 %v11638_v7, %v4925_v48  ;;  %v5438_v25 = vadd.f32 %v11640_v47, %v4933_v8 }
 0xa62   :  { %v11728_v42 = vmul.f32 %v6617_v61, %v5225_v24  ;;  %v11730_v20 = vmul.f32 %v6688_v35, %v5296_v12  ;;  %v4937_v3 = vrot.slane %v11490_v32, %v12270_v9  ;;  %v4945_v27 = vrot.slane %v11494_v4, %v12270_v9 }
 0xa63   :  { %v6329_v7 = vrot.slane %v11490_v32, %v12273_v56  ;;  %v6337_v47 = vrot.slane %v11494_v4, %v12273_v56  ;;  %v4941_v59 = vrot.slane %v11498_v49, %v12270_v9  ;;  %v4949_v26 = vrot.slane %v11502_v16, %v12270_v9 }
 0xa66   :  { %v6756_v0 = vpop.f32.mrb[72].mxu0  ;;  %v6827_v11 = vpop.f32.mrb[72].mxu1 }
 0xa67   :  { %v6757_v33 = vadd.f32 %v6756_v0, %v6313_v37  ;;  %v6828_v14 = vadd.f32 %v6827_v11, %v6321_v2  ;;  %v6758_v1 = vpop.f32.mrb[73].mxu0  ;;  %v6829_v40 = vpop.f32.mrb[73].mxu1  ;;  %v6333_v37 = vrot.slane %v11498_v49, %v12273_v56  ;;  %v6341_v2 = vrot.slane %v11502_v16, %v12273_v56 }
 0xa68   :  { %v6759_v45 = vadd.f32 %v6758_v1, %v6317_v36  ;;  %v6830_v21 = vadd.f32 %v6829_v40, %v6325_v60  ;;  %v5507_v36 = vadd.f32 %v11642_v29, %v4937_v3  ;;  %v5578_v60 = vadd.f32 %v11644_v58, %v4945_v27 }
 0xa69   :  { %v11752_v24 = vmul.f32 %v6757_v33, %v5365_v28  ;;  %v11754_v12 = vmul.f32 %v6828_v14, %v5436_v53  ;;  %v5509_v33 = vadd.f32 %v11646_v50, %v4941_v59  ;;  %v5580_v14 = vadd.f32 %v11648_v5, %v4949_v26 }
 0xa6a   :  { %v11756_v61 = vmul.f32 %v6759_v45, %v5367_v19  ;;  %v11758_v35 = vmul.f32 %v6830_v21, %v5438_v25  ;;  %v4953_v29 = vrot.slane %v11524_v57, %v12270_v9  ;;  %v4961_v58 = vrot.slane %v11528_v51, %v12270_v9 }
 0xa6b   :  { %v6345_v50 = vrot.slane %v11524_v57, %v12273_v56  ;;  %v6353_v5 = vrot.slane %v11528_v51, %v12273_v56  ;;  %v4957_v3 = vrot.slane %v11532_v43, %v12270_v9  ;;  %v4965_v27 = vrot.slane %v11536_v10, %v12270_v9 }
 0xa6e   :  { %v6898_v48 = vpop.f32.mrb[74].mxu0  ;;  %v6969_v8 = vpop.f32.mrb[74].mxu1 }
 0xa6f   :  { %v6899_v0 = vadd.f32 %v6898_v48, %v6329_v7  ;;  %v6970_v11 = vadd.f32 %v6969_v8, %v6337_v47  ;;  %v6900_v28 = vpop.f32.mrb[75].mxu0  ;;  %v6971_v53 = vpop.f32.mrb[75].mxu1  ;;  %v6349_v7 = vrot.slane %v11532_v43, %v12273_v56  ;;  %v6357_v47 = vrot.slane %v11536_v10, %v12273_v56 }
 0xa70   :  { %v6901_v1 = vadd.f32 %v6900_v28, %v6333_v37  ;;  %v6972_v40 = vadd.f32 %v6971_v53, %v6341_v2  ;;  %v5649_v37 = vadd.f32 %v11650_v31, %v4953_v29  ;;  %v5720_v2 = vadd.f32 %v11652_v46, %v4961_v58  ;;  %v12279_v46 = vld [vmem:[#allocation49_spill] sm:$0xff]  ;;  %v12280_v58 = vld [vmem:[#allocation50_spill] sm:$0xff] }
 0xa71   :  { %v11780_v19 = vmul.f32 %v6899_v0, %v5507_v36  ;;  %v11782_v25 = vmul.f32 %v6970_v11, %v5578_v60  ;;  %v5651_v0 = vadd.f32 %v11654_v30, %v4957_v3  ;;  %v5722_v11 = vadd.f32 %v11656_v6, %v4965_v27 }
 0xa72   :  { %v11784_v45 = vmul.f32 %v6901_v1, %v5509_v33  ;;  %v11786_v21 = vmul.f32 %v6972_v40, %v5580_v14  ;;  %v4969_v31 = vrot.slane %v11558_v54, %v12270_v9  ;;  %v4977_v29 = vrot.slane %v12279_v46, %v12270_v9 }
 0xa73   :  { %v6361_v30 = vrot.slane %v11558_v54, %v12273_v56  ;;  %v6369_v6 = vrot.slane %v12279_v46, %v12273_v56  ;;  %v6365_v27 = vrot.slane %v12280_v58, %v12273_v56 }
 0xa76   :  { %v7040_v59 = vpop.f32.mrb[76].mxu0 }
 0xa77   :  { %v7111_v26 = vpop.f32.mrb[76].mxu1  ;;  %v7041_v48 = vadd.f32 %v7040_v59, %v6345_v50  ;;  %v7042_v36 = vpop.f32.mrb[77].mxu0  ;;  %v4973_v50 = vrot.slane %v12280_v58, %v12270_v9 }
 0xa78   :  { %v7112_v8 = vadd.f32 %v7111_v26, %v6353_v5  ;;  %v7113_v60 = vpop.f32.mrb[77].mxu1  ;;  %v7043_v28 = vadd.f32 %v7042_v36, %v6349_v7  ;;  %v12281_v5 = vld [vmem:[#allocation51_spill] sm:$0xff]  ;;  %v12282_v26 = vld [vmem:[#allocation58_spill] sm:$0xff] }
 0xa79   :  { %v7114_v53 = vadd.f32 %v7113_v60, %v6357_v47  ;;  %v11808_v33 = vmul.f32 %v7041_v48, %v5649_v37  ;;  %v4981_v3 = vrot.slane %v12281_v5, %v12270_v9  ;;  %v6373_v7 = vrot.slane %v12281_v5, %v12273_v56 }
 0xa7a   :  { %v11810_v14 = vmul.f32 %v7112_v8, %v5720_v2  ;;  %v11812_v1 = vmul.f32 %v7043_v28, %v5651_v0  ;;  %v5791_v37 = vadd.f32 %v12282_v26, %v4969_v31  ;;  %v12283_v2 = vld [vmem:[#allocation59_spill] sm:$0xff]  ;;  %v12290_v31 = vld [vmem:[#allocation53_spill] sm:$0xff] }
 0xa7b   :  { %v11814_v40 = vmul.f32 %v7114_v53, %v5722_v11  ;;  %v5862_v48 = vadd.f32 %v12283_v2, %v4977_v29  ;;  %v12284_v11 = vld [vmem:[#allocation60_spill] sm:$0xff]  ;;  %v12285_v53 = vld [vmem:[#allocation61_spill] sm:$0xff]  ;;  %v4985_v29 = vrot.slane %v12290_v31, %v12270_v9 }
 0xa7c   :  { %12276 = vst [vmem:[#allocation13_spill] sm:$0xff] %v11810_v14  ;;  %12277 = vst [vmem:[#allocation14_spill] sm:$0xff] %v11812_v1  ;;  %v5793_v28 = vadd.f32 %v12284_v11, %v4973_v50  ;;  %v5864_v46 = vadd.f32 %v12285_v53, %v4981_v3  ;;  %v6377_v50 = vrot.slane %v12290_v31, %v12273_v56 }
 0xa7d   :  { %12278 = vst [vmem:[#allocation26_spill] sm:$0xff] %v11814_v40 }
 0xa7e   :  { %v7182_v47 = vpop.f32.mrb[78].mxu0 }
 0xa7f   :  { %v7253_v59 = vpop.f32.mrb[78].mxu1  ;;  %v7183_v8 = vadd.f32 %v7182_v47, %v6361_v30  ;;  %v7184_v60 = vpop.f32.mrb[79].mxu0  ;;  %v12291_v30 = vld [vmem:[#allocation54_spill] sm:$0xff] }
 0xa80   :  { %v7254_v36 = vadd.f32 %v7253_v59, %v6369_v6  ;;  %v7255_v0 = vpop.f32.mrb[79].mxu1  ;;  %v7185_v54 = vadd.f32 %v7184_v60, %v6365_v27  ;;  %v4993_v6 = vrot.slane %v12291_v30, %v12270_v9  ;;  %v6385_v3 = vrot.slane %v12291_v30, %v12273_v56  ;;  %v11852_v27 = vld [vmem:[#allocation7 + $0x18c8] sm:$0xff] }
 0xa81   :  { %v7256_v40 = vadd.f32 %v7255_v0, %v6373_v7  ;;  %v11836_v58 = vmul.f32 %v7183_v8, %v5791_v37  ;;  %12292 = vst [vmem:[#allocation70_spill] sm:$0xff] %v11852_v27  ;;  %v11856_v7 = vld [vmem:[#allocation7 + $0x18d8] sm:$0xff]  ;;  %v12294_v37 = vld [vmem:[#allocation62_spill] sm:$0xff]  ;;  %v12297_v30 = vld [vmem:[#allocation65_spill] sm:$0xff] }
 0xa82   :  { %v11838_v1 = vmul.f32 %v7254_v36, %v5862_v48  ;;  %v11840_v5 = vmul.f32 %v7185_v54, %v5793_v28  ;;  %v4989_v54 = vrot.slane %v11852_v27, %v12270_v9  ;;  %12293 = vst [vmem:[#allocation71_spill] sm:$0xff] %v11856_v7  ;;  %v6389_v47 = vrot.slane %v11856_v7, %v12273_v56  ;;  %v12295_v48 = vld [vmem:[#allocation63_spill] sm:$0xff]  ;;  %v12296_v28 = vld [vmem:[#allocation64_spill] sm:$0xff] }
 0xa83   :  { %12286 = vst [vmem:[#allocation58_spill] sm:$0xff] %v11836_v58  ;;  %v11842_v14 = vmul.f32 %v7256_v40, %v5864_v46  ;;  %v4997_v40 = vrot.slane %v11856_v7, %v12270_v9  ;;  %v6381_v46 = vrot.slane %v11852_v27, %v12273_v56  ;;  %v5933_v2 = vadd.f32 %v12294_v37, %v4985_v29  ;;  %v11876_v29 = vld [vmem:[#allocation7 + $0x18e0] sm:$0xff]  ;;  %v12304_v37 = vld [vmem:[#allocation66_spill] sm:$0xff] }
 0xa84   :  { %12287 = vst [vmem:[#allocation59_spill] sm:$0xff] %v11838_v1  ;;  %12288 = vst [vmem:[#allocation60_spill] sm:$0xff] %v11840_v5  ;;  %v6004_v8 = vadd.f32 %v12295_v48, %v4993_v6  ;;  %v5935_v53 = vadd.f32 %v12296_v28, %v4989_v54  ;;  %v5001_v6 = vrot.slane %v11876_v29, %v12270_v9  ;;  %v12305_v48 = vld [vmem:[#allocation67_spill] sm:$0xff]  ;;  %v12306_v28 = vld [vmem:[#allocation68_spill] sm:$0xff] }
 0xa85   :  { %12289 = vst [vmem:[#allocation61_spill] sm:$0xff] %v11842_v14  ;;  %v6006_v31 = vadd.f32 %v12297_v30, %v4997_v40  ;;  %12300 = vst [vmem:[#allocation64_spill] sm:$0xff] %v11876_v29 }
 0xa86   :  { %v7324_v59 = vpop.f32.mrb[80].mxu0 }
 0xa87   :  { %v7395_v26 = vpop.f32.mrb[80].mxu1  ;;  %v7325_v36 = vadd.f32 %v7324_v59, %v6377_v50  ;;  %v7326_v0 = vpop.f32.mrb[81].mxu0  ;;  %v11880_v50 = vld [vmem:[#allocation7 + $0x18f0] sm:$0xff] }
 0xa88   :  { %v7396_v60 = vadd.f32 %v7395_v26, %v6385_v3  ;;  %v7397_v11 = vpop.f32.mrb[81].mxu1  ;;  %v7327_v14 = vadd.f32 %v7326_v0, %v6381_v46  ;;  %12301 = vst [vmem:[#allocation65_spill] sm:$0xff] %v11880_v50  ;;  %v5009_v30 = vrot.slane %v11880_v50, %v12270_v9  ;;  %v6393_v3 = vrot.slane %v11876_v29, %v12273_v56 }
 0xa89   :  { %v7398_v5 = vadd.f32 %v7397_v11, %v6389_v47  ;;  %v11868_v27 = vmul.f32 %v7325_v36, %v5933_v2  ;;  %v6401_v54 = vrot.slane %v11880_v50, %v12273_v56  ;;  %v6075_v2 = vadd.f32 %v12304_v37, %v5001_v6  ;;  %v12307_v50 = vld [vmem:[#allocation69_spill] sm:$0xff]  ;;  %v12308_v6 = vld [vmem:[#allocation16_spill] sm:$0xff] }
 0xa8a   :  { %v11870_v1 = vmul.f32 %v7396_v60, %v6004_v8  ;;  %v11872_v7 = vmul.f32 %v7327_v14, %v5935_v53  ;;  %v11888_v14 = vld [vmem:[#allocation7 + $0x18e8] sm:$0xff]  ;;  %v6146_v8 = vadd.f32 %v12305_v48, %v5009_v30  ;;  %v12309_v30 = vld [vmem:[#allocation23_spill] sm:$0xff] }
 0xa8b   :  { %v11874_v58 = vmul.f32 %v7398_v5, %v6006_v31  ;;  %12302 = vst [vmem:[#allocation72_spill] sm:$0xff] %v11888_v14  ;;  %v5005_v5 = vrot.slane %v11888_v14, %v12270_v9  ;;  %v11892_v31 = vld [vmem:[#allocation7 + $0x18f8] sm:$0xff]  ;;  %v6397_v46 = vrot.slane %v11888_v14, %v12273_v56 }
 0xa8c   :  { %12298 = vst [vmem:[#allocation62_spill] sm:$0xff] %v11872_v7  ;;  %12303 = vst [vmem:[#allocation73_spill] sm:$0xff] %v11892_v31  ;;  %v5013_v40 = vrot.slane %v11892_v31, %v12270_v9  ;;  %v6405_v47 = vrot.slane %v11892_v31, %v12273_v56 }
 0xa8d   :  { %12299 = vst [vmem:[#allocation63_spill] sm:$0xff] %v11874_v58  ;;  %v6077_v53 = vadd.f32 %v12306_v28, %v5005_v5 }
 0xa8e   :  { %v7466_v59 = vpop.f32.mrb[82].mxu0  ;;  %v6148_v9 = vadd.f32 %v12307_v50, %v5013_v40  ;;  %v12311_v50 = vld [vmem:[#allocation25_spill] sm:$0xff] }
 0xa8f   :  { %v7537_v26 = vpop.f32.mrb[82].mxu1  ;;  %v7467_v36 = vadd.f32 %v7466_v59, %v6393_v3  ;;  %v7468_v0 = vpop.f32.mrb[83].mxu0  ;;  %v7705_v3 = vrot.slane %v12309_v30, %v12308_v6  ;;  %v7709_v40 = vrot.slane %v12311_v50, %v12308_v6 }
 0xa90   :  { %v7538_v60 = vadd.f32 %v7537_v26, %v6401_v54  ;;  %v7539_v11 = vpop.f32.mrb[83].mxu1  ;;  %v7469_v29 = vadd.f32 %v7468_v0, %v6397_v46  ;;  %v12310_v54 = vld [vmem:[#allocation24_spill] sm:$0xff]  ;;  %v10335_v26 = vmov 1983009808   ;;  %v7717_v46 = vrot.slane %v12275_v62, %v12308_v6 }
 0xa91   :  { %v7540_v58 = vadd.f32 %v7539_v11, %v6405_v47  ;;  %v11904_v14 = vmul.f32 %v7467_v36, %v6075_v2  ;;  %v7713_v59 = vrot.slane %v12310_v54, %v12308_v6  ;;  %v9065_v5 = vunpack.c.l.s4 %v10335_v26 }
 0xa92   :  { %v11906_v7 = vmul.f32 %v7538_v60, %v6146_v8  ;;  %v11908_v56 = vmul.f32 %v7469_v29, %v6077_v53  ;;  %v7721_v62 = vrot.slane %v11422_v13, %v12308_v6  ;;  %v7733_v13 = vrot.slane %v11434_v17, %v12308_v6 }
 0xa93   :  { %v11910_v31 = vmul.f32 %v7540_v58, %v6148_v9  ;;  %v9066_v48 = vunpack.c.0.s8 %v9065_v5  ;;  %v12312_v9 = vld [vmem:[#allocation27_spill] sm:$0xff]  ;;  %v7729_v5 = vrot.slane %v11426_v63, %v12308_v6 }
 0xa96   :  { %v7896_v47 = vpop.f32.mrb[84].mxu0 }
 0xa97   :  { %v7967_v37 = vpop.f32.mrb[84].mxu1  ;;  %v7897_v29 = vadd.f32 %v7896_v47, %v7705_v3  ;;  %v7898_v58 = vpop.f32.mrb[85].mxu0  ;;  %v12313_v3 = vld [vmem:[#allocation28_spill] sm:$0xff] }
 0xa98   :  { %v7968_v2 = vadd.f32 %v7967_v37, %v7713_v59  ;;  %v7969_v8 = vpop.f32.mrb[85].mxu1  ;;  %v7899_v36 = vadd.f32 %v7898_v58, %v7709_v40  ;;  %v12314_v59 = vld [vmem:[#allocation12_spill] sm:$0xff] }
 0xa99   :  { %v7970_v60 = vadd.f32 %v7969_v8, %v7717_v46  ;;  %v8966_v0 = vmul.f32 %v7897_v29, %v11698_v44  ;;  %v11929_v26 = vsub.s32 %v9066_v48, %v12314_v59  ;;  %v12315_v44 = vld [vmem:[#allocation29_spill] sm:$0xff]  ;;  %v12319_v59 = vld [vmem:[#allocation35_spill] sm:$0xff] }
 0xa9a   :  { %v8968_v11 = vmul.f32 %v7968_v2, %v11700_v23  ;;  %v8967_v28 = vmul.f32 %v7899_v36, %v11702_v34  ;;  %v12316_v23 = vld [vmem:[#allocation30_spill] sm:$0xff]  ;;  %v7725_v34 = vrot.slane %v11430_v38, %v12308_v6 }
 0xa9b   :  { %v8969_v53 = vmul.f32 %v7970_v60, %v11704_v39  ;;  %v8998_v30 = vadd.f32 %v8966_v0, %v12312_v9  ;;  %v12318_v9 = vld [vmem:[#allocation33_spill] sm:$0xff] }
 0xa9c   :  { %v9000_v54 = vadd.f32 %v8968_v11, %v12313_v3  ;;  %v8999_v50 = vadd.f32 %v8967_v28, %v12315_v44  ;;  %v7737_v3 = vrot.slane %v11456_v15, %v12308_v6 }
 0xa9d   :  { %v9001_v40 = vadd.f32 %v8969_v53, %v12316_v23  ;;  %v12317_v53 = vld [vmem:[#allocation32_spill] sm:$0xff] }
 0xa9e   :  { %v9062_v39 = vcombine.low %v8998_v30, %v8999_v50  ;;  %v8038_v47 = vpop.f32.mrb[86].mxu0 }
 0xa9f   :  { %v9063_v46 = vcombine.low %v9000_v54, %v9001_v40  ;;  %v8109_v37 = vpop.f32.mrb[86].mxu1  ;;  %v8039_v29 = vadd.f32 %v8038_v47, %v7721_v62  ;;  %v8040_v58 = vpop.f32.mrb[87].mxu0  ;;  %v7745_v54 = vrot.slane %v11460_v18, %v12308_v6 }
 0xaa0   :  { %v8110_v2 = vadd.f32 %v8109_v37, %v7729_v5  ;;  %v8111_v48 = vpop.f32.mrb[87].mxu1  ;;  %v9070_v63 = vrot.slane %v9062_v39, %v11929_v26  ;;  %v8041_v36 = vadd.f32 %v8040_v58, %v7725_v34  ;;  %v12320_v5 = vld [vmem:[#allocation36_spill] sm:$0xff] }
 0xaa1   :  { %v9077_v8 = vrot.slane %v9063_v46, %v11929_v26  ;;  %v8112_v60 = vadd.f32 %v8111_v48, %v7733_v13  ;;  %v8970_v0 = vmul.f32 %v8039_v29, %v11724_v22  ;;  %v12321_v48 = vld [vmem:[#allocation15_spill] sm:$0xff] }
 0xaa2   :  { %v8972_v38 = vmul.f32 %v8110_v2, %v11726_v52  ;;  %v8971_v17 = vmul.f32 %v8041_v36, %v11728_v42  ;;  %v7741_v42 = vrot.slane %v11464_v41, %v12308_v6 }
 0xaa3   :  { %v9078_v11 = vcombine.low %v9070_v63, %v9077_v8  ;;  %v8973_v28 = vmul.f32 %v8112_v60, %v11730_v20  ;;  %v9002_v62 = vadd.f32 %v8970_v0, %v12317_v53  ;;  %v7749_v20 = vrot.slane %v11468_v55, %v12308_v6  ;;  %v12322_v8 = vld [vmem:[#allocation37_spill] sm:$0xff] }
 0xaa4   :  { %v9004_v30 = vadd.f32 %v8972_v38, %v12318_v9  ;;  %v9003_v22 = vadd.f32 %v8971_v17, %v12319_v59  ;;  %v7753_v60 = vrot.slane %v11490_v32, %v12308_v6  ;;  %v7761_v0 = vrot.slane %v11494_v4, %v12308_v6  ;;  %v12323_v38 = vld [vmem:[#allocation38_spill] sm:$0xff] }
 0xaa5   :  { %9206 = vst [vmem:[#allocation8] sm:$0xff] %v9078_v11  ;;  %v9005_v52 = vadd.f32 %v8973_v28, %v12320_v5  ;;  %v12324_v11 = vld [vmem:[#allocation39_spill] sm:$0xff] }
 0xaa6   :  { %v9079_v44 = vcombine.low %v9002_v62, %v9003_v22  ;;  %v8180_v23 = vpop.f32.mrb[88].mxu0 }
 0xaa7   :  { %v9080_v50 = vcombine.low %v9004_v30, %v9005_v52  ;;  %v8251_v40 = vpop.f32.mrb[88].mxu1  ;;  %v8181_v34 = vadd.f32 %v8180_v23, %v7737_v3  ;;  %v8182_v13 = vpop.f32.mrb[89].mxu0 }
 0xaa8   :  { %v8252_v15 = vadd.f32 %v8251_v40, %v7745_v54  ;;  %v8253_v39 = vpop.f32.mrb[89].mxu1  ;;  %v9087_v18 = vrot.slane %v9079_v44, %v11929_v26  ;;  %v8183_v47 = vadd.f32 %v8182_v13, %v7741_v42  ;;  %v7769_v40 = vrot.slane %v11524_v57, %v12308_v6  ;;  %v12328_v13 = vld [vmem:[#allocation43_spill] sm:$0xff] }
 0xaa9   :  { %v9094_v46 = vrot.slane %v9080_v50, %v11929_v26  ;;  %v8254_v37 = vadd.f32 %v8253_v39, %v7749_v20  ;;  %v8974_v29 = vmul.f32 %v8181_v34, %v11752_v24  ;;  %v12325_v20 = vld [vmem:[#allocation40_spill] sm:$0xff]  ;;  %v12326_v50 = vld [vmem:[#allocation41_spill] sm:$0xff]  ;;  %v7777_v34 = vrot.slane %v11528_v51, %v12308_v6 }
 0xaaa   :  { %v8976_v41 = vmul.f32 %v8252_v15, %v11754_v12  ;;  %v8975_v55 = vmul.f32 %v8183_v47, %v11756_v61  ;;  %v7757_v61 = vrot.slane %v11498_v49, %v12308_v6  ;;  %v12327_v15 = vld [vmem:[#allocation42_spill] sm:$0xff] }
 0xaab   :  { %v9095_v2 = vcombine.low %v9087_v18, %v9094_v46  ;;  %v8977_v58 = vmul.f32 %v8254_v37, %v11758_v35  ;;  %v9006_v63 = vadd.f32 %v8974_v29, %v12321_v48  ;;  %v7765_v35 = vrot.slane %v11502_v16, %v12308_v6 }
 0xaac   :  { %v9008_v36 = vadd.f32 %v8976_v41, %v12322_v8  ;;  %v9007_v24 = vadd.f32 %v8975_v55, %v12323_v38  ;;  %v12332_v38 = vld [vmem:[#allocation44_spill] sm:$0xff] }
 0xaad   :  { %9207 = vst [vmem:[#allocation8 + $0x8] sm:$0xff] %v9095_v2  ;;  %v9009_v12 = vadd.f32 %v8977_v58, %v12324_v11  ;;  %v12333_v11 = vld [vmem:[#allocation45_spill] sm:$0xff] }
 0xaae   :  { %v9096_v17 = vcombine.low %v9006_v63, %v9007_v24  ;;  %v8322_v53 = vpop.f32.mrb[90].mxu0 }
 0xaaf   :  { %v9097_v28 = vcombine.low %v9008_v36, %v9009_v12  ;;  %v8393_v62 = vpop.f32.mrb[90].mxu1  ;;  %v8323_v9 = vadd.f32 %v8322_v53, %v7753_v60  ;;  %v8324_v30 = vpop.f32.mrb[91].mxu0  ;;  %v12331_v60 = vld [vmem:[#allocation26_spill] sm:$0xff] }
 0xab0   :  { %v8394_v32 = vadd.f32 %v8393_v62, %v7761_v0  ;;  %v8395_v3 = vpop.f32.mrb[91].mxu1  ;;  %v9104_v4 = vrot.slane %v9096_v17, %v11929_v26  ;;  %v8325_v59 = vadd.f32 %v8324_v30, %v7757_v61  ;;  %v12334_v61 = vld [vmem:[#allocation48_spill] sm:$0xff]  ;;  %v12335_v17 = vld [vmem:[#allocation49_spill] sm:$0xff]  ;;  %v12336_v53 = vld [vmem:[#allocation46_spill] sm:$0xff] }
 0xab1   :  { %v9111_v54 = vrot.slane %v9097_v28, %v11929_v26  ;;  %v8396_v22 = vadd.f32 %v8395_v3, %v7765_v35  ;;  %v8978_v5 = vmul.f32 %v8323_v9, %v11780_v19  ;;  %v7785_v35 = vrot.slane %v12334_v61, %v12308_v6  ;;  %v12337_v62 = vld [vmem:[#allocation47_spill] sm:$0xff] }
 0xab2   :  { %v8980_v49 = vmul.f32 %v8394_v32, %v11782_v25  ;;  %v8979_v16 = vmul.f32 %v8325_v59, %v11784_v45  ;;  %v7773_v45 = vrot.slane %v11532_v43, %v12308_v6  ;;  %v12329_v43 = vld [vmem:[#allocation13_spill] sm:$0xff]  ;;  %v7793_v28 = vrot.slane %v12335_v17, %v12308_v6  ;;  %v12338_v32 = vld [vmem:[#allocation50_spill] sm:$0xff]  ;;  %v12339_v3 = vld [vmem:[#allocation51_spill] sm:$0xff] }
 0xab3   :  { %v9112_v52 = vcombine.low %v9104_v4, %v9111_v54  ;;  %v8981_v42 = vmul.f32 %v8396_v22, %v11786_v21  ;;  %v9010_v44 = vadd.f32 %v8978_v5, %v12325_v20  ;;  %v7781_v21 = vrot.slane %v11536_v10, %v12308_v6  ;;  %v12330_v10 = vld [vmem:[#allocation14_spill] sm:$0xff] }
 0xab4   :  { %v9012_v23 = vadd.f32 %v8980_v49, %v12326_v50  ;;  %v9011_v19 = vadd.f32 %v8979_v16, %v12327_v15  ;;  %v7789_v30 = vrot.slane %v12338_v32, %v12308_v6  ;;  %v7797_v4 = vrot.slane %v12339_v3, %v12308_v6  ;;  %v12341_v15 = vld [vmem:[#allocation59_spill] sm:$0xff]  ;;  %v12352_v32 = vld [vmem:[#allocation62_spill] sm:$0xff] }
 0xab5   :  { %9208 = vst [vmem:[#allocation8 + $0x10] sm:$0xff] %v9112_v52  ;;  %v9013_v25 = vadd.f32 %v8981_v42, %v12328_v13  ;;  %v12353_v3 = vld [vmem:[#allocation63_spill] sm:$0xff] }
 0xab6   :  { %v9113_v39 = vcombine.low %v9010_v44, %v9011_v19  ;;  %v8464_v46 = vpop.f32.mrb[92].mxu0 }
 0xab7   :  { %v9114_v18 = vcombine.low %v9012_v23, %v9013_v25  ;;  %v8535_v47 = vpop.f32.mrb[92].mxu1  ;;  %v8465_v37 = vadd.f32 %v8464_v46, %v7769_v40  ;;  %v8466_v29 = vpop.f32.mrb[93].mxu0  ;;  %v12340_v40 = vld [vmem:[#allocation58_spill] sm:$0xff]  ;;  %v12342_v25 = vld [vmem:[#allocation60_spill] sm:$0xff] }
 0xab8   :  { %v8536_v57 = vadd.f32 %v8535_v47, %v7777_v34  ;;  %v8537_v41 = vpop.f32.mrb[93].mxu1  ;;  %v9121_v51 = vrot.slane %v9113_v39, %v11929_v26  ;;  %v8467_v55 = vadd.f32 %v8466_v29, %v7773_v45  ;;  %v12345_v47 = vld [vmem:[#allocation18_spill] sm:$0xff] }
 0xab9   :  { %v9128_v2 = vrot.slane %v9114_v18, %v11929_v26  ;;  %v8538_v58 = vadd.f32 %v8537_v41, %v7781_v21  ;;  %v8982_v48 = vmul.f32 %v8465_v37, %v11808_v33  ;;  %v12343_v21 = vld [vmem:[#allocation61_spill] sm:$0xff]  ;;  %v12344_v18 = vld [vmem:[#allocation52_spill] sm:$0xff]  ;;  %v12347_v41 = vld [vmem:[#allocation54_spill] sm:$0xff] }
 0xaba   :  { %v8984_v63 = vmul.f32 %v8536_v57, %v12329_v43  ;;  %v8983_v36 = vmul.f32 %v8467_v55, %v12330_v10  ;;  %v12346_v57 = vld [vmem:[#allocation53_spill] sm:$0xff]  ;;  %v12350_v43 = vld [vmem:[#allocation70_spill] sm:$0xff] }
 0xabb   :  { %v9129_v8 = vcombine.low %v9121_v51, %v9128_v2  ;;  %v8985_v0 = vmul.f32 %v8538_v58, %v12331_v60  ;;  %v9014_v24 = vadd.f32 %v8982_v48, %v12332_v38  ;;  %v7801_v29 = vrot.slane %v12346_v57, %v12308_v6  ;;  %v12348_v2 = vld [vmem:[#allocation31_spill] sm:$0xff]  ;;  %v12349_v58 = vld [vmem:[#allocation34_spill] sm:$0xff] }
 0xabc   :  { %v9016_v12 = vadd.f32 %v8984_v63, %v12333_v11  ;;  %v9015_v33 = vadd.f32 %v8983_v36, %v12336_v53  ;;  %v7809_v51 = vrot.slane %v12347_v41, %v12308_v6  ;;  %v7805_v63 = vrot.slane %v12350_v43, %v12308_v6 }
 0xabd   :  { %9209 = vst [vmem:[#allocation8 + $0x18] sm:$0xff] %v9129_v8  ;;  %v9017_v9 = vadd.f32 %v8985_v0, %v12337_v62  ;;  %v12351_v8 = vld [vmem:[#allocation71_spill] sm:$0xff] }
 0xabe   :  { %v9130_v54 = vcombine.low %v9014_v24, %v9015_v33  ;;  %v8606_v22 = vpop.f32.mrb[94].mxu0  ;;  %v7813_v10 = vrot.slane %v12351_v8, %v12308_v6 }
 0xabf   :  { %v9131_v59 = vcombine.low %v9016_v12, %v9017_v9  ;;  %v8677_v5 = vpop.f32.mrb[94].mxu1  ;;  %v8607_v49 = vadd.f32 %v8606_v22, %v7785_v35  ;;  %v8608_v16 = vpop.f32.mrb[95].mxu0  ;;  %v12355_v22 = vld [vmem:[#allocation55_spill] sm:$0xff] }
 0xac0   :  { %v8678_v52 = vadd.f32 %v8677_v5, %v7793_v28  ;;  %v8679_v42 = vpop.f32.mrb[95].mxu1  ;;  %v9138_v20 = vrot.slane %v9130_v54, %v11929_v26  ;;  %v8609_v50 = vadd.f32 %v8608_v16, %v7789_v30  ;;  %v12354_v54 = vld [vmem:[#allocation17_spill] sm:$0xff] }
 0xac1   :  { %v9145_v44 = vrot.slane %v9131_v59, %v11929_v26  ;;  %v8680_v23 = vadd.f32 %v8679_v42, %v7797_v4  ;;  %v8986_v34 = vmul.f32 %v8607_v49, %v12340_v40  ;;  %v12356_v49 = vld [vmem:[#allocation64_spill] sm:$0xff]  ;;  %v12357_v16 = vld [vmem:[#allocation65_spill] sm:$0xff] }
 0xac2   :  { %v8988_v19 = vmul.f32 %v8678_v52, %v12341_v15  ;;  %v8987_v45 = vmul.f32 %v8609_v50, %v12342_v25  ;;  %v7817_v52 = vrot.slane %v12356_v49, %v12308_v6  ;;  %v7825_v42 = vrot.slane %v12357_v16, %v12308_v6  ;;  %v12360_v50 = vld [vmem:[#allocation72_spill] sm:$0xff]  ;;  %v12361_v40 = vld [vmem:[#allocation73_spill] sm:$0xff] }
 0xac3   :  { %v9146_v13 = vcombine.low %v9138_v20, %v9145_v44  ;;  %v8989_v39 = vmul.f32 %v8680_v23, %v12343_v21  ;;  %v9018_v46 = vadd.f32 %v8986_v34, %v12344_v18  ;;  %v12358_v20 = vld [vmem:[#allocation21_spill] sm:$0xff]  ;;  %v12359_v44 = vld [vmem:[#allocation22_spill] sm:$0xff]  ;;  %v7821_v23 = vrot.slane %v12360_v50, %v12308_v6 }
 0xac4   :  { %v9020_v37 = vadd.f32 %v8988_v19, %v12345_v47  ;;  %v9019_v55 = vadd.f32 %v8987_v45, %v12348_v2  ;;  %v7829_v34 = vrot.slane %v12361_v40, %v12308_v6 }
 0xac5   :  { %9210 = vst [vmem:[#allocation8 + $0x20] sm:$0xff] %v9146_v13  ;;  %v9021_v48 = vadd.f32 %v8989_v39, %v12349_v58 }
 0xac6   :  { %v9147_v36 = vcombine.low %v9018_v46, %v9019_v55  ;;  %v8748_v0 = vpop.f32.mrb[96].mxu0  ;;  %v12362_v55 = vld [vmem:[#allocation19_spill] sm:$0xff] }
 0xac7   :  { %v9148_v60 = vcombine.low %v9020_v37, %v9021_v48  ;;  %v8819_v38 = vpop.f32.mrb[96].mxu1  ;;  %v8749_v24 = vadd.f32 %v8748_v0, %v7801_v29  ;;  %v8750_v12 = vpop.f32.mrb[97].mxu0  ;;  %v12363_v48 = vld [vmem:[#allocation20_spill] sm:$0xff] }
 0xac8   :  { %v8820_v11 = vadd.f32 %v8819_v38, %v7809_v51  ;;  %v8821_v61 = vpop.f32.mrb[97].mxu1  ;;  %v9155_v35 = vrot.slane %v9147_v36, %v11929_v26  ;;  %v8751_v28 = vadd.f32 %v8750_v12, %v7805_v63  ;;  %v12364_v63 = vld [vmem:[#allocation56_spill] sm:$0xff] }
 0xac9   :  { %v9162_v17 = vrot.slane %v9148_v60, %v11929_v26  ;;  %v8822_v53 = vadd.f32 %v8821_v61, %v7813_v10  ;;  %v8990_v33 = vmul.f32 %v8749_v24, %v11868_v27  ;;  %v12365_v10 = vld [vmem:[#allocation57_spill] sm:$0xff] }
 0xaca   :  { %v8992_v62 = vmul.f32 %v8820_v11, %v11870_v1  ;;  %v8991_v30 = vmul.f32 %v8751_v28, %v12352_v32 }
 0xacb   :  { %v9163_v9 = vcombine.low %v9155_v35, %v9162_v17  ;;  %v8993_v4 = vmul.f32 %v8822_v53, %v12353_v3  ;;  %v9022_v59 = vadd.f32 %v8990_v33, %v12354_v54 }
 0xacc   :  { %v9024_v5 = vadd.f32 %v8992_v62, %v12355_v22  ;;  %v9023_v27 = vadd.f32 %v8991_v30, %v12358_v20 }
 0xacd   :  { %9211 = vst [vmem:[#allocation8 + $0x28] sm:$0xff] %v9163_v9  ;;  %v9025_v1 = vadd.f32 %v8993_v4, %v12359_v44 }
 0xace   :  { %v9164_v15 = vcombine.low %v9022_v59, %v9023_v27  ;;  %v8890_v13 = vpop.f32.mrb[98].mxu0 }
 0xacf   :  { %v9165_v19 = vcombine.low %v9024_v5, %v9025_v1  ;;  %v8961_v25 = vpop.f32.mrb[98].mxu1  ;;  %v8891_v45 = vadd.f32 %v8890_v13, %v7817_v52  ;;  %v8892_v39 = vpop.f32.mrb[99].mxu0 }
 0xad0   :  { %v8962_v21 = vadd.f32 %v8961_v25, %v7825_v42  ;;  %v8963_v18 = vpop.f32.mrb[99].mxu1  ;;  %v9172_v46 = vrot.slane %v9164_v15, %v11929_v26  ;;  %v8893_v37 = vadd.f32 %v8892_v39, %v7821_v23 }
 0xad1   :  { %v9179_v47 = vrot.slane %v9165_v19, %v11929_v26  ;;  %v8964_v57 = vadd.f32 %v8963_v18, %v7829_v34  ;;  %v8994_v29 = vmul.f32 %v8891_v45, %v11904_v14 }
 0xad2   :  { %v8996_v41 = vmul.f32 %v8962_v21, %v11906_v7  ;;  %v8995_v6 = vmul.f32 %v8893_v37, %v11908_v56 }
 0xad3   :  { %v9180_v51 = vcombine.low %v9172_v46, %v9179_v47  ;;  %v8997_v2 = vmul.f32 %v8964_v57, %v11910_v31  ;;  %v9026_v58 = vadd.f32 %v8994_v29, %v12362_v55 }
 0xad4   :  { %v9028_v43 = vadd.f32 %v8996_v41, %v12363_v48  ;;  %v9027_v8 = vadd.f32 %v8995_v6, %v12364_v63 }
 0xad5   :  { %9212 = vst [vmem:[#allocation8 + $0x30] sm:$0xff] %v9180_v51  ;;  %v9029_v36 = vadd.f32 %v8997_v2, %v12365_v10 }
 0xad6   :  { %v9181_v60 = vcombine.low %v9026_v58, %v9027_v8 }
 0xad7   :  { %v9182_v0 = vcombine.low %v9028_v43, %v9029_v36 }
 0xad8   :  { %v9189_v7 = vrot.slane %v9181_v60, %v11929_v26 }
 0xad9   :  { %v9196_v14 = vrot.slane %v9182_v0, %v11929_v26 }
 0xadb   :  { %v9197_v56 = vcombine.low %v9189_v7, %v9196_v14 }
 0xadd   :  { %9213 = vst [vmem:[#allocation8 + $0x38] sm:$0xff] %v9197_v56 }
 0xade   :  { %10307 = shalt.err (!%p10304_p0)
}
 0xadf   :  { %s10308_s28 = scalar_lea.hbm %s12074_s3, 1024 }
 0xae0   :  { %p10309_p1 = scmp.ne.s32.totalorder %s12074_s3, %s10308_s28  ;;  %p10312_p2 = scmp.lt.u32.totalorder %s10308_s28, %s12074_s3 }
 0xae2   :  { %p10314_p3 = pnand %p10312_p2, %p10309_p1 }
 0xae4   :  { %10317 = shalt.err (!%p10314_p3)
}
 0xae5   :  { %9223 = dma.vmem_to_hbm [thread:$0]  %s9221_s24, 1024, %s12074_s3, [#allocation4]  }
 0xae6   :  { %10322 = dma.done.wait [#allocation4], 1024  }
 0xae7   :  { %10323 = vsyncadd [#allocation4], 4294966272 }
 0xae8   :  { %9227 = vsyncpa [#allocation3], 1 }
 0xae9   :  { %9228 = vsyncpa [#allocation6], 1 }
 0xaea   :  { %9229 = vsyncpa [#allocation4], 1 }

</bundles_post_ra>
